<compile_context>
chip_gen: v5e
topology: v5e:2x2
jax: 0.10.0
libtpu: 0.0.40
codegen_flags: <defaults>
</compile_context>

<pallas_src>
import numpy as np

import jax
import jax.numpy as jnp
from jax.experimental import pallas as pl
from jax.experimental.pallas import tpu as pltpu


# ---------------------------------------------------------------------------
# Fused forward kernel (BT images per grid step)
# ---------------------------------------------------------------------------
def _cnn_forward_kernel(x_ref, g1_ref, b1_ref, g2_ref, b2_ref,
                        wf1_ref, bf1_ref, wf2_ref, bf2_ref, wf3_ref, bf3_ref,
                        o_ref, ym_ref, c1_ref, c2_ref):
    f32 = jnp.float32
    BT = x_ref.shape[0] // 32            # images in this block (static)

    # ---- conv1: 5 shifted MXU GEMMs on the stacked (BT*32, 96) tile --------
    # Output row r = image (r//32), h = r%32 (h>27 rows are junk, never used).
    M1 = BT * 32 - 4
    acc = jnp.dot(x_ref[pl.ds(0, M1), :], g1_ref[0], preferred_element_type=f32)
    for i in range(1, 5):
        acc += jnp.dot(x_ref[pl.ds(i, M1), :], g1_ref[i], preferred_element_type=f32)
    # W-pool: even-w / odd-w output columns were pre-split into the two
    # 128-lane halves by the banded weights -> one elementwise max.
    ym_ref[pl.ds(0, M1), :] = jnp.maximum(acc[:, :128], acc[:, 128:])
    # H-pool via stride-2 sublane reads; bias + ReLU after the pool
    # (per-channel bias commutes with max-pool).
    P1 = BT * 16 - 2
    pooled1 = jnp.maximum(ym_ref[pl.ds(0, P1, 2), :], ym_ref[pl.ds(1, P1, 2), :])
    c1_ref[pl.ds(0, P1), :] = jnp.maximum(pooled1 + b1_ref[...], 0.0)

    # ---- conv2: same scheme on the pooled (BT*16, 128) tile ----------------
    M2 = BT * 16 - 6
    acc2 = jnp.dot(c1_ref[pl.ds(0, M2), :], g2_ref[0], preferred_element_type=f32)
    for i in range(1, 5):
        acc2 += jnp.dot(c1_ref[pl.ds(i, M2), :], g2_ref[i], preferred_element_type=f32)
    ym_ref[pl.ds(0, M2), :] = jnp.maximum(acc2[:, :128], acc2[:, 128:])   # scratch reuse
    P2 = BT * 8 - 3
    pooled2 = jnp.maximum(ym_ref[pl.ds(0, P2, 2), :], ym_ref[pl.ds(1, P2, 2), :])
    c2_ref[pl.ds(0, P2), :] = jnp.maximum(pooled2 + b2_ref[...], 0.0)

    # ---- fc1: PyTorch flatten folded into per-pooled-row weight slabs ------
    # Each image's pooled row hp lives at scratch row 8*b + hp -> stride-8 read.
    h1 = jnp.dot(c2_ref[pl.ds(0, BT, 8), :], wf1_ref[0], preferred_element_type=f32)
    for hp in range(1, 5):
        h1 += jnp.dot(c2_ref[pl.ds(hp, BT, 8), :], wf1_ref[hp],
                      preferred_element_type=f32)
    h1 = jnp.maximum(h1 + bf1_ref[...], 0.0)                 # (BT, 128)

    # ---- fc2 + relu, fc3 + masked log_softmax ------------------------------
    h2 = jnp.maximum(jnp.dot(h1, wf2_ref[...], preferred_element_type=f32)
                     + bf2_ref[...], 0.0)                    # (BT, 128)
    logits = (jnp.dot(h2, wf3_ref[...], preferred_element_type=f32)
              + bf3_ref[...])                                # (BT, 128), lanes>=10 are 0

    lane = jax.lax.broadcasted_iota(jnp.int32, logits.shape, 1)
    valid = lane < 10
    m = jnp.max(jnp.where(valid, logits, jnp.full_like(logits, -jnp.inf)),
                axis=-1, keepdims=True)
    s = jnp.sum(jnp.where(valid, jnp.exp(logits - m), 0.0), axis=-1, keepdims=True)
    o_ref[...] = logits - (m + jnp.log(s))                   # lane-dense (BT,128) store


# ---------------------------------------------------------------------------
# Forward wrapper: one pallas_call, grid over batch blocks
# ---------------------------------------------------------------------------
def cnn_cifar_forward(prep, x_nchw, block_b=8):
    B, C, H, W = x_nchw.shape
    assert (C, H, W) == (3, 32, 32), "CNNCifar expects 3x32x32 inputs"
    BT = block_b
    Bp = ((B + BT - 1) // BT) * BT

    # NCHW -> (B, H, W*C): lane index = 3*w + c, matching the banded-weight rows.
    x2d = jnp.transpose(x_nchw, (0, 2, 3, 1)).reshape(B, 32, 96)
    if Bp != B:
        x2d = jnp.concatenate(
            [x2d, jnp.zeros((Bp - B, 32, 96), x2d.dtype)], axis=0)
    x_rows = x2d.reshape(Bp * 32, 96)                         # stacked image rows

    const3 = lambda b: (0, 0, 0)
    const2 = lambda b: (0, 0)

    out = pl.pallas_call(
        _cnn_forward_kernel,
        out_shape=jax.ShapeDtypeStruct((Bp, 128), jnp.float32),
        grid=(Bp // BT,),
        in_specs=[
            pl.BlockSpec((BT * 32, 96), lambda b: (b, 0)),    # image-row block
            pl.BlockSpec((5, 96, 256), const3),               # conv1 banded weights
            pl.BlockSpec((1, 128), const2),                   # conv1 bias (lane layout)
            pl.BlockSpec((5, 128, 256), const3),              # conv2 banded weights
            pl.BlockSpec((1, 128), const2),                   # conv2 bias (lane layout)
            pl.BlockSpec((5, 128, 128), const3),              # fc1 weight (flatten folded)
            pl.BlockSpec((1, 128), const2),                   # fc1 bias
            pl.BlockSpec((128, 128), const2),                 # fc2 weight (padded)
            pl.BlockSpec((1, 128), const2),                   # fc2 bias
            pl.BlockSpec((128, 128), const2),                 # fc3 weight (padded)
            pl.BlockSpec((1, 128), const2),                   # fc3 bias
        ],
        out_specs=pl.BlockSpec((BT, 128), lambda b: (b, 0)),
        scratch_shapes=[
            pltpu.VMEM((BT * 32, 128), jnp.float32),          # W-pooled conv maps (reused)
            pltpu.VMEM((BT * 16, 128), jnp.float32),          # pooled conv1 tile
            pltpu.VMEM((BT * 8, 128), jnp.float32),           # pooled conv2 tile
        ],
        compiler_params=pltpu.CompilerParams(
            dimension_semantics=("parallel",),
            vmem_limit_bytes=32 * 1024 * 1024,
        ),
    )(x_rows, prep["g1"], prep["b1"], prep["g2"], prep["b2"],
      prep["wf1"], prep["bf1"], prep["wf2"], prep["bf2"], prep["wf3"], prep["bf3"])

    return out[:B, :10]


# ---------------------------------------------------------------------------
# One-time parameter preparation (all padding / reordering hoisted here)
# ---------------------------------------------------------------------------
def prepare_params(params):
    w1 = np.asarray(params["conv1_w"], np.float32)   # (6, 3, 5, 5)
    b1 = np.asarray(params["conv1_b"], np.float32)
    w2 = np.asarray(params["conv2_w"], np.float32)   # (16, 6, 5, 5)
    b2 = np.asarray(params["conv2_b"], np.float32)
    f1w = np.asarray(params["fc1_w"], np.float32)    # (120, 400)
    f1b = np.asarray(params["fc1_b"], np.float32)
    f2w = np.asarray(params["fc2_w"], np.float32)    # (84, 120)
    f2b = np.asarray(params["fc2_b"], np.float32)
    f3w = np.asarray(params["fc3_w"], np.float32)    # (10, 84)
    f3b = np.asarray(params["fc3_b"], np.float32)

    def conv_gemm_weight(w, out_w, rows_total):
        # Banded GEMM weight, one matrix per kernel row i:
        #   G[i, C_in*(wo+j) + c, 128*(wo%2) + C_out*(wo//2) + o] = w[o, c, i, j]
        # so that dot(x[h+i, :], G[i])[col(wo, o)] accumulates the conv at (h, wo, o),
        # with even-w / odd-w outputs split into the two 128-lane halves (pool fusion).
        c_out, c_in, kh, kw = w.shape
        G = np.zeros((kh, rows_total, 256), dtype=np.float32)
        for i in range(kh):
            for wo in range(out_w):
                col0 = 128 * (wo % 2) + c_out * (wo // 2)
                for j in range(kw):
                    r0 = c_in * (wo + j)
                    G[i, r0:r0 + c_in, col0:col0 + c_out] = w[:, :, i, j].T
        return G

    g1 = conv_gemm_weight(w1, out_w=28, rows_total=96)    # lhs lanes: 3*w + c
    g2 = conv_gemm_weight(w2, out_w=10, rows_total=128)   # lhs lanes: 6*w + c (pad->128)

    b1l = np.zeros((1, 128), np.float32)
    b1l[0, :14 * 6] = np.tile(b1, 14)                     # lane = 6*wp + o
    b2l = np.zeros((1, 128), np.float32)
    b2l[0, :5 * 16] = np.tile(b2, 5)                      # lane = 16*wp + o

    # fc1: fold PyTorch's x.view(-1, 400) (index = o*25 + hp*5 + wp) into a
    # per-pooled-row weight stack matching the conv2 tile layout (lane = 16*wp + o).
    wf1 = np.zeros((5, 128, 128), np.float32)
    t = f1w.reshape(120, 16, 5, 5).transpose(2, 3, 1, 0)  # (hp, wp, o, n)
    wf1[:, :80, :120] = t.reshape(5, 80, 120)
    bf1 = np.zeros((1, 128), np.float32); bf1[0, :120] = f1b

    wf2 = np.zeros((128, 128), np.float32); wf2[:120, :84] = f2w.T
    bf2 = np.zeros((1, 128), np.float32); bf2[0, :84] = f2b
    wf3 = np.zeros((128, 128), np.float32); wf3[:84, :10] = f3w.T
    bf3 = np.zeros((1, 128), np.float32); bf3[0, :10] = f3b

    prep = dict(g1=g1, b1=b1l, g2=g2, b2=b2l, wf1=wf1, bf1=bf1,
                wf2=wf2, bf2=bf2, wf3=wf3, bf3=bf3)
    return {k: jnp.asarray(v) for k, v in prep.items()}


# ---------------------------------------------------------------------------
# Parameter init (PyTorch-default-style uniform(+-1/sqrt(fan_in)))
# ---------------------------------------------------------------------------
def _uniform(key, shape, fan_in):
    bound = 1.0 / np.sqrt(float(fan_in))
    return jax.random.uniform(key, shape, jnp.float32, -bound, bound)


def init_params(key):
    ks = jax.random.split(key, 10)
    p = {}
    p["conv1_w"] = _uniform(ks[0], (6, 3, 5, 5), 3 * 5 * 5)
    p["conv1_b"] = _uniform(ks[1], (6,), 3 * 5 * 5)
    p["conv2_w"] = _uniform(ks[2], (16, 6, 5, 5), 6 * 5 * 5)
    p["conv2_b"] = _uniform(ks[3], (16,), 6 * 5 * 5)
    p["fc1_w"] = _uniform(ks[4], (120, 400), 400)
    p["fc1_b"] = _uniform(ks[5], (120,), 400)
    p["fc2_w"] = _uniform(ks[6], (84, 120), 120)
    p["fc2_b"] = _uniform(ks[7], (84,), 120)
    p["fc3_w"] = _uniform(ks[8], (10, 84), 84)
    p["fc3_b"] = _uniform(ks[9], (10,), 84)
    return p


# ---------------------------------------------------------------------------
# Pure-JAX reference (independent formulation, for validation)
# ---------------------------------------------------------------------------
def cnn_cifar_reference(params, x):
    dn = ("NCHW", "OIHW", "NCHW")

    def conv_relu(x, w, b):
        y = jax.lax.conv_general_dilated(x, w, (1, 1), "VALID", dimension_numbers=dn)
        return jnp.maximum(y + b[None, :, None, None], 0.0)

    def pool(x):
        B, C, H, W = x.shape
        return jnp.max(x.reshape(B, C, H // 2, 2, W // 2, 2), axis=(3, 5))

    y = pool(conv_relu(x, params["conv1_w"], params["conv1_b"]))
    y = pool(conv_relu(y, params["conv2_w"], params["conv2_b"]))
    y = y.reshape(y.shape[0], 16 * 5 * 5)
    y = jnp.maximum(y @ params["fc1_w"].T + params["fc1_b"], 0.0)
    y = jnp.maximum(y @ params["fc2_w"].T + params["fc2_b"], 0.0)
    y = y @ params["fc3_w"].T + params["fc3_b"]
    return jax.nn.log_softmax(y, axis=1)


if __name__ == "__main__":
    key = jax.random.PRNGKey(0)
    k_params, k_x = jax.random.split(key)

    # CIFAR-shaped input (32x32x3 is required by fc1's 16*5*5 input dim).
    # B=10 exercises both batch padding (10 -> 16) and a multi-step grid.
    x = jax.random.normal(k_x, (10, 3, 32, 32), dtype=jnp.float32)
    params = init_params(k_params)
    prep = prepare_params(params)          # one-time weight packing / padding

    fwd = jax.jit(cnn_cifar_forward)
    out = jax.block_until_ready(fwd(prep, x))

    ref = jax.block_until_ready(cnn_cifar_reference(params, x))
    assert out.shape == (10, 10), out.shape
    assert jnp.allclose(out, ref, rtol=1e-4, atol=1e-4), "mismatch vs reference"
    # log_softmax rows should normalize to 1 in prob space
    assert jnp.allclose(jnp.exp(out).sum(axis=1), 1.0, atol=1e-4)

    print("KERNEL_OK")
</pallas_src>

<mosaic_0001>
module attributes {stable_mosaic.version = 11 : i64} {
  func.func @_cnn_forward_kernel(%arg0: i32, %arg1: memref<256x96xf32, #tpu.memory_space<vmem>>, %arg2: memref<5x96x256xf32, #tpu.memory_space<vmem>>, %arg3: memref<1x128xf32, #tpu.memory_space<vmem>>, %arg4: memref<5x128x256xf32, #tpu.memory_space<vmem>>, %arg5: memref<1x128xf32, #tpu.memory_space<vmem>>, %arg6: memref<5x128x128xf32, #tpu.memory_space<vmem>>, %arg7: memref<1x128xf32, #tpu.memory_space<vmem>>, %arg8: memref<128x128xf32, #tpu.memory_space<vmem>>, %arg9: memref<1x128xf32, #tpu.memory_space<vmem>>, %arg10: memref<128x128xf32, #tpu.memory_space<vmem>>, %arg11: memref<1x128xf32, #tpu.memory_space<vmem>>, %arg12: memref<8x128xf32, #tpu.memory_space<vmem>>, %arg13: memref<256x128xf32, #tpu.memory_space<vmem>>, %arg14: memref<128x128xf32, #tpu.memory_space<vmem>>, %arg15: memref<64x128xf32, #tpu.memory_space<vmem>>) attributes {dimension_semantics = [#tpu.dimension_semantics<parallel>], iteration_bounds = array<i64: 2>, scalar_prefetch = 0 : i64, scratch_operands = 3 : i64, tpu.core_type = #tpu.core_type<tc>, window_params = [{transform_indices = @transform_0, window_bounds = array<i64: 256, 96>}, {pipeline_mode = #tpu.pipeline_mode<synchronous>, transform_indices = @transform_1, window_bounds = array<i64: 5, 96, 256>}, {pipeline_mode = #tpu.pipeline_mode<synchronous>, transform_indices = @transform_2, window_bounds = array<i64: 1, 128>}, {pipeline_mode = #tpu.pipeline_mode<synchronous>, transform_indices = @transform_3, window_bounds = array<i64: 5, 128, 256>}, {pipeline_mode = #tpu.pipeline_mode<synchronous>, transform_indices = @transform_4, window_bounds = array<i64: 1, 128>}, {pipeline_mode = #tpu.pipeline_mode<synchronous>, transform_indices = @transform_5, window_bounds = array<i64: 5, 128, 128>}, {pipeline_mode = #tpu.pipeline_mode<synchronous>, transform_indices = @transform_6, window_bounds = array<i64: 1, 128>}, {pipeline_mode = #tpu.pipeline_mode<synchronous>, transform_indices = @transform_7, window_bounds = array<i64: 128, 128>}, {pipeline_mode = #tpu.pipeline_mode<synchronous>, transform_indices = @transform_8, window_bounds = array<i64: 1, 128>}, {pipeline_mode = #tpu.pipeline_mode<synchronous>, transform_indices = @transform_9, window_bounds = array<i64: 128, 128>}, {pipeline_mode = #tpu.pipeline_mode<synchronous>, transform_indices = @transform_10, window_bounds = array<i64: 1, 128>}, {transform_indices = @transform_11, window_bounds = array<i64: 8, 128>}]} {
    %c0 = arith.constant 0 : index
    %c0_0 = arith.constant 0 : index
    %0 = vector.load %arg1[%c0, %c0_0] : memref<256x96xf32, #tpu.memory_space<vmem>>, vector<252x96xf32>
    %c0_1 = arith.constant 0 : index
    %c0_2 = arith.constant 0 : index
    %c0_3 = arith.constant 0 : index
    %1 = vector.load %arg2[%c0_1, %c0_2, %c0_3] : memref<5x96x256xf32, #tpu.memory_space<vmem>>, vector<1x96x256xf32>
    %2 = vector.shape_cast %1 : vector<1x96x256xf32> to vector<96x256xf32>
    %cst = arith.constant dense<0.000000e+00> : vector<252x256xf32>
    %3 = tpu.matmul %0, %2, %cst {dimension_numbers = #tpu.dot_dimension_numbers<[1], [0], [0], [1], [0, 0, 1, 1], [], []>} : vector<252x96xf32>, vector<96x256xf32>, vector<252x256xf32> -> vector<252x256xf32>
    %c1 = arith.constant 1 : index
    %c0_4 = arith.constant 0 : index
    %4 = vector.load %arg1[%c1, %c0_4] : memref<256x96xf32, #tpu.memory_space<vmem>>, vector<252x96xf32>
    %c1_5 = arith.constant 1 : index
    %c0_6 = arith.constant 0 : index
    %c0_7 = arith.constant 0 : index
    %5 = vector.load %arg2[%c1_5, %c0_6, %c0_7] : memref<5x96x256xf32, #tpu.memory_space<vmem>>, vector<1x96x256xf32>
    %6 = vector.shape_cast %5 : vector<1x96x256xf32> to vector<96x256xf32>
    %cst_8 = arith.constant dense<0.000000e+00> : vector<252x256xf32>
    %7 = tpu.matmul %4, %6, %cst_8 {dimension_numbers = #tpu.dot_dimension_numbers<[1], [0], [0], [1], [0, 0, 1, 1], [], []>} : vector<252x96xf32>, vector<96x256xf32>, vector<252x256xf32> -> vector<252x256xf32>
    %8 = arith.addf %3, %7 : vector<252x256xf32>
    %c2 = arith.constant 2 : index
    %c0_9 = arith.constant 0 : index
    %9 = vector.load %arg1[%c2, %c0_9] : memref<256x96xf32, #tpu.memory_space<vmem>>, vector<252x96xf32>
    %c2_10 = arith.constant 2 : index
    %c0_11 = arith.constant 0 : index
    %c0_12 = arith.constant 0 : index
    %10 = vector.load %arg2[%c2_10, %c0_11, %c0_12] : memref<5x96x256xf32, #tpu.memory_space<vmem>>, vector<1x96x256xf32>
    %11 = vector.shape_cast %10 : vector<1x96x256xf32> to vector<96x256xf32>
    %cst_13 = arith.constant dense<0.000000e+00> : vector<252x256xf32>
    %12 = tpu.matmul %9, %11, %cst_13 {dimension_numbers = #tpu.dot_dimension_numbers<[1], [0], [0], [1], [0, 0, 1, 1], [], []>} : vector<252x96xf32>, vector<96x256xf32>, vector<252x256xf32> -> vector<252x256xf32>
    %13 = arith.addf %8, %12 : vector<252x256xf32>
    %c3 = arith.constant 3 : index
    %c0_14 = arith.constant 0 : index
    %14 = vector.load %arg1[%c3, %c0_14] : memref<256x96xf32, #tpu.memory_space<vmem>>, vector<252x96xf32>
    %c3_15 = arith.constant 3 : index
    %c0_16 = arith.constant 0 : index
    %c0_17 = arith.constant 0 : index
    %15 = vector.load %arg2[%c3_15, %c0_16, %c0_17] : memref<5x96x256xf32, #tpu.memory_space<vmem>>, vector<1x96x256xf32>
    %16 = vector.shape_cast %15 : vector<1x96x256xf32> to vector<96x256xf32>
    %cst_18 = arith.constant dense<0.000000e+00> : vector<252x256xf32>
    %17 = tpu.matmul %14, %16, %cst_18 {dimension_numbers = #tpu.dot_dimension_numbers<[1], [0], [0], [1], [0, 0, 1, 1], [], []>} : vector<252x96xf32>, vector<96x256xf32>, vector<252x256xf32> -> vector<252x256xf32>
    %18 = arith.addf %13, %17 : vector<252x256xf32>
    %c4 = arith.constant 4 : index
    %c0_19 = arith.constant 0 : index
    %19 = vector.load %arg1[%c4, %c0_19] : memref<256x96xf32, #tpu.memory_space<vmem>>, vector<252x96xf32>
    %c4_20 = arith.constant 4 : index
    %c0_21 = arith.constant 0 : index
    %c0_22 = arith.constant 0 : index
    %20 = vector.load %arg2[%c4_20, %c0_21, %c0_22] : memref<5x96x256xf32, #tpu.memory_space<vmem>>, vector<1x96x256xf32>
    %21 = vector.shape_cast %20 : vector<1x96x256xf32> to vector<96x256xf32>
    %cst_23 = arith.constant dense<0.000000e+00> : vector<252x256xf32>
    %22 = tpu.matmul %19, %21, %cst_23 {dimension_numbers = #tpu.dot_dimension_numbers<[1], [0], [0], [1], [0, 0, 1, 1], [], []>} : vector<252x96xf32>, vector<96x256xf32>, vector<252x256xf32> -> vector<252x256xf32>
    %23 = arith.addf %18, %22 : vector<252x256xf32>
    %24 = vector.extract_strided_slice %23 {offsets = [0, 0], sizes = [252, 128], strides = [1, 1]} : vector<252x256xf32> to vector<252x128xf32>
    %25 = vector.extract_strided_slice %23 {offsets = [0, 128], sizes = [252, 128], strides = [1, 1]} : vector<252x256xf32> to vector<252x128xf32>
    %26 = arith.maximumf %24, %25 : vector<252x128xf32>
    %c0_24 = arith.constant 0 : index
    %c0_25 = arith.constant 0 : index
    %27 = vector.load %arg13[%c0_24, %c0_25] : memref<256x128xf32, #tpu.memory_space<vmem>>, vector<252x128xf32>
    tpu.vector_store %arg13[%c0_24, %c0_25], %26 {strides = array<i32>} : memref<256x128xf32, #tpu.memory_space<vmem>>, vector<252x128xf32>,
    %c0_26 = arith.constant 0 : index
    %c0_27 = arith.constant 0 : index
    %28 = tpu.strided_load %arg13[%c0_26, %c0_27] {strides = array<i32: 2, 1>} : memref<256x128xf32, #tpu.memory_space<vmem>>, vector<126x128xf32>
    %c1_28 = arith.constant 1 : index
    %c0_29 = arith.constant 0 : index
    %29 = tpu.strided_load %arg13[%c1_28, %c0_29] {strides = array<i32: 2, 1>} : memref<256x128xf32, #tpu.memory_space<vmem>>, vector<126x128xf32>
    %30 = arith.maximumf %28, %29 : vector<126x128xf32>
    %c0_30 = arith.constant 0 : index
    %c0_31 = arith.constant 0 : index
    %31 = vector.load %arg3[%c0_30, %c0_31] : memref<1x128xf32, #tpu.memory_space<vmem>>, vector<1x128xf32>
    %32 = vector.broadcast %31 : vector<1x128xf32> to vector<126x128xf32>
    %33 = arith.addf %30, %32 : vector<126x128xf32>
    %cst_32 = arith.constant 0.000000e+00 : f32
    %34 = vector.broadcast %cst_32 : f32 to vector<126x128xf32>
    %35 = arith.maximumf %33, %34 : vector<126x128xf32>
    %c0_33 = arith.constant 0 : index
    %c0_34 = arith.constant 0 : index
    %36 = vector.load %arg14[%c0_33, %c0_34] : memref<128x128xf32, #tpu.memory_space<vmem>>, vector<126x128xf32>
    tpu.vector_store %arg14[%c0_33, %c0_34], %35 {strides = array<i32>} : memref<128x128xf32, #tpu.memory_space<vmem>>, vector<126x128xf32>,
    %c0_35 = arith.constant 0 : index
    %c0_36 = arith.constant 0 : index
    %37 = vector.load %arg14[%c0_35, %c0_36] : memref<128x128xf32, #tpu.memory_space<vmem>>, vector<122x128xf32>
    %c0_37 = arith.constant 0 : index
    %c0_38 = arith.constant 0 : index
    %c0_39 = arith.constant 0 : index
    %38 = vector.load %arg4[%c0_37, %c0_38, %c0_39] : memref<5x128x256xf32, #tpu.memory_space<vmem>>, vector<1x128x256xf32>
    %39 = vector.shape_cast %38 : vector<1x128x256xf32> to vector<128x256xf32>
    %cst_40 = arith.constant dense<0.000000e+00> : vector<122x256xf32>
    %40 = tpu.matmul %37, %39, %cst_40 {dimension_numbers = #tpu.dot_dimension_numbers<[1], [0], [0], [1], [0, 0, 1, 1], [], []>} : vector<122x128xf32>, vector<128x256xf32>, vector<122x256xf32> -> vector<122x256xf32>
    %c1_41 = arith.constant 1 : index
    %c0_42 = arith.constant 0 : index
    %41 = vector.load %arg14[%c1_41, %c0_42] : memref<128x128xf32, #tpu.memory_space<vmem>>, vector<122x128xf32>
    %c1_43 = arith.constant 1 : index
    %c0_44 = arith.constant 0 : index
    %c0_45 = arith.constant 0 : index
    %42 = vector.load %arg4[%c1_43, %c0_44, %c0_45] : memref<5x128x256xf32, #tpu.memory_space<vmem>>, vector<1x128x256xf32>
    %43 = vector.shape_cast %42 : vector<1x128x256xf32> to vector<128x256xf32>
    %cst_46 = arith.constant dense<0.000000e+00> : vector<122x256xf32>
    %44 = tpu.matmul %41, %43, %cst_46 {dimension_numbers = #tpu.dot_dimension_numbers<[1], [0], [0], [1], [0, 0, 1, 1], [], []>} : vector<122x128xf32>, vector<128x256xf32>, vector<122x256xf32> -> vector<122x256xf32>
    %45 = arith.addf %40, %44 : vector<122x256xf32>
    %c2_47 = arith.constant 2 : index
    %c0_48 = arith.constant 0 : index
    %46 = vector.load %arg14[%c2_47, %c0_48] : memref<128x128xf32, #tpu.memory_space<vmem>>, vector<122x128xf32>
    %c2_49 = arith.constant 2 : index
    %c0_50 = arith.constant 0 : index
    %c0_51 = arith.constant 0 : index
    %47 = vector.load %arg4[%c2_49, %c0_50, %c0_51] : memref<5x128x256xf32, #tpu.memory_space<vmem>>, vector<1x128x256xf32>
    %48 = vector.shape_cast %47 : vector<1x128x256xf32> to vector<128x256xf32>
    %cst_52 = arith.constant dense<0.000000e+00> : vector<122x256xf32>
    %49 = tpu.matmul %46, %48, %cst_52 {dimension_numbers = #tpu.dot_dimension_numbers<[1], [0], [0], [1], [0, 0, 1, 1], [], []>} : vector<122x128xf32>, vector<128x256xf32>, vector<122x256xf32> -> vector<122x256xf32>
    %50 = arith.addf %45, %49 : vector<122x256xf32>
    %c3_53 = arith.constant 3 : index
    %c0_54 = arith.constant 0 : index
    %51 = vector.load %arg14[%c3_53, %c0_54] : memref<128x128xf32, #tpu.memory_space<vmem>>, vector<122x128xf32>
    %c3_55 = arith.constant 3 : index
    %c0_56 = arith.constant 0 : index
    %c0_57 = arith.constant 0 : index
    %52 = vector.load %arg4[%c3_55, %c0_56, %c0_57] : memref<5x128x256xf32, #tpu.memory_space<vmem>>, vector<1x128x256xf32>
    %53 = vector.shape_cast %52 : vector<1x128x256xf32> to vector<128x256xf32>
    %cst_58 = arith.constant dense<0.000000e+00> : vector<122x256xf32>
    %54 = tpu.matmul %51, %53, %cst_58 {dimension_numbers = #tpu.dot_dimension_numbers<[1], [0], [0], [1], [0, 0, 1, 1], [], []>} : vector<122x128xf32>, vector<128x256xf32>, vector<122x256xf32> -> vector<122x256xf32>
    %55 = arith.addf %50, %54 : vector<122x256xf32>
    %c4_59 = arith.constant 4 : index
    %c0_60 = arith.constant 0 : index
    %56 = vector.load %arg14[%c4_59, %c0_60] : memref<128x128xf32, #tpu.memory_space<vmem>>, vector<122x128xf32>
    %c4_61 = arith.constant 4 : index
    %c0_62 = arith.constant 0 : index
    %c0_63 = arith.constant 0 : index
    %57 = vector.load %arg4[%c4_61, %c0_62, %c0_63] : memref<5x128x256xf32, #tpu.memory_space<vmem>>, vector<1x128x256xf32>
    %58 = vector.shape_cast %57 : vector<1x128x256xf32> to vector<128x256xf32>
    %cst_64 = arith.constant dense<0.000000e+00> : vector<122x256xf32>
    %59 = tpu.matmul %56, %58, %cst_64 {dimension_numbers = #tpu.dot_dimension_numbers<[1], [0], [0], [1], [0, 0, 1, 1], [], []>} : vector<122x128xf32>, vector<128x256xf32>, vector<122x256xf32> -> vector<122x256xf32>
    %60 = arith.addf %55, %59 : vector<122x256xf32>
    %61 = vector.extract_strided_slice %60 {offsets = [0, 0], sizes = [122, 128], strides = [1, 1]} : vector<122x256xf32> to vector<122x128xf32>
    %62 = vector.extract_strided_slice %60 {offsets = [0, 128], sizes = [122, 128], strides = [1, 1]} : vector<122x256xf32> to vector<122x128xf32>
    %63 = arith.maximumf %61, %62 : vector<122x128xf32>
    %c0_65 = arith.constant 0 : index
    %c0_66 = arith.constant 0 : index
    %64 = vector.load %arg13[%c0_65, %c0_66] : memref<256x128xf32, #tpu.memory_space<vmem>>, vector<122x128xf32>
    tpu.vector_store %arg13[%c0_65, %c0_66], %63 {strides = array<i32>} : memref<256x128xf32, #tpu.memory_space<vmem>>, vector<122x128xf32>,
    %c0_67 = arith.constant 0 : index
    %c0_68 = arith.constant 0 : index
    %65 = tpu.strided_load %arg13[%c0_67, %c0_68] {strides = array<i32: 2, 1>} : memref<256x128xf32, #tpu.memory_space<vmem>>, vector<61x128xf32>
    %c1_69 = arith.constant 1 : index
    %c0_70 = arith.constant 0 : index
    %66 = tpu.strided_load %arg13[%c1_69, %c0_70] {strides = array<i32: 2, 1>} : memref<256x128xf32, #tpu.memory_space<vmem>>, vector<61x128xf32>
    %67 = arith.maximumf %65, %66 : vector<61x128xf32>
    %c0_71 = arith.constant 0 : index
    %c0_72 = arith.constant 0 : index
    %68 = vector.load %arg5[%c0_71, %c0_72] : memref<1x128xf32, #tpu.memory_space<vmem>>, vector<1x128xf32>
    %69 = vector.broadcast %68 : vector<1x128xf32> to vector<61x128xf32>
    %70 = arith.addf %67, %69 : vector<61x128xf32>
    %cst_73 = arith.constant 0.000000e+00 : f32
    %71 = vector.broadcast %cst_73 : f32 to vector<61x128xf32>
    %72 = arith.maximumf %70, %71 : vector<61x128xf32>
    %c0_74 = arith.constant 0 : index
    %c0_75 = arith.constant 0 : index
    %73 = vector.load %arg15[%c0_74, %c0_75] : memref<64x128xf32, #tpu.memory_space<vmem>>, vector<61x128xf32>
    tpu.vector_store %arg15[%c0_74, %c0_75], %72 {strides = array<i32>} : memref<64x128xf32, #tpu.memory_space<vmem>>, vector<61x128xf32>,
    %c0_76 = arith.constant 0 : index
    %c0_77 = arith.constant 0 : index
    %74 = tpu.strided_load %arg15[%c0_76, %c0_77] {strides = array<i32: 8, 1>} : memref<64x128xf32, #tpu.memory_space<vmem>>, vector<8x128xf32>
    %c0_78 = arith.constant 0 : index
    %c0_79 = arith.constant 0 : index
    %c0_80 = arith.constant 0 : index
    %75 = vector.load %arg6[%c0_78, %c0_79, %c0_80] : memref<5x128x128xf32, #tpu.memory_space<vmem>>, vector<1x128x128xf32>
    %76 = vector.shape_cast %75 : vector<1x128x128xf32> to vector<128x128xf32>
    %cst_81 = arith.constant dense<0.000000e+00> : vector<8x128xf32>
    %77 = tpu.matmul %74, %76, %cst_81 {dimension_numbers = #tpu.dot_dimension_numbers<[1], [0], [0], [1], [0, 0, 1, 1], [], []>} : vector<8x128xf32>, vector<128x128xf32>, vector<8x128xf32> -> vector<8x128xf32>
    %c1_82 = arith.constant 1 : index
    %c0_83 = arith.constant 0 : index
    %78 = tpu.strided_load %arg15[%c1_82, %c0_83] {strides = array<i32: 8, 1>} : memref<64x128xf32, #tpu.memory_space<vmem>>, vector<8x128xf32>
    %c1_84 = arith.constant 1 : index
    %c0_85 = arith.constant 0 : index
    %c0_86 = arith.constant 0 : index
    %79 = vector.load %arg6[%c1_84, %c0_85, %c0_86] : memref<5x128x128xf32, #tpu.memory_space<vmem>>, vector<1x128x128xf32>
    %80 = vector.shape_cast %79 : vector<1x128x128xf32> to vector<128x128xf32>
    %cst_87 = arith.constant dense<0.000000e+00> : vector<8x128xf32>
    %81 = tpu.matmul %78, %80, %cst_87 {dimension_numbers = #tpu.dot_dimension_numbers<[1], [0], [0], [1], [0, 0, 1, 1], [], []>} : vector<8x128xf32>, vector<128x128xf32>, vector<8x128xf32> -> vector<8x128xf32>
    %82 = arith.addf %77, %81 : vector<8x128xf32>
    %c2_88 = arith.constant 2 : index
    %c0_89 = arith.constant 0 : index
    %83 = tpu.strided_load %arg15[%c2_88, %c0_89] {strides = array<i32: 8, 1>} : memref<64x128xf32, #tpu.memory_space<vmem>>, vector<8x128xf32>
    %c2_90 = arith.constant 2 : index
    %c0_91 = arith.constant 0 : index
    %c0_92 = arith.constant 0 : index
    %84 = vector.load %arg6[%c2_90, %c0_91, %c0_92] : memref<5x128x128xf32, #tpu.memory_space<vmem>>, vector<1x128x128xf32>
    %85 = vector.shape_cast %84 : vector<1x128x128xf32> to vector<128x128xf32>
    %cst_93 = arith.constant dense<0.000000e+00> : vector<8x128xf32>
    %86 = tpu.matmul %83, %85, %cst_93 {dimension_numbers = #tpu.dot_dimension_numbers<[1], [0], [0], [1], [0, 0, 1, 1], [], []>} : vector<8x128xf32>, vector<128x128xf32>, vector<8x128xf32> -> vector<8x128xf32>
    %87 = arith.addf %82, %86 : vector<8x128xf32>
    %c3_94 = arith.constant 3 : index
    %c0_95 = arith.constant 0 : index
    %88 = tpu.strided_load %arg15[%c3_94, %c0_95] {strides = array<i32: 8, 1>} : memref<64x128xf32, #tpu.memory_space<vmem>>, vector<8x128xf32>
    %c3_96 = arith.constant 3 : index
    %c0_97 = arith.constant 0 : index
    %c0_98 = arith.constant 0 : index
    %89 = vector.load %arg6[%c3_96, %c0_97, %c0_98] : memref<5x128x128xf32, #tpu.memory_space<vmem>>, vector<1x128x128xf32>
    %90 = vector.shape_cast %89 : vector<1x128x128xf32> to vector<128x128xf32>
    %cst_99 = arith.constant dense<0.000000e+00> : vector<8x128xf32>
    %91 = tpu.matmul %88, %90, %cst_99 {dimension_numbers = #tpu.dot_dimension_numbers<[1], [0], [0], [1], [0, 0, 1, 1], [], []>} : vector<8x128xf32>, vector<128x128xf32>, vector<8x128xf32> -> vector<8x128xf32>
    %92 = arith.addf %87, %91 : vector<8x128xf32>
    %c4_100 = arith.constant 4 : index
    %c0_101 = arith.constant 0 : index
    %93 = tpu.strided_load %arg15[%c4_100, %c0_101] {strides = array<i32: 8, 1>} : memref<64x128xf32, #tpu.memory_space<vmem>>, vector<8x128xf32>
    %c4_102 = arith.constant 4 : index
    %c0_103 = arith.constant 0 : index
    %c0_104 = arith.constant 0 : index
    %94 = vector.load %arg6[%c4_102, %c0_103, %c0_104] : memref<5x128x128xf32, #tpu.memory_space<vmem>>, vector<1x128x128xf32>
    %95 = vector.shape_cast %94 : vector<1x128x128xf32> to vector<128x128xf32>
    %cst_105 = arith.constant dense<0.000000e+00> : vector<8x128xf32>
    %96 = tpu.matmul %93, %95, %cst_105 {dimension_numbers = #tpu.dot_dimension_numbers<[1], [0], [0], [1], [0, 0, 1, 1], [], []>} : vector<8x128xf32>, vector<128x128xf32>, vector<8x128xf32> -> vector<8x128xf32>
    %97 = arith.addf %92, %96 : vector<8x128xf32>
    %c0_106 = arith.constant 0 : index
    %c0_107 = arith.constant 0 : index
    %98 = vector.load %arg7[%c0_106, %c0_107] : memref<1x128xf32, #tpu.memory_space<vmem>>, vector<1x128xf32>
    %99 = vector.broadcast %98 : vector<1x128xf32> to vector<8x128xf32>
    %100 = arith.addf %97, %99 : vector<8x128xf32>
    %cst_108 = arith.constant 0.000000e+00 : f32
    %101 = vector.broadcast %cst_108 : f32 to vector<8x128xf32>
    %102 = arith.maximumf %100, %101 : vector<8x128xf32>
    %c0_109 = arith.constant 0 : index
    %c0_110 = arith.constant 0 : index
    %103 = vector.load %arg8[%c0_109, %c0_110] : memref<128x128xf32, #tpu.memory_space<vmem>>, vector<128x128xf32>
    %cst_111 = arith.constant dense<0.000000e+00> : vector<8x128xf32>
    %104 = tpu.matmul %102, %103, %cst_111 {dimension_numbers = #tpu.dot_dimension_numbers<[1], [0], [0], [1], [0, 0, 1, 1], [], []>} : vector<8x128xf32>, vector<128x128xf32>, vector<8x128xf32> -> vector<8x128xf32>
    %c0_112 = arith.constant 0 : index
    %c0_113 = arith.constant 0 : index
    %105 = vector.load %arg9[%c0_112, %c0_113] : memref<1x128xf32, #tpu.memory_space<vmem>>, vector<1x128xf32>
    %106 = vector.broadcast %105 : vector<1x128xf32> to vector<8x128xf32>
    %107 = arith.addf %104, %106 : vector<8x128xf32>
    %cst_114 = arith.constant 0.000000e+00 : f32
    %108 = vector.broadcast %cst_114 : f32 to vector<8x128xf32>
    %109 = arith.maximumf %107, %108 : vector<8x128xf32>
    %c0_115 = arith.constant 0 : index
    %c0_116 = arith.constant 0 : index
    %110 = vector.load %arg10[%c0_115, %c0_116] : memref<128x128xf32, #tpu.memory_space<vmem>>, vector<128x128xf32>
    %cst_117 = arith.constant dense<0.000000e+00> : vector<8x128xf32>
    %111 = tpu.matmul %109, %110, %cst_117 {dimension_numbers = #tpu.dot_dimension_numbers<[1], [0], [0], [1], [0, 0, 1, 1], [], []>} : vector<8x128xf32>, vector<128x128xf32>, vector<8x128xf32> -> vector<8x128xf32>
    %c0_118 = arith.constant 0 : index
    %c0_119 = arith.constant 0 : index
    %112 = vector.load %arg11[%c0_118, %c0_119] : memref<1x128xf32, #tpu.memory_space<vmem>>, vector<1x128xf32>
    %113 = vector.broadcast %112 : vector<1x128xf32> to vector<8x128xf32>
    %114 = arith.addf %111, %113 : vector<8x128xf32>
    %115 = tpu.iota {dimensions = array<i32: 1>} : vector<8x128xi32>
    %c10_i32 = arith.constant 10 : i32
    %116 = vector.broadcast %c10_i32 : i32 to vector<8x128xi32>
    %117 = arith.cmpi slt, %115, %116 : vector<8x128xi32>
    %cst_120 = arith.constant 0xFF800000 : f32
    %118 = vector.broadcast %cst_120 : f32 to vector<8x128xf32>
    %119 = arith.select %117, %114, %118 : vector<8x128xi1>, vector<8x128xf32>
    %cst_121 = arith.constant dense<0xFF800000> : vector<8xf32>
    %120 = vector.multi_reduction <maximumf>, %119, %cst_121 [1] : vector<8x128xf32> to vector<8xf32>
    %121 = vector.shape_cast %120 : vector<8xf32> to vector<8x1xf32>
    %122 = vector.broadcast %121 : vector<8x1xf32> to vector<8x128xf32>
    %123 = arith.subf %114, %122 : vector<8x128xf32>
    %124 = math.exp %123 : vector<8x128xf32>
    %cst_122 = arith.constant 0.000000e+00 : f32
    %125 = vector.broadcast %cst_122 : f32 to vector<8x128xf32>
    %126 = arith.select %117, %124, %125 : vector<8x128xi1>, vector<8x128xf32>
    %cst_123 = arith.constant dense<0.000000e+00> : vector<8xf32>
    %127 = vector.multi_reduction <add>, %126, %cst_123 [1] : vector<8x128xf32> to vector<8xf32>
    %128 = vector.shape_cast %127 : vector<8xf32> to vector<8x1xf32>
    %129 = math.log %128 : vector<8x1xf32>
    %130 = arith.addf %121, %129 : vector<8x1xf32>
    %131 = vector.broadcast %130 : vector<8x1xf32> to vector<8x128xf32>
    %132 = arith.subf %114, %131 : vector<8x128xf32>
    %c0_124 = arith.constant 0 : index
    %c0_125 = arith.constant 0 : index
    %133 = vector.load %arg12[%c0_124, %c0_125] : memref<8x128xf32, #tpu.memory_space<vmem>>, vector<8x128xf32>
    tpu.vector_store %arg12[%c0_124, %c0_125], %132 {strides = array<i32>} : memref<8x128xf32, #tpu.memory_space<vmem>>, vector<8x128xf32>,
    return
  }
  func.func @transform_0(%arg0: i32) -> (i32, i32) {
    %c0_i32 = arith.constant 0 : i32
    %c0_i32_0 = arith.constant 0 : i32
    return %arg0, %c0_i32 : i32, i32
  }
  func.func @transform_1(%arg0: i32) -> (i32, i32, i32) {
    %c0_i32 = arith.constant 0 : i32
    %c0_i32_0 = arith.constant 0 : i32
    %c0_i32_1 = arith.constant 0 : i32
    %c0_i32_2 = arith.constant 0 : i32
    return %c0_i32, %c0_i32_0, %c0_i32_1 : i32, i32, i32
  }
  func.func @transform_2(%arg0: i32) -> (i32, i32) {
    %c0_i32 = arith.constant 0 : i32
    %c0_i32_0 = arith.constant 0 : i32
    %c0_i32_1 = arith.constant 0 : i32
    return %c0_i32, %c0_i32_0 : i32, i32
  }
  func.func @transform_3(%arg0: i32) -> (i32, i32, i32) {
    %c0_i32 = arith.constant 0 : i32
    %c0_i32_0 = arith.constant 0 : i32
    %c0_i32_1 = arith.constant 0 : i32
    %c0_i32_2 = arith.constant 0 : i32
    return %c0_i32, %c0_i32_0, %c0_i32_1 : i32, i32, i32
  }
  func.func @transform_4(%arg0: i32) -> (i32, i32) {
    %c0_i32 = arith.constant 0 : i32
    %c0_i32_0 = arith.constant 0 : i32
    %c0_i32_1 = arith.constant 0 : i32
    return %c0_i32, %c0_i32_0 : i32, i32
  }
  func.func @transform_5(%arg0: i32) -> (i32, i32, i32) {
    %c0_i32 = arith.constant 0 : i32
    %c0_i32_0 = arith.constant 0 : i32
    %c0_i32_1 = arith.constant 0 : i32
    %c0_i32_2 = arith.constant 0 : i32
    return %c0_i32, %c0_i32_0, %c0_i32_1 : i32, i32, i32
  }
  func.func @transform_6(%arg0: i32) -> (i32, i32) {
    %c0_i32 = arith.constant 0 : i32
    %c0_i32_0 = arith.constant 0 : i32
    %c0_i32_1 = arith.constant 0 : i32
    return %c0_i32, %c0_i32_0 : i32, i32
  }
  func.func @transform_7(%arg0: i32) -> (i32, i32) {
    %c0_i32 = arith.constant 0 : i32
    %c0_i32_0 = arith.constant 0 : i32
    %c0_i32_1 = arith.constant 0 : i32
    return %c0_i32, %c0_i32_0 : i32, i32
  }
  func.func @transform_8(%arg0: i32) -> (i32, i32) {
    %c0_i32 = arith.constant 0 : i32
    %c0_i32_0 = arith.constant 0 : i32
    %c0_i32_1 = arith.constant 0 : i32
    return %c0_i32, %c0_i32_0 : i32, i32
  }
  func.func @transform_9(%arg0: i32) -> (i32, i32) {
    %c0_i32 = arith.constant 0 : i32
    %c0_i32_0 = arith.constant 0 : i32
    %c0_i32_1 = arith.constant 0 : i32
    return %c0_i32, %c0_i32_0 : i32, i32
  }
  func.func @transform_10(%arg0: i32) -> (i32, i32) {
    %c0_i32 = arith.constant 0 : i32
    %c0_i32_0 = arith.constant 0 : i32
    %c0_i32_1 = arith.constant 0 : i32
    return %c0_i32, %c0_i32_0 : i32, i32
  }
  func.func @transform_11(%arg0: i32) -> (i32, i32) {
    %c0_i32 = arith.constant 0 : i32
    %c0_i32_0 = arith.constant 0 : i32
    return %arg0, %c0_i32 : i32, i32
  }
}

</mosaic_0001>

<bundles_post_ra>
// kernel: cnn_cifar_forward.1
= control target key start
LH: loop header
LB: loop body
LE: loop exit
PB: predicated region body
PF: predicated region fallthrough
CT: control target
= control target key end

     0   :  { %16 = vsyncpa [#allocation6], 0  ;;  %s7539_s0 = inlined_call_operand.vmem [shape: f32[512,96], index: 0, kind: input, shape index: {}]   ;;  %s7540_s1 = inlined_call_operand.vmem [shape: f32[5,96,256], index: 1, kind: input, shape index: {}]   ;;  %s7541_s2 = inlined_call_operand.vmem [shape: f32[1,128], index: 2, kind: input, shape index: {}]   ;;  %s7542_s3 = inlined_call_operand.vmem [shape: f32[5,128,256], index: 3, kind: input, shape index: {}]   ;;  %s7543_s4 = inlined_call_operand.vmem [shape: f32[1,128], index: 4, kind: input, shape index: {}]   ;;  %s7544_s5 = inlined_call_operand.vmem [shape: f32[5,128,128], index: 5, kind: input, shape index: {}]   ;;  %s7545_s6 = inlined_call_operand.vmem [shape: f32[1,128], index: 6, kind: input, shape index: {}]   ;;  %s7546_s7 = inlined_call_operand.vmem [shape: f32[128,128], index: 7, kind: input, shape index: {}]   ;;  %s7547_s8 = inlined_call_operand.vmem [shape: f32[1,128], index: 8, kind: input, shape index: {}]   ;;  %s7548_s9 = inlined_call_operand.vmem [shape: f32[128,128], index: 9, kind: input, shape index: {}]   ;;  %s7549_s10 = inlined_call_operand.vmem [shape: f32[1,128], index: 10, kind: input, shape index: {}]   ;;  %s7550_s11 = inlined_call_operand.hbm [shape: f32[16,128], index: 11, kind: output, shape index: {}]  }
   0x1   :  { %18 = vsyncpa [#allocation6 + $0x1], 0  ;;  %s4922_s17 = smov 0   ;;  %s4924_s18 = smov 0  }
   0x2   :  { %s4926_s19 = smov 0   ;;  %s4928_s20 = smov 0  }
   0x3 LB: > { %7552 = sst [smem:[#allocation8_spill]] %s4856_s19  ;;  %s4943_s21 = sadd.s32 4294967295, %s4860_s20   ;;  %s4860_s20 = sphi %s4928_s20, %s7783_s20   ;;  %s4856_s19 = sphi %s4926_s19, %s7780_s19   ;;  %s4852_s18 = sphi %s4924_s18, %s7782_s18   ;;  %s4848_s17 = sphi %s4922_s17, %s7781_s17  }
   0x4   : > { %s4128_s22 = sadd.s32 4294967294, %s4860_s20   ;;  %s4947_s23 = sadd.s32 1, %s4860_s20  }
   0x5   : > { %s267_s24 = sadd.s32 1, %s4856_s19  ;;  %s264_s25 = ssub.s32 %s4860_s20, %s4947_s23 }
   0x6   : > { %p277_p0 = scmp.ne.s32.totalorder %s4856_s19, %s4852_s18  ;;  %p265_p1 = scmp.eq.s32.totalorder %s264_s25, 0 }
   0x7   : > { %p278_p2 = scmp.eq.s32.totalorder %s4943_s21, 1  ;;  %p283_p3 = scmp.ne.s32.totalorder %s4852_s18, %s4848_s17 }
   0x8   : > { %p284_p4 = scmp.eq.s32.totalorder %s4128_s22, 1  ;;  %p4131_p7 = scmp.ge.s32.totalorder %s4860_s20, 1 }
   0x9   : > { %s4958_s26 = scalar_select %p265_p1, %s4856_s19, %s267_s24  }
   0xa   : > { %p4960_p5 = por %p278_p2, %p277_p0  ;;  %p4964_p6 = por %p284_p4, %p283_p3 }
   0xb   : > { %7553 = sst [smem:[#allocation9_spill]] %s4958_s26  ;;  %p341_p8 = scmp.lt.s32.totalorder %s4860_s20, 3 }
   0xd   : > { %p342_p9 = pnand %p4131_p7, %p341_p8 }
   0xf   : > { %345 = sbr.rel (%p342_p9) target bundleno = 2084 (0x824), region = 64 }
  0x14   : > { %v4157_v0 = vld [vmem:[%s7540_s1 + $0x170] sm:$0xff]  ;;  %v4158_v1 = vld [vmem:[%s7540_s1 + $0x178] sm:$0xff]  ;;  %v4155_v4 = vld [vmem:[%s7540_s1 + $0x160] sm:$0xff]  ;;  %s7556_s15 = sshll.u32 %s4943_s21, 5  ;;  %s7558_s13 = sshll.u32 %s4943_s21, 5  ;;  %vm500_vm0 = vcmask 785408  }
  0x15   : > { %v441_v2 = vld [vmem:[%s7540_s1 + $0xb0] sm:$0xff]  ;;  %601 = vmatpush.msra.mxu0 %v4157_v0  ;;  %714 = vmatpush.msra.mxu1 %v4158_v1  ;;  %v442_v3 = vld [vmem:[%s7540_s1 + $0xb8] sm:$0xff]  ;;  %v4156_v5 = vld [vmem:[%s7540_s1 + $0x168] sm:$0xff]  ;;  %p5039_p10 = scmp.lt.s32.totalorder %s7556_s15, 63  ;;  %s378_s26 = sand.u32 1, %s4852_s18  }
  0x16   : > { %923 = vmatpush.msra.mxu2 %v441_v2  ;;  %1036 = vmatpush.msra.mxu3 %v442_v3  ;;  %v439_v6 = vld [vmem:[%s7540_s1 + $0xa0] sm:$0xff]  ;;  %v440_v7 = vld [vmem:[%s7540_s1 + $0xa8] sm:$0xff]  ;;  %v4153_v8 = vld [vmem:[%s7540_s1 + $0x150] sm:$0xff]  ;;  %s4132_s14 = sshll.u32 %s378_s26, 3  ;;  %s4744_s15 = sshll.u32 %s4943_s21, 3 }
  0x17   : > { %602 = vmatpush.msra.mxu0 %v4155_v4  ;;  %715 = vmatpush.msra.mxu1 %v4156_v5  ;;  %v4154_v9 = vld [vmem:[%s7540_s1 + $0x158] sm:$0xff]  ;;  %v437_v10 = vld [vmem:[%s7540_s1 + $0x90] sm:$0xff]  ;;  %v4151_v12 = vld [vmem:[%s7540_s1 + $0x140] sm:$0xff]  ;;  %s7785_s13 = smov (!%p5039_p10, %s7558_s13), 63  ;;  %s4064_s25 = scalar_lea.hbm %s7550_s11, %s4744_s15 }
  0x18   : > { %v438_v11 = vld [vmem:[%s7540_s1 + $0x98] sm:$0xff]  ;;  %924 = vmatpush.msra.mxu2 %v439_v6  ;;  %1037 = vmatpush.msra.mxu3 %v440_v7  ;;  %v4152_v13 = vld [vmem:[%s7540_s1 + $0x148] sm:$0xff]  ;;  %v435_v14 = vld [vmem:[%s7540_s1 + $0x80] sm:$0xff]  ;;  %s4134_s16 = sshll.u32 %s7785_s13, 3  ;;  %s4054_s29 = scalar_lea.sflag [#allocation6], %s378_s26 }
  0x19   : > { %603 = vmatpush.msra.mxu0 %v4153_v8  ;;  %716 = vmatpush.msra.mxu1 %v4154_v9  ;;  %v436_v15 = vld [vmem:[%s7540_s1 + $0x88] sm:$0xff]  ;;  %v4149_v16 = vld [vmem:[%s7540_s1 + $0x130] sm:$0xff]  ;;  %v4150_v17 = vld [vmem:[%s7540_s1 + $0x138] sm:$0xff]  ;;  %s5128_s24 = scalar_lea.vmem %s7539_s0, %s4134_s16  ;;  %s4068_s16 = sshll.u32 %s4064_s25, 4  ;;  %s4069_s16 = int_to_ptr.hbm [resolvable:$true] %s4068_s16 }
  0x1a   : > { %925 = vmatpush.msra.mxu2 %v437_v10  ;;  %1038 = vmatpush.msra.mxu3 %v438_v11  ;;  %v433_v18 = vld [vmem:[%s7540_s1 + $0x70] sm:$0xff]  ;;  %v434_v19 = vld [vmem:[%s7540_s1 + $0x78] sm:$0xff]  ;;  %v4147_v20 = vld [vmem:[%s7540_s1 + $0x120] sm:$0xff]  ;;  %s4812_s30 = sshra.s32 %s4069_s16, 4  ;;  %s4818_s22 = scalar_lea.hbm %s7550_s11, 16  ;;  %s4813_s30 = int_to_ptr.hbm [resolvable:$true] %s4812_s30 }
  0x1b   : > { %604 = vmatpush.msra.mxu0 %v4151_v12  ;;  %717 = vmatpush.msra.mxu1 %v4152_v13  ;;  %v4148_v21 = vld [vmem:[%s7540_s1 + $0x128] sm:$0xff]  ;;  %v431_v22 = vld [vmem:[%s7540_s1 + $0x60] sm:$0xff]  ;;  %v4145_v24 = vld [vmem:[%s7540_s1 + $0x110] sm:$0xff]  ;;  %s4814_s19 = scalar_lea.hbm %s4813_s30, 8  ;;  %p4819_p0 = scmp.lt.s32.totalorder %s4813_s30, %s7550_s11 }
  0x1c   : > { %926 = vmatpush.msra.mxu2 %v435_v14  ;;  %1039 = vmatpush.msra.mxu3 %v436_v15  ;;  %v432_v23 = vld [vmem:[%s7540_s1 + $0x68] sm:$0xff]  ;;  %v4146_v25 = vld [vmem:[%s7540_s1 + $0x118] sm:$0xff]  ;;  %v429_v26 = vld [vmem:[%s7540_s1 + $0x50] sm:$0xff]  ;;  %p4815_p11 = scmp.ne.s32.totalorder %s4813_s30, %s4814_s19  ;;  %p4820_p1 = scmp.lt.s32.totalorder %s4818_s22, %s4814_s19 }
  0x1d   : > { %605 = vmatpush.msra.mxu0 %v4149_v16  ;;  %718 = vmatpush.msra.mxu1 %v4150_v17  ;;  %v430_v27 = vld [vmem:[%s7540_s1 + $0x58] sm:$0xff]  ;;  %v4143_v28 = vld [vmem:[%s7540_s1 + $0x100] sm:$0xff]  ;;  %v4144_v29 = vld [vmem:[%s7540_s1 + $0x108] sm:$0xff] }
  0x1e   : > { %927 = vmatpush.msra.mxu2 %v433_v18  ;;  %1040 = vmatpush.msra.mxu3 %v434_v19  ;;  %v427_v30 = vld [vmem:[%s7540_s1 + $0x40] sm:$0xff]  ;;  %v428_v31 = vld [vmem:[%s7540_s1 + $0x48] sm:$0xff]  ;;  %v4141_v32 = vld [vmem:[%s7540_s1 + $0xf0] sm:$0xff]  ;;  %p4816_p12 = pnand %p4815_p11, %p4960_p5  ;;  %p4821_p2 = por %p4820_p1, %p4819_p0 }
  0x1f   : > { %606 = vmatpush.msra.mxu0 %v4147_v20  ;;  %719 = vmatpush.msra.mxu1 %v4148_v21  ;;  %v4142_v33 = vld [vmem:[%s7540_s1 + $0xf8] sm:$0xff]  ;;  %v425_v34 = vld [vmem:[%s7540_s1 + $0x30] sm:$0xff]  ;;  %v4139_v36 = vld [vmem:[%s7540_s1 + $0xe0] sm:$0xff] }
  0x20   : > { %928 = vmatpush.msra.mxu2 %v431_v22  ;;  %1041 = vmatpush.msra.mxu3 %v432_v23  ;;  %v426_v35 = vld [vmem:[%s7540_s1 + $0x38] sm:$0xff]  ;;  %v4140_v37 = vld [vmem:[%s7540_s1 + $0xe8] sm:$0xff]  ;;  %v423_v38 = vld [vmem:[%s7540_s1 + $0x20] sm:$0xff]  ;;  %p4817_p13 = pneg %p4816_p12 }
  0x21   : > { %607 = vmatpush.msra.mxu0 %v4145_v24  ;;  %720 = vmatpush.msra.mxu1 %v4146_v25  ;;  %v424_v39 = vld [vmem:[%s7540_s1 + $0x28] sm:$0xff]  ;;  %v4137_v40 = vld [vmem:[%s7540_s1 + $0xd0] sm:$0xff]  ;;  %v4138_v41 = vld [vmem:[%s7540_s1 + $0xd8] sm:$0xff] }
  0x22   : > { %929 = vmatpush.msra.mxu2 %v429_v26  ;;  %1042 = vmatpush.msra.mxu3 %v430_v27  ;;  %v421_v42 = vld [vmem:[%s7540_s1 + $0x10] sm:$0xff]  ;;  %v422_v43 = vld [vmem:[%s7540_s1 + $0x18] sm:$0xff]  ;;  %v4135_v44 = vld [vmem:[%s7540_s1 + $0xc0] sm:$0xff]  ;;  %p4822_p3 = pnand %p4821_p2, %p4817_p13 }
  0x23   : > { %608 = vmatpush.msra.mxu0 %v4143_v28  ;;  %721 = vmatpush.msra.mxu1 %v4144_v29  ;;  %v4136_v45 = vld [vmem:[%s7540_s1 + $0xc8] sm:$0xff]  ;;  %v419_v46 = vld [vmem:[%s7540_s1] sm:$0xff]  ;;  %v4309_v50 = vld [vmem:[%s7540_s1 + $0x230] sm:$0xff] }
  0x24   : > { %930 = vmatpush.msra.mxu2 %v427_v30  ;;  %1043 = vmatpush.msra.mxu3 %v428_v31  ;;  %v420_v47 = vld [vmem:[%s7540_s1 + $0x8] sm:$0xff]  ;;  %v387_v49 = vld [vmem:[%s5128_s24] sm:$0xff]  ;;  %v4310_v51 = vld [vmem:[%s7540_s1 + $0x238] sm:$0xff] }
  0x25   : > { %609 = vmatpush.msra.mxu0 %v4141_v32  ;;  %722 = vmatpush.msra.mxu1 %v4142_v33  ;;  %v443_v48 = vld [vmem:[%s5128_s24 + $0x1] sm:$0xff]  ;;  %v444_v54 = vld [vmem:[%s5128_s24 + $0x9] sm:$0xff]  ;;  %v4306_v57 = vld [vmem:[%s7540_s1 + $0x218] sm:$0xff] }
  0x26   : > { %931 = vmatpush.msra.mxu2 %v425_v34  ;;  %1044 = vmatpush.msra.mxu3 %v426_v35  ;;  %v4307_v52 = vld [vmem:[%s7540_s1 + $0x220] sm:$0xff]  ;;  %v4308_v53 = vld [vmem:[%s7540_s1 + $0x228] sm:$0xff]  ;;  %v4305_v56 = vld [vmem:[%s7540_s1 + $0x210] sm:$0xff] }
  0x27   : > { %610 = vmatpush.msra.mxu0 %v4139_v36  ;;  %723 = vmatpush.msra.mxu1 %v4140_v37  ;;  %v388_v55 = vld [vmem:[%s5128_s24 + $0x8] sm:$0xff]  ;;  %v445_v58 = vld [vmem:[%s5128_s24 + $0x11] sm:$0xff]  ;;  %v446_v60 = vld [vmem:[%s5128_s24 + $0x19] sm:$0xff] }
  0x28   : > { %932 = vmatpush.msra.mxu2 %v423_v38  ;;  %1045 = vmatpush.msra.mxu3 %v424_v39  ;;  %v389_v59 = vld [vmem:[%s5128_s24 + $0x10] sm:$0xff]  ;;  %v390_v61 = vld [vmem:[%s5128_s24 + $0x18] sm:$0xff]  ;;  %v447_v62 = vld [vmem:[%s5128_s24 + $0x21] sm:$0xff] }
  0x29   : > { %611 = vmatpush.msra.mxu0 %v4137_v40  ;;  %724 = vmatpush.msra.mxu1 %v4138_v41  ;;  %v391_v63 = vld [vmem:[%s5128_s24 + $0x20] sm:$0xff]  ;;  %v4304_v1 = vld [vmem:[%s7540_s1 + $0x208] sm:$0xff]  ;;  %v449_v4 = vld [vmem:[%s5128_s24 + $0x31] sm:$0xff] }
  0x2a   : > { %933 = vmatpush.msra.mxu2 %v421_v42  ;;  %1046 = vmatpush.msra.mxu3 %v422_v43  ;;  %v4303_v0 = vld [vmem:[%s7540_s1 + $0x200] sm:$0xff]  ;;  %v448_v2 = vld [vmem:[%s5128_s24 + $0x29] sm:$0xff]  ;;  %v4302_v7 = vld [vmem:[%s7540_s1 + $0x1f8] sm:$0xff] }
  0x2b   : > { %612 = vmatpush.msra.mxu0 %v4135_v44  ;;  %725 = vmatpush.msra.mxu1 %v4136_v45  ;;  %v392_v3 = vld [vmem:[%s5128_s24 + $0x28] sm:$0xff]  ;;  %v393_v5 = vld [vmem:[%s5128_s24 + $0x30] sm:$0xff]  ;;  %v450_v8 = vld [vmem:[%s5128_s24 + $0x39] sm:$0xff] }
  0x2c   : > { %934 = vmatpush.msra.mxu2 %v419_v46  ;;  %1047 = vmatpush.msra.mxu3 %v420_v47  ;;  %v4301_v6 = vld [vmem:[%s7540_s1 + $0x1f0] sm:$0xff]  ;;  %v394_v9 = vld [vmem:[%s5128_s24 + $0x38] sm:$0xff]  ;;  %v451_v10 = vld [vmem:[%s5128_s24 + $0x41] sm:$0xff] }
  0x2d   : > { %4159 = vmatmul.msk.f32.vlgmr.msra.gmra.mxu0 %vm500_vm0, %v443_v48  ;;  %4191 = vmatmul.msk.f32.vlgmr.msra.gmra.mxu1 %vm500_vm0, %v443_v48  ;;  %v395_v11 = vld [vmem:[%s5128_s24 + $0x40] sm:$0xff]  ;;  %v452_v12 = vld [vmem:[%s5128_s24 + $0x49] sm:$0xff]  ;;  %v453_v16 = vld [vmem:[%s5128_s24 + $0x51] sm:$0xff] }
  0x2e   : > { %4223 = vmatmul.msk.f32.vlgmr.msra.gmra.mxu2 %vm500_vm0, %v387_v49  ;;  %4255 = vmatmul.msk.f32.vlgmr.msra.gmra.mxu3 %vm500_vm0, %v387_v49  ;;  %v396_v13 = vld [vmem:[%s5128_s24 + $0x48] sm:$0xff]  ;;  %v4299_v14 = vld [vmem:[%s7540_s1 + $0x1e0] sm:$0xff]  ;;  %v397_v17 = vld [vmem:[%s5128_s24 + $0x50] sm:$0xff] }
  0x2f   : > { %1302 = vmatpush.msrb.mxu0 %v4309_v50  ;;  %1415 = vmatpush.msrb.mxu1 %v4310_v51  ;;  %v4300_v15 = vld [vmem:[%s7540_s1 + $0x1e8] sm:$0xff]  ;;  %v454_v18 = vld [vmem:[%s5128_s24 + $0x59] sm:$0xff]  ;;  %v4297_v22 = vld [vmem:[%s7540_s1 + $0x1d0] sm:$0xff] }
  0x30   : > { %v398_v19 = vld [vmem:[%s5128_s24 + $0x58] sm:$0xff]  ;;  %v455_v20 = vld [vmem:[%s5128_s24 + $0x61] sm:$0xff]  ;;  %v456_v24 = vld [vmem:[%s5128_s24 + $0x69] sm:$0xff] }
  0x31   : > { %1303 = vmatpush.msrb.mxu0 %v4307_v52  ;;  %1416 = vmatpush.msrb.mxu1 %v4308_v53  ;;  %v399_v21 = vld [vmem:[%s5128_s24 + $0x60] sm:$0xff]  ;;  %v4298_v23 = vld [vmem:[%s7540_s1 + $0x1d8] sm:$0xff]  ;;  %v400_v25 = vld [vmem:[%s5128_s24 + $0x68] sm:$0xff] }
  0x32   : > { %v457_v26 = vld [vmem:[%s5128_s24 + $0x71] sm:$0xff]  ;;  %v458_v28 = vld [vmem:[%s5128_s24 + $0x79] sm:$0xff]  ;;  %v4296_v30 = vld [vmem:[%s7540_s1 + $0x1c8] sm:$0xff] }
  0x33   : > { %1304 = vmatpush.msrb.mxu0 %v4305_v56  ;;  %1417 = vmatpush.msrb.mxu1 %v4306_v57  ;;  %v401_v27 = vld [vmem:[%s5128_s24 + $0x70] sm:$0xff]  ;;  %v4295_v29 = vld [vmem:[%s7540_s1 + $0x1c0] sm:$0xff]  ;;  %v402_v31 = vld [vmem:[%s5128_s24 + $0x78] sm:$0xff] }
  0x34   : > { %v459_v34 = vld [vmem:[%s5128_s24 + $0x81] sm:$0xff]  ;;  %v460_v42 = vld [vmem:[%s5128_s24 + $0x89] sm:$0xff]  ;;  %v461_v50 = vld [vmem:[%s5128_s24 + $0x91] sm:$0xff] }
  0x35   : > { %4160 = vmatmul.msk.f32.gmra.mxu0 %vm500_vm0, %v444_v54  ;;  %4192 = vmatmul.msk.f32.gmra.mxu1 %vm500_vm0, %v444_v54  ;;  %v403_v35 = vld [vmem:[%s5128_s24 + $0x80] sm:$0xff]  ;;  %v404_v43 = vld [vmem:[%s5128_s24 + $0x88] sm:$0xff]  ;;  %v4293_v51 = vld [vmem:[%s7540_s1 + $0x1b0] sm:$0xff] }
  0x36   : > { %4224 = vmatmul.msk.f32.gmra.mxu2 %vm500_vm0, %v388_v55  ;;  %4256 = vmatmul.msk.f32.gmra.mxu3 %vm500_vm0, %v388_v55  ;;  %v4294_v52 = vld [vmem:[%s7540_s1 + $0x1b8] sm:$0xff]  ;;  %v405_v53 = vld [vmem:[%s5128_s24 + $0x90] sm:$0xff] }
  0x37   : > { %1305 = vmatpush.msrb.mxu0 %v4303_v0  ;;  %1418 = vmatpush.msrb.mxu1 %v4304_v1 }
  0x39   : > { %1306 = vmatpush.msrb.mxu0 %v4301_v6  ;;  %1419 = vmatpush.msrb.mxu1 %v4302_v7  ;;  %v4291_v6 = vld [vmem:[%s7540_s1 + $0x1a0] sm:$0xff]  ;;  %v4292_v7 = vld [vmem:[%s7540_s1 + $0x1a8] sm:$0xff] }
  0x3b   : > { %1307 = vmatpush.msrb.mxu0 %v4299_v14  ;;  %1420 = vmatpush.msrb.mxu1 %v4300_v15  ;;  %v464_v14 = vld [vmem:[%s5128_s24 + $0xa9] sm:$0xff] }
  0x3c   : > { %v408_v15 = vld [vmem:[%s5128_s24 + $0xa8] sm:$0xff] }
  0x3d   : > { %4161 = vmatmul.msk.f32.gmra.mxu0 %vm500_vm0, %v445_v58  ;;  %4193 = vmatmul.msk.f32.gmra.mxu1 %vm500_vm0, %v445_v58 }
  0x3e   : > { %4225 = vmatmul.msk.f32.gmra.mxu2 %vm500_vm0, %v389_v59  ;;  %4257 = vmatmul.msk.f32.gmra.mxu3 %vm500_vm0, %v389_v59 }
  0x3f   : > { %1308 = vmatpush.msrb.mxu0 %v4297_v22  ;;  %1421 = vmatpush.msrb.mxu1 %v4298_v23  ;;  %v465_v22 = vld [vmem:[%s5128_s24 + $0xb1] sm:$0xff] }
  0x40   : > { %v409_v23 = vld [vmem:[%s5128_s24 + $0xb0] sm:$0xff] }
  0x41   : > { %1309 = vmatpush.msrb.mxu0 %v4295_v29  ;;  %1422 = vmatpush.msrb.mxu1 %v4296_v30  ;;  %v466_v30 = vld [vmem:[%s5128_s24 + $0xb9] sm:$0xff] }
  0x43   : > { %1310 = vmatpush.msrb.mxu0 %v4293_v51  ;;  %1423 = vmatpush.msrb.mxu1 %v4294_v52  ;;  %v468_v52 = vld [vmem:[%s5128_s24 + $0xc9] sm:$0xff] }
  0x45   : > { %4162 = vmatmul.msk.f32.gmra.mxu0 %vm500_vm0, %v446_v60  ;;  %4194 = vmatmul.msk.f32.gmra.mxu1 %vm500_vm0, %v446_v60  ;;  %v462_v60 = vld [vmem:[%s5128_s24 + $0x99] sm:$0xff] }
  0x46   : > { %4226 = vmatmul.msk.f32.gmra.mxu2 %vm500_vm0, %v390_v61  ;;  %4258 = vmatmul.msk.f32.gmra.mxu3 %vm500_vm0, %v390_v61  ;;  %v406_v61 = vld [vmem:[%s5128_s24 + $0x98] sm:$0xff] }
  0x47   : > { %1311 = vmatpush.msrb.mxu0 %v4291_v6  ;;  %1424 = vmatpush.msrb.mxu1 %v4292_v7  ;;  %v4288_v6 = vld [vmem:[%s7540_s1 + $0x188] sm:$0xff]  ;;  %v4393_v7 = vld [vmem:[%s7540_s1 + $0x2d0] sm:$0xff] }
  0x4d   : > { %4163 = vmatmul.msk.f32.gmra.mxu0 %vm500_vm0, %v447_v62  ;;  %4195 = vmatmul.msk.f32.gmra.mxu1 %vm500_vm0, %v447_v62 }
  0x4e   : > { %4227 = vmatmul.msk.f32.gmra.mxu2 %vm500_vm0, %v391_v63  ;;  %4259 = vmatmul.msk.f32.gmra.mxu3 %vm500_vm0, %v391_v63 }
  0x55   : > { %4164 = vmatmul.msk.f32.gmra.mxu0 %vm500_vm0, %v448_v2  ;;  %4196 = vmatmul.msk.f32.gmra.mxu1 %vm500_vm0, %v448_v2 }
  0x56   : > { %4228 = vmatmul.msk.f32.gmra.mxu2 %vm500_vm0, %v392_v3  ;;  %4260 = vmatmul.msk.f32.gmra.mxu3 %vm500_vm0, %v392_v3 }
  0x5d   : > { %4165 = vmatmul.msk.f32.gmra.mxu0 %vm500_vm0, %v449_v4  ;;  %4197 = vmatmul.msk.f32.gmra.mxu1 %vm500_vm0, %v449_v4  ;;  %v463_v4 = vld [vmem:[%s5128_s24 + $0xa1] sm:$0xff] }
  0x5e   : > { %4229 = vmatmul.msk.f32.gmra.mxu2 %vm500_vm0, %v393_v5  ;;  %4261 = vmatmul.msk.f32.gmra.mxu3 %vm500_vm0, %v393_v5  ;;  %v407_v5 = vld [vmem:[%s5128_s24 + $0xa0] sm:$0xff] }
  0x65   : > { %4166 = vmatmul.msk.f32.gmra.mxu0 %vm500_vm0, %v450_v8  ;;  %4198 = vmatmul.msk.f32.gmra.mxu1 %vm500_vm0, %v450_v8 }
  0x66   : > { %4230 = vmatmul.msk.f32.gmra.mxu2 %vm500_vm0, %v394_v9  ;;  %4262 = vmatmul.msk.f32.gmra.mxu3 %vm500_vm0, %v394_v9 }
  0x6d   : > { %4167 = vmatmul.msk.f32.gmra.mxu0 %vm500_vm0, %v451_v10  ;;  %4199 = vmatmul.msk.f32.gmra.mxu1 %vm500_vm0, %v451_v10 }
  0x6e   : > { %4231 = vmatmul.msk.f32.gmra.mxu2 %vm500_vm0, %v395_v11  ;;  %4263 = vmatmul.msk.f32.gmra.mxu3 %vm500_vm0, %v395_v11 }
  0x75   : > { %4168 = vmatmul.msk.f32.gmra.mxu0 %vm500_vm0, %v452_v12  ;;  %4200 = vmatmul.msk.f32.gmra.mxu1 %vm500_vm0, %v452_v12 }
  0x76   : > { %4232 = vmatmul.msk.f32.gmra.mxu2 %vm500_vm0, %v396_v13  ;;  %4264 = vmatmul.msk.f32.gmra.mxu3 %vm500_vm0, %v396_v13 }
  0x7d   : > { %4169 = vmatmul.msk.f32.gmra.mxu0 %vm500_vm0, %v453_v16  ;;  %4201 = vmatmul.msk.f32.gmra.mxu1 %vm500_vm0, %v453_v16 }
  0x7e   : > { %4233 = vmatmul.msk.f32.gmra.mxu2 %vm500_vm0, %v397_v17  ;;  %4265 = vmatmul.msk.f32.gmra.mxu3 %vm500_vm0, %v397_v17 }
  0x85   : > { %4170 = vmatmul.msk.f32.gmra.mxu0 %vm500_vm0, %v454_v18  ;;  %4202 = vmatmul.msk.f32.gmra.mxu1 %vm500_vm0, %v454_v18 }
  0x86   : > { %4234 = vmatmul.msk.f32.gmra.mxu2 %vm500_vm0, %v398_v19  ;;  %4266 = vmatmul.msk.f32.gmra.mxu3 %vm500_vm0, %v398_v19 }
  0x8d   : > { %4171 = vmatmul.msk.f32.gmra.mxu0 %vm500_vm0, %v455_v20  ;;  %4203 = vmatmul.msk.f32.gmra.mxu1 %vm500_vm0, %v455_v20 }
  0x8e   : > { %4235 = vmatmul.msk.f32.gmra.mxu2 %vm500_vm0, %v399_v21  ;;  %4267 = vmatmul.msk.f32.gmra.mxu3 %vm500_vm0, %v399_v21 }
  0x95   : > { %4172 = vmatmul.msk.f32.gmra.mxu0 %vm500_vm0, %v456_v24  ;;  %4204 = vmatmul.msk.f32.gmra.mxu1 %vm500_vm0, %v456_v24 }
  0x96   : > { %4236 = vmatmul.msk.f32.gmra.mxu2 %vm500_vm0, %v400_v25  ;;  %4268 = vmatmul.msk.f32.gmra.mxu3 %vm500_vm0, %v400_v25 }
  0x9d   : > { %4173 = vmatmul.msk.f32.gmra.mxu0 %vm500_vm0, %v457_v26  ;;  %4205 = vmatmul.msk.f32.gmra.mxu1 %vm500_vm0, %v457_v26 }
  0x9e   : > { %4237 = vmatmul.msk.f32.gmra.mxu2 %vm500_vm0, %v401_v27  ;;  %4269 = vmatmul.msk.f32.gmra.mxu3 %vm500_vm0, %v401_v27 }
  0xa5   : > { %4174 = vmatmul.msk.f32.gmra.mxu0 %vm500_vm0, %v458_v28  ;;  %4206 = vmatmul.msk.f32.gmra.mxu1 %vm500_vm0, %v458_v28 }
  0xa6   : > { %4238 = vmatmul.msk.f32.gmra.mxu2 %vm500_vm0, %v402_v31  ;;  %4270 = vmatmul.msk.f32.gmra.mxu3 %vm500_vm0, %v402_v31  ;;  %v4289_v31 = vld [vmem:[%s7540_s1 + $0x190] sm:$0xff] }
  0xa7   : > { %1312 = vmatpush.msrb.mxu0 %v4289_v31  ;;  %v4386_v31 = vld [vmem:[%s7540_s1 + $0x298] sm:$0xff] }
  0xaa   : > { %v614_v32 = vpop.f32.mrf.mxu0  ;;  %v727_v33 = vpop.f32.mrf.mxu1 }
  0xad   : > { %4175 = vmatmul.msk.f32.gmra.mxu0 %vm500_vm0, %v459_v34  ;;  %4207 = vmatmul.msk.f32.gmra.mxu1 %vm500_vm0, %v459_v34 }
  0xae   : > { %4239 = vmatmul.msk.f32.gmra.mxu2 %vm500_vm0, %v403_v35  ;;  %4271 = vmatmul.msk.f32.gmra.mxu3 %vm500_vm0, %v403_v35 }
  0xb1   : > { %v936_v36 = vpop.f32.mrf.mxu2  ;;  %v1049_v37 = vpop.f32.mrf.mxu3 }
  0xb2   : > { %v5283_v38 = vadd.f32 %v936_v36, %v614_v32  ;;  %v5285_v39 = vadd.f32 %v1049_v37, %v727_v33  ;;  %v617_v40 = vpop.f32.mrf.mxu0  ;;  %v730_v41 = vpop.f32.mrf.mxu1  ;;  %v4290_v32 = vld [vmem:[%s7540_s1 + $0x198] sm:$0xff] }
  0xb3   : > { %v410_v33 = vld [vmem:[%s5128_s24 + $0xb8] sm:$0xff]  ;;  %1425 = vmatpush.msrb.mxu1 %v4290_v32  ;;  %v4383_v32 = vld [vmem:[%s7540_s1 + $0x280] sm:$0xff] }
  0xb5   : > { %4176 = vmatmul.msk.f32.gmra.mxu0 %vm500_vm0, %v460_v42  ;;  %4208 = vmatmul.msk.f32.gmra.mxu1 %vm500_vm0, %v460_v42  ;;  %v467_v42 = vld [vmem:[%s5128_s24 + $0xc1] sm:$0xff] }
  0xb6   : > { %4240 = vmatmul.msk.f32.gmra.mxu2 %vm500_vm0, %v404_v43  ;;  %4272 = vmatmul.msk.f32.gmra.mxu3 %vm500_vm0, %v404_v43  ;;  %v411_v43 = vld [vmem:[%s5128_s24 + $0xc0] sm:$0xff] }
  0xb7   : > { %1426 = vmatpush.msrb.mxu1 %v4288_v6 }
  0xb9   : > { %v939_v44 = vpop.f32.mrf.mxu2  ;;  %v1052_v45 = vpop.f32.mrf.mxu3 }
  0xba   : > { %v5293_v46 = vadd.f32 %v939_v44, %v617_v40  ;;  %v5295_v47 = vadd.f32 %v1052_v45, %v730_v41  ;;  %v620_v48 = vpop.f32.mrf.mxu0  ;;  %v733_v49 = vpop.f32.mrf.mxu1 }
  0xbd   : > { %4177 = vmatmul.msk.f32.gmra.mxu0 %vm500_vm0, %v461_v50  ;;  %4209 = vmatmul.msk.f32.gmra.mxu1 %vm500_vm0, %v461_v50 }
  0xbe   : > { %4241 = vmatmul.msk.f32.gmra.mxu2 %vm500_vm0, %v405_v53  ;;  %4273 = vmatmul.msk.f32.gmra.mxu3 %vm500_vm0, %v405_v53  ;;  %v412_v53 = vld [vmem:[%s5128_s24 + $0xc8] sm:$0xff] }
  0xc1   : > { %v942_v54 = vpop.f32.mrf.mxu2  ;;  %v1055_v55 = vpop.f32.mrf.mxu3 }
  0xc2   : > { %v5309_v56 = vadd.f32 %v942_v54, %v620_v48  ;;  %v5311_v57 = vadd.f32 %v1055_v55, %v733_v49  ;;  %v623_v58 = vpop.f32.mrf.mxu0  ;;  %v736_v59 = vpop.f32.mrf.mxu1  ;;  %v4397_v54 = vld [vmem:[%s7540_s1 + $0x2f0] sm:$0xff]  ;;  %v4398_v55 = vld [vmem:[%s7540_s1 + $0x2f8] sm:$0xff] }
  0xc3   : > { %1745 = vmatpush.msrb.mxu2 %v4397_v54  ;;  %1858 = vmatpush.msrb.mxu3 %v4398_v55  ;;  %v4377_v54 = vld [vmem:[%s7540_s1 + $0x250] sm:$0xff]  ;;  %v4378_v55 = vld [vmem:[%s7540_s1 + $0x258] sm:$0xff] }
  0xc5   : > { %4178 = vmatmul.msk.f32.gmra.mxu0 %vm500_vm0, %v462_v60  ;;  %4210 = vmatmul.msk.f32.gmra.mxu1 %vm500_vm0, %v462_v60 }
  0xc6   : > { %4242 = vmatmul.msk.f32.gmra.mxu2 %vm500_vm0, %v406_v61  ;;  %4274 = vmatmul.msk.f32.gmra.mxu3 %vm500_vm0, %v406_v61 }
  0xc9   : > { %v945_v62 = vpop.f32.mrf.mxu2  ;;  %v1058_v63 = vpop.f32.mrf.mxu3 }
  0xca   : > { %v5319_v0 = vadd.f32 %v945_v62, %v623_v58  ;;  %v5321_v1 = vadd.f32 %v1058_v63, %v736_v59  ;;  %v626_v2 = vpop.f32.mrf.mxu0  ;;  %v739_v3 = vpop.f32.mrf.mxu1  ;;  %v4395_v58 = vld [vmem:[%s7540_s1 + $0x2e0] sm:$0xff]  ;;  %v4396_v59 = vld [vmem:[%s7540_s1 + $0x2e8] sm:$0xff]  ;;  %v469_v62 = vld [vmem:[%s5128_s24 + $0xd1] sm:$0xff] }
  0xcb   : > { %1746 = vmatpush.msrb.mxu2 %v4395_v58  ;;  %1859 = vmatpush.msrb.mxu3 %v4396_v59  ;;  %v4485_v58 = vld [vmem:[%s7540_s1 + $0x3b0] sm:$0xff]  ;;  %v4486_v59 = vld [vmem:[%s7540_s1 + $0x3b8] sm:$0xff] }
  0xcc   : > { %2301 = vmatpush.msra.mxu1 %v4486_v59 }
  0xcd   : > { %4179 = vmatmul.msk.f32.gmra.mxu0 %vm500_vm0, %v463_v4  ;;  %4211 = vmatmul.msk.f32.gmra.mxu1 %vm500_vm0, %v463_v4 }
  0xce   : > { %4243 = vmatmul.msk.f32.gmra.mxu2 %vm500_vm0, %v407_v5  ;;  %4275 = vmatmul.msk.f32.gmra.mxu3 %vm500_vm0, %v407_v5  ;;  %v4287_v5 = vld [vmem:[%s7540_s1 + $0x180] sm:$0xff] }
  0xcf   : > { %1313 = vmatpush.msrb.mxu0 %v4287_v5  ;;  %1747 = vmatpush.msrb.mxu2 %v4393_v7 }
  0xd1   : > { %v948_v8 = vpop.f32.mrf.mxu2  ;;  %v1061_v9 = vpop.f32.mrf.mxu3  ;;  %2188 = vmatpush.msra.mxu0 %v4485_v58 }
  0xd2   : > { %v5335_v10 = vadd.f32 %v948_v8, %v626_v2  ;;  %v5337_v11 = vadd.f32 %v1061_v9, %v739_v3  ;;  %v629_v12 = vpop.f32.mrf.mxu0  ;;  %v742_v13 = vpop.f32.mrf.mxu1  ;;  %v413_v8 = vld [vmem:[%s5128_s24 + $0xd0] sm:$0xff]  ;;  %v4394_v9 = vld [vmem:[%s7540_s1 + $0x2d8] sm:$0xff] }
  0xd3   : > { %1860 = vmatpush.msrb.mxu3 %v4394_v9  ;;  %v416_v9 = vld [vmem:[%s5128_s24 + $0xe8] sm:$0xff] }
  0xd5   : > { %4180 = vmatmul.msk.f32.gmra.mxu0 %vm500_vm0, %v464_v14  ;;  %4212 = vmatmul.msk.f32.gmra.mxu1 %vm500_vm0, %v464_v14  ;;  %v4389_v14 = vld [vmem:[%s7540_s1 + $0x2b0] sm:$0xff] }
  0xd6   : > { %4244 = vmatmul.msk.f32.gmra.mxu2 %vm500_vm0, %v408_v15  ;;  %4276 = vmatmul.msk.f32.gmra.mxu3 %vm500_vm0, %v408_v15  ;;  %v4390_v15 = vld [vmem:[%s7540_s1 + $0x2b8] sm:$0xff] }
  0xd9   : > { %v951_v16 = vpop.f32.mrf.mxu2  ;;  %v1064_v17 = vpop.f32.mrf.mxu3 }
  0xda   : > { %v5345_v18 = vadd.f32 %v951_v16, %v629_v12  ;;  %v5347_v19 = vadd.f32 %v1064_v17, %v742_v13  ;;  %v632_v20 = vpop.f32.mrf.mxu0  ;;  %v745_v21 = vpop.f32.mrf.mxu1  ;;  %v4391_v12 = vld [vmem:[%s7540_s1 + $0x2c0] sm:$0xff]  ;;  %v4392_v13 = vld [vmem:[%s7540_s1 + $0x2c8] sm:$0xff] }
  0xdb   : > { %1748 = vmatpush.msrb.mxu2 %v4391_v12  ;;  %1861 = vmatpush.msrb.mxu3 %v4392_v13  ;;  %v4387_v16 = vld [vmem:[%s7540_s1 + $0x2a0] sm:$0xff]  ;;  %v4388_v17 = vld [vmem:[%s7540_s1 + $0x2a8] sm:$0xff] }
  0xdd   : > { %4181 = vmatmul.msk.f32.gmra.mxu0 %vm500_vm0, %v465_v22  ;;  %4213 = vmatmul.msk.f32.gmra.mxu1 %vm500_vm0, %v465_v22 }
  0xde   : > { %4245 = vmatmul.msk.f32.gmra.mxu2 %vm500_vm0, %v409_v23  ;;  %4277 = vmatmul.msk.f32.gmra.mxu3 %vm500_vm0, %v409_v23 }
  0xdf   : > { %1749 = vmatpush.msrb.mxu2 %v4389_v14  ;;  %1862 = vmatpush.msrb.mxu3 %v4390_v15 }
  0xe1   : > { %v954_v24 = vpop.f32.mrf.mxu2  ;;  %v1067_v25 = vpop.f32.mrf.mxu3  ;;  %1750 = vmatpush.msrb.mxu2 %v4387_v16  ;;  %1863 = vmatpush.msrb.mxu3 %v4388_v17 }
  0xe2   : > { %v5355_v26 = vadd.f32 %v954_v24, %v632_v20  ;;  %v5357_v27 = vadd.f32 %v1067_v25, %v745_v21  ;;  %v635_v28 = vpop.f32.mrf.mxu0  ;;  %v748_v29 = vpop.f32.mrf.mxu1 }
  0xe3   : > { %1864 = vmatpush.msrb.mxu3 %v4386_v31 }
  0xe5   : > { %4182 = vmatmul.msk.f32.gmra.mxu0 %vm500_vm0, %v466_v30  ;;  %4214 = vmatmul.msk.f32.gmra.mxu1 %vm500_vm0, %v466_v30  ;;  %v4385_v30 = vld [vmem:[%s7540_s1 + $0x290] sm:$0xff] }
  0xe6   : > { %4246 = vmatmul.msk.f32.gmra.mxu2 %vm500_vm0, %v410_v33  ;;  %4278 = vmatmul.msk.f32.gmra.mxu3 %vm500_vm0, %v410_v33  ;;  %v4384_v33 = vld [vmem:[%s7540_s1 + $0x288] sm:$0xff] }
  0xe7   : > { %1751 = vmatpush.msrb.mxu2 %v4385_v30  ;;  %1865 = vmatpush.msrb.mxu3 %v4384_v33  ;;  %v4483_v33 = vld [vmem:[%s7540_s1 + $0x3a0] sm:$0xff] }
  0xe8   : > { %2189 = vmatpush.msra.mxu0 %v4483_v33 }
  0xe9   : > { %v957_v34 = vpop.f32.mrf.mxu2  ;;  %v1070_v35 = vpop.f32.mrf.mxu3  ;;  %1752 = vmatpush.msrb.mxu2 %v4383_v32  ;;  %v474_v32 = vld [vmem:[%s5128_s24 + $0xf9] sm:$0xf] }
  0xea   : > { %v5371_v36 = vadd.f32 %v957_v34, %v635_v28  ;;  %v5373_v37 = vadd.f32 %v1070_v35, %v748_v29  ;;  %v638_v40 = vpop.f32.mrf.mxu0  ;;  %v751_v41 = vpop.f32.mrf.mxu1  ;;  %v470_v28 = vld [vmem:[%s5128_s24 + $0xd9] sm:$0xff]  ;;  %v4381_v34 = vld [vmem:[%s7540_s1 + $0x270] sm:$0xff] }
  0xeb   : > { %v414_v29 = vld [vmem:[%s5128_s24 + $0xd8] sm:$0xff]  ;;  %1753 = vmatpush.msrb.mxu2 %v4381_v34  ;;  %v4484_v34 = vld [vmem:[%s7540_s1 + $0x3a8] sm:$0xff] }
  0xec   : > { %v4382_v35 = vld [vmem:[%s7540_s1 + $0x278] sm:$0xff]  ;;  %2302 = vmatpush.msra.mxu1 %v4484_v34 }
  0xed   : > { %4183 = vmatmul.msk.f32.gmra.mxu0 %vm500_vm0, %v467_v42  ;;  %4215 = vmatmul.msk.f32.gmra.mxu1 %vm500_vm0, %v467_v42  ;;  %v1148_v34 = vld [vmem:[%s5128_s24 + $0x1a] sm:$0xff] }
  0xee   : > { %4247 = vmatmul.msk.f32.gmra.mxu2 %vm500_vm0, %v411_v43  ;;  %4279 = vmatmul.msk.f32.gmra.mxu3 %vm500_vm0, %v411_v43 }
  0xef   : > { %1866 = vmatpush.msrb.mxu3 %v4382_v35  ;;  %v418_v35 = vld [vmem:[%s5128_s24 + $0xf8] sm:$0xf] }
  0xf1   : > { %v960_v44 = vpop.f32.mrf.mxu2  ;;  %v1073_v45 = vpop.f32.mrf.mxu3 }
  0xf2   : > { %v5381_v48 = vadd.f32 %v960_v44, %v638_v40  ;;  %v5383_v49 = vadd.f32 %v1073_v45, %v751_v41  ;;  %v641_v50 = vpop.f32.mrf.mxu0  ;;  %v754_v51 = vpop.f32.mrf.mxu1 }
  0xf5   : > { %4184 = vmatmul.msk.f32.gmra.mxu0 %vm500_vm0, %v468_v52  ;;  %4216 = vmatmul.msk.f32.gmra.mxu1 %vm500_vm0, %v468_v52  ;;  %v4379_v52 = vld [vmem:[%s7540_s1 + $0x260] sm:$0xff] }
  0xf6   : > { %4248 = vmatmul.msk.f32.gmra.mxu2 %vm500_vm0, %v412_v53  ;;  %4280 = vmatmul.msk.f32.gmra.mxu3 %vm500_vm0, %v412_v53  ;;  %v4380_v53 = vld [vmem:[%s7540_s1 + $0x268] sm:$0xff] }
  0xf7   : > { %1754 = vmatpush.msrb.mxu2 %v4379_v52  ;;  %1867 = vmatpush.msrb.mxu3 %v4380_v53  ;;  %v1145_v52 = vld [vmem:[%s5128_s24 + $0x2] sm:$0xff] }
  0xf8   : > { %v1588_v53 = vld [vmem:[%s5128_s24 + $0x3] sm:$0xff] }
  0xf9   : > { %v963_v60 = vpop.f32.mrf.mxu2  ;;  %v1076_v61 = vpop.f32.mrf.mxu3  ;;  %1755 = vmatpush.msrb.mxu2 %v4377_v54  ;;  %1868 = vmatpush.msrb.mxu3 %v4378_v55 }
  0xfa   : > { %v5404_v63 = vadd.f32 %v963_v60, %v641_v50  ;;  %v5406_v2 = vadd.f32 %v1076_v61, %v754_v51  ;;  %v644_v3 = vpop.f32.mrf.mxu0  ;;  %v757_v4 = vpop.f32.mrf.mxu1  ;;  %v471_v50 = vld [vmem:[%s5128_s24 + $0xe1] sm:$0xff] }
  0xfb   : > { %v415_v51 = vld [vmem:[%s5128_s24 + $0xe0] sm:$0xff]  ;;  %v4376_v61 = vld [vmem:[%s7540_s1 + $0x248] sm:$0xff] }
  0xfc   : > { %v4375_v60 = vld [vmem:[%s7540_s1 + $0x240] sm:$0xff]  ;;  %1869 = vmatpush.msrb.mxu3 %v4376_v61 }
  0xfd   : > { %4185 = vmatmul.msk.f32.gmra.mxu0 %vm500_vm0, %v469_v62  ;;  %4217 = vmatmul.msk.f32.gmra.mxu1 %vm500_vm0, %v469_v62 }
  0xfe   : > { %4249 = vmatmul.msk.f32.gmra.mxu2 %vm500_vm0, %v413_v8  ;;  %4281 = vmatmul.msk.f32.gmra.mxu3 %vm500_vm0, %v413_v8  ;;  %v472_v8 = vld [vmem:[%s5128_s24 + $0xe9] sm:$0xff] }
  0xff   : > { %1756 = vmatpush.msrb.mxu2 %v4375_v60 }
 0x101   : > { %v966_v20 = vpop.f32.mrf.mxu2  ;;  %v1079_v21 = vpop.f32.mrf.mxu3 }
 0x102   : > { %v5443_v22 = vadd.f32 %v966_v20, %v644_v3  ;;  %v5445_v23 = vadd.f32 %v1079_v21, %v757_v4  ;;  %v647_v24 = vpop.f32.mrf.mxu0  ;;  %v760_v25 = vpop.f32.mrf.mxu1  ;;  %v473_v20 = vld [vmem:[%s5128_s24 + $0xf1] sm:$0xff] }
 0x103   : > { %v417_v21 = vld [vmem:[%s5128_s24 + $0xf0] sm:$0xff] }
 0x105   : > { %4186 = vmatmul.msk.f32.gmra.mxu0 %vm500_vm0, %v470_v28  ;;  %4218 = vmatmul.msk.f32.gmra.mxu1 %vm500_vm0, %v470_v28 }
 0x106   : > { %4250 = vmatmul.msk.f32.gmra.mxu2 %vm500_vm0, %v414_v29  ;;  %4282 = vmatmul.msk.f32.gmra.mxu3 %vm500_vm0, %v414_v29 }
 0x109   : > { %v969_v40 = vpop.f32.mrf.mxu2  ;;  %v1082_v41 = vpop.f32.mrf.mxu3 }
 0x10a   : > { %v5471_v42 = vadd.f32 %v969_v40, %v647_v24  ;;  %v5473_v43 = vadd.f32 %v1082_v41, %v760_v25  ;;  %v650_v44 = vpop.f32.mrf.mxu0  ;;  %v763_v45 = vpop.f32.mrf.mxu1 }
 0x10d   : > { %4187 = vmatmul.msk.f32.gmra.mxu0 %vm500_vm0, %v471_v50  ;;  %4219 = vmatmul.msk.f32.gmra.mxu1 %vm500_vm0, %v471_v50 }
 0x10e   : > { %4251 = vmatmul.msk.f32.gmra.mxu2 %vm500_vm0, %v415_v51  ;;  %4283 = vmatmul.msk.f32.gmra.mxu3 %vm500_vm0, %v415_v51 }
 0x111   : > { %v972_v62 = vpop.f32.mrf.mxu2  ;;  %v1085_v3 = vpop.f32.mrf.mxu3 }
 0x112   : > { %v5505_v4 = vadd.f32 %v972_v62, %v650_v44  ;;  %v5507_v5 = vadd.f32 %v1085_v3, %v763_v45  ;;  %v653_v6 = vpop.f32.mrf.mxu0  ;;  %v766_v7 = vpop.f32.mrf.mxu1  ;;  %v1146_v62 = vld [vmem:[%s5128_s24 + $0xa] sm:$0xff] }
 0x113   : > { %v1589_v3 = vld [vmem:[%s5128_s24 + $0xb] sm:$0xff] }
 0x115   : > { %4188 = vmatmul.msk.f32.gmra.mxu0 %vm500_vm0, %v472_v8  ;;  %4220 = vmatmul.msk.f32.gmra.mxu1 %vm500_vm0, %v472_v8 }
 0x116   : > { %4252 = vmatmul.msk.f32.gmra.mxu2 %vm500_vm0, %v416_v9  ;;  %4284 = vmatmul.msk.f32.gmra.mxu3 %vm500_vm0, %v416_v9 }
 0x119   : > { %v975_v12 = vpop.f32.mrf.mxu2  ;;  %v1088_v13 = vpop.f32.mrf.mxu3 }
 0x11a   : > { %v5515_v14 = vadd.f32 %v975_v12, %v653_v6  ;;  %v5517_v15 = vadd.f32 %v1088_v13, %v766_v7  ;;  %v656_v16 = vpop.f32.mrf.mxu0  ;;  %v769_v17 = vpop.f32.mrf.mxu1 }
 0x11d   : > { %4189 = vmatmul.msk.f32.gmra.mxu0 %vm500_vm0, %v473_v20  ;;  %4221 = vmatmul.msk.f32.gmra.mxu1 %vm500_vm0, %v473_v20  ;;  %v4482_v20 = vld [vmem:[%s7540_s1 + $0x398] sm:$0xff] }
 0x11e   : > { %4253 = vmatmul.msk.f32.gmra.mxu2 %vm500_vm0, %v417_v21  ;;  %4285 = vmatmul.msk.f32.gmra.mxu3 %vm500_vm0, %v417_v21  ;;  %v1590_v21 = vld [vmem:[%s5128_s24 + $0x13] sm:$0xff] }
 0x11f   : > { %2303 = vmatpush.msra.mxu1 %v4482_v20 }
 0x121   : > { %v978_v24 = vpop.f32.mrf.mxu2  ;;  %v1091_v25 = vpop.f32.mrf.mxu3 }
 0x122   : > { %v5525_v28 = vadd.f32 %v978_v24, %v656_v16  ;;  %v5527_v29 = vadd.f32 %v1091_v25, %v769_v17  ;;  %v659_v30 = vpop.f32.mrf.mxu0  ;;  %v772_v31 = vpop.f32.mrf.mxu1  ;;  %v1147_v16 = vld [vmem:[%s5128_s24 + $0x12] sm:$0xff] }
 0x123   : > { %v4481_v17 = vld [vmem:[%s7540_s1 + $0x390] sm:$0xff] }
 0x124   : > { %2190 = vmatpush.msra.mxu0 %v4481_v17  ;;  %v1593_v17 = vld [vmem:[%s5128_s24 + $0x2b] sm:$0xff] }
 0x125   : > { %4190 = vmatmul.msk.f32.gmra.mxu0 %vm500_vm0, %v474_v32  ;;  %4222 = vmatmul.msk.f32.gmra.mxu1 %vm500_vm0, %v474_v32 }
 0x126   : > { %4254 = vmatmul.msk.f32.gmra.mxu2 %vm500_vm0, %v418_v35  ;;  %4286 = vmatmul.msk.f32.gmra.mxu3 %vm500_vm0, %v418_v35  ;;  %v1591_v35 = vld [vmem:[%s5128_s24 + $0x1b] sm:$0xff] }
 0x129   : > { %v981_v40 = vpop.f32.mrf.mxu2  ;;  %v1094_v41 = vpop.f32.mrf.mxu3 }
 0x12a   : > { %v5541_v44 = vadd.f32 %v981_v40, %v659_v30  ;;  %v5543_v45 = vadd.f32 %v1094_v41, %v772_v31  ;;  %v662_v50 = vpop.f32.mrf.mxu0  ;;  %v775_v51 = vpop.f32.mrf.mxu1 }
 0x12d   : > { %4311 = vmatmul.msk.f32.vlgmr.msrb.gmra.mxu0 %vm500_vm0, %v1145_v52  ;;  %4343 = vmatmul.msk.f32.vlgmr.msrb.gmra.mxu1 %vm500_vm0, %v1145_v52 }
 0x12e   : > { %4399 = vmatmul.msk.f32.vlgmr.msrb.gmra.mxu2 %vm500_vm0, %v1588_v53  ;;  %4431 = vmatmul.msk.f32.vlgmr.msrb.gmra.mxu3 %vm500_vm0, %v1588_v53 }
 0x131   : > { %v984_v54 = vpop.f32.mrf.mxu2  ;;  %v1097_v55 = vpop.f32.mrf.mxu3 }
 0x132   : > { %v5551_v58 = vadd.f32 %v984_v54, %v662_v50  ;;  %v5553_v59 = vadd.f32 %v1097_v55, %v775_v51  ;;  %v665_v60 = vpop.f32.mrf.mxu0  ;;  %v778_v61 = vpop.f32.mrf.mxu1  ;;  %v1149_v54 = vld [vmem:[%s5128_s24 + $0x22] sm:$0xff] }
 0x133   : > { %v1592_v55 = vld [vmem:[%s5128_s24 + $0x23] sm:$0xff] }
 0x135   : > { %4312 = vmatmul.msk.f32.gmra.mxu0 %vm500_vm0, %v1146_v62  ;;  %4344 = vmatmul.msk.f32.gmra.mxu1 %vm500_vm0, %v1146_v62 }
 0x136   : > { %4400 = vmatmul.msk.f32.gmra.mxu2 %vm500_vm0, %v1589_v3  ;;  %4432 = vmatmul.msk.f32.gmra.mxu3 %vm500_vm0, %v1589_v3 }
 0x139   : > { %v987_v6 = vpop.f32.mrf.mxu2  ;;  %v1100_v7 = vpop.f32.mrf.mxu3 }
 0x13a   : > { %v5561_v8 = vadd.f32 %v987_v6, %v665_v60  ;;  %v5563_v9 = vadd.f32 %v1100_v7, %v778_v61  ;;  %v668_v12 = vpop.f32.mrf.mxu0  ;;  %v781_v13 = vpop.f32.mrf.mxu1  ;;  %v4479_v60 = vld [vmem:[%s7540_s1 + $0x380] sm:$0xff]  ;;  %v4480_v61 = vld [vmem:[%s7540_s1 + $0x388] sm:$0xff] }
 0x13b   : > { %2191 = vmatpush.msra.mxu0 %v4479_v60  ;;  %2304 = vmatpush.msra.mxu1 %v4480_v61  ;;  %v1152_v60 = vld [vmem:[%s5128_s24 + $0x3a] sm:$0xff]  ;;  %v4477_v61 = vld [vmem:[%s7540_s1 + $0x370] sm:$0xff] }
 0x13c   : > { %7559 = vst [vmem:[#allocation10_spill] sm:$0xff] %v5561_v8 }
 0x13d   : > { %7560 = vst [vmem:[#allocation11_spill] sm:$0xff] %v5563_v9  ;;  %4313 = vmatmul.msk.f32.gmra.mxu0 %vm500_vm0, %v1147_v16  ;;  %4345 = vmatmul.msk.f32.gmra.mxu1 %vm500_vm0, %v1147_v16  ;;  %v1150_v16 = vld [vmem:[%s5128_s24 + $0x2a] sm:$0xff] }
 0x13e   : > { %4401 = vmatmul.msk.f32.gmra.mxu2 %vm500_vm0, %v1590_v21  ;;  %4433 = vmatmul.msk.f32.gmra.mxu3 %vm500_vm0, %v1590_v21 }
 0x13f   : > { %2192 = vmatpush.msra.mxu0 %v4477_v61  ;;  %v1597_v61 = vld [vmem:[%s5128_s24 + $0x4b] sm:$0xff] }
 0x141   : > { %v990_v24 = vpop.f32.mrf.mxu2  ;;  %v1103_v25 = vpop.f32.mrf.mxu3 }
 0x142   : > { %v5577_v30 = vadd.f32 %v990_v24, %v668_v12  ;;  %v5579_v31 = vadd.f32 %v1103_v25, %v781_v13  ;;  %v671_v32 = vpop.f32.mrf.mxu0  ;;  %v784_v33 = vpop.f32.mrf.mxu1 }
 0x144   : > { %7561 = vst [vmem:[#allocation12_spill] sm:$0xff] %v5577_v30  ;;  %v2035_v30 = vld [vmem:[%s5128_s24 + $0x24] sm:$0xff] }
 0x145   : > { %7562 = vst [vmem:[#allocation13_spill] sm:$0xff] %v5579_v31  ;;  %4314 = vmatmul.msk.f32.gmra.mxu0 %vm500_vm0, %v1148_v34  ;;  %4346 = vmatmul.msk.f32.gmra.mxu1 %vm500_vm0, %v1148_v34  ;;  %v1151_v34 = vld [vmem:[%s5128_s24 + $0x32] sm:$0xff] }
 0x146   : > { %4402 = vmatmul.msk.f32.gmra.mxu2 %vm500_vm0, %v1591_v35  ;;  %4434 = vmatmul.msk.f32.gmra.mxu3 %vm500_vm0, %v1591_v35  ;;  %v1594_v35 = vld [vmem:[%s5128_s24 + $0x33] sm:$0xff] }
 0x149   : > { %v993_v40 = vpop.f32.mrf.mxu2  ;;  %v1106_v41 = vpop.f32.mrf.mxu3 }
 0x14a   : > { %v5587_v50 = vadd.f32 %v993_v40, %v671_v32  ;;  %v5589_v51 = vadd.f32 %v1106_v41, %v784_v33  ;;  %v674_v52 = vpop.f32.mrf.mxu0  ;;  %v787_v53 = vpop.f32.mrf.mxu1 }
 0x14c   : > { %7563 = vst [vmem:[#allocation14_spill] sm:$0xff] %v5587_v50  ;;  %v2033_v50 = vld [vmem:[%s5128_s24 + $0x14] sm:$0xff] }
 0x14d   : > { %7564 = vst [vmem:[#allocation15_spill] sm:$0xff] %v5589_v51  ;;  %4315 = vmatmul.msk.f32.gmra.mxu0 %vm500_vm0, %v1149_v54  ;;  %4347 = vmatmul.msk.f32.gmra.mxu1 %vm500_vm0, %v1149_v54 }
 0x14e   : > { %4403 = vmatmul.msk.f32.gmra.mxu2 %vm500_vm0, %v1592_v55  ;;  %4435 = vmatmul.msk.f32.gmra.mxu3 %vm500_vm0, %v1592_v55 }
 0x151   : > { %v996_v62 = vpop.f32.mrf.mxu2  ;;  %v1109_v3 = vpop.f32.mrf.mxu3 }
 0x152   : > { %v5603_v6 = vadd.f32 %v996_v62, %v674_v52  ;;  %v5605_v7 = vadd.f32 %v1109_v3, %v787_v53  ;;  %v677_v12 = vpop.f32.mrf.mxu0  ;;  %v790_v13 = vpop.f32.mrf.mxu1  ;;  %v4478_v62 = vld [vmem:[%s7540_s1 + $0x378] sm:$0xff] }
 0x153   : > { %v1595_v3 = vld [vmem:[%s5128_s24 + $0x3b] sm:$0xff]  ;;  %2305 = vmatpush.msra.mxu1 %v4478_v62 }
 0x154   : > { %7565 = vst [vmem:[#allocation16_spill] sm:$0xff] %v5603_v6  ;;  %v2032_v6 = vld [vmem:[%s5128_s24 + $0xc] sm:$0xff] }
 0x155   : > { %7566 = vst [vmem:[#allocation17_spill] sm:$0xff] %v5605_v7  ;;  %4316 = vmatmul.msk.f32.gmra.mxu0 %vm500_vm0, %v1150_v16  ;;  %4348 = vmatmul.msk.f32.gmra.mxu1 %vm500_vm0, %v1150_v16 }
 0x156   : > { %4404 = vmatmul.msk.f32.gmra.mxu2 %vm500_vm0, %v1593_v17  ;;  %4436 = vmatmul.msk.f32.gmra.mxu3 %vm500_vm0, %v1593_v17 }
 0x159   : > { %v999_v20 = vpop.f32.mrf.mxu2  ;;  %v1112_v21 = vpop.f32.mrf.mxu3 }
 0x15a   : > { %v5613_v24 = vadd.f32 %v999_v20, %v677_v12  ;;  %v5615_v25 = vadd.f32 %v1112_v21, %v790_v13  ;;  %v680_v32 = vpop.f32.mrf.mxu0  ;;  %v793_v33 = vpop.f32.mrf.mxu1 }
 0x15c   : > { %7567 = vst [vmem:[#allocation18_spill] sm:$0xff] %v5613_v24  ;;  %v4581_v24 = vld [vmem:[%s7542_s3 + $0x1f0] sm:$0xff] }
 0x15d   : > { %7568 = vst [vmem:[#allocation19_spill] sm:$0xff] %v5615_v25  ;;  %4317 = vmatmul.msk.f32.gmra.mxu0 %vm500_vm0, %v1151_v34  ;;  %4349 = vmatmul.msk.f32.gmra.mxu1 %vm500_vm0, %v1151_v34 }
 0x15e   : > { %4405 = vmatmul.msk.f32.gmra.mxu2 %vm500_vm0, %v1594_v35  ;;  %4437 = vmatmul.msk.f32.gmra.mxu3 %vm500_vm0, %v1594_v35 }
 0x15f   : > { %2766 = vmatpush.msra.mxu2 %v4581_v24  ;;  %v4579_v24 = vld [vmem:[%s7542_s3 + $0x1e0] sm:$0xff] }
 0x161   : > { %v1002_v40 = vpop.f32.mrf.mxu2  ;;  %v1115_v41 = vpop.f32.mrf.mxu3  ;;  %2767 = vmatpush.msra.mxu2 %v4579_v24  ;;  %v4577_v24 = vld [vmem:[%s7542_s3 + $0x1d0] sm:$0xff] }
 0x162   : > { %v5623_v52 = vadd.f32 %v1002_v40, %v680_v32  ;;  %v5625_v53 = vadd.f32 %v1115_v41, %v793_v33  ;;  %v683_v54 = vpop.f32.mrf.mxu0  ;;  %v796_v55 = vpop.f32.mrf.mxu1  ;;  %v1153_v32 = vld [vmem:[%s5128_s24 + $0x42] sm:$0xff] }
 0x163   : > { %v1596_v33 = vld [vmem:[%s5128_s24 + $0x43] sm:$0xff]  ;;  %2768 = vmatpush.msra.mxu2 %v4577_v24 }
 0x164   : > { %7569 = vst [vmem:[#allocation20_spill] sm:$0xff] %v5623_v52  ;;  %v1619_v52 = vld [vmem:[%s5128_s24 + $0xfb] sm:$0xf]  ;;  %v4575_v24 = vld [vmem:[%s7542_s3 + $0x1c0] sm:$0xff] }
 0x165   : > { %7570 = vst [vmem:[#allocation21_spill] sm:$0xff] %v5625_v53  ;;  %4318 = vmatmul.msk.f32.gmra.mxu0 %vm500_vm0, %v1152_v60  ;;  %4350 = vmatmul.msk.f32.gmra.mxu1 %vm500_vm0, %v1152_v60  ;;  %v1154_v60 = vld [vmem:[%s5128_s24 + $0x4a] sm:$0xff] }
 0x166   : > { %4406 = vmatmul.msk.f32.gmra.mxu2 %vm500_vm0, %v1595_v3  ;;  %4438 = vmatmul.msk.f32.gmra.mxu3 %vm500_vm0, %v1595_v3 }
 0x167   : > { %2769 = vmatpush.msra.mxu2 %v4575_v24  ;;  %v4573_v24 = vld [vmem:[%s7542_s3 + $0x1b0] sm:$0xff] }
 0x169   : > { %v1005_v12 = vpop.f32.mrf.mxu2  ;;  %v1118_v13 = vpop.f32.mrf.mxu3  ;;  %2770 = vmatpush.msra.mxu2 %v4573_v24  ;;  %v4571_v24 = vld [vmem:[%s7542_s3 + $0x1a0] sm:$0xff] }
 0x16a   : > { %v5639_v16 = vadd.f32 %v1005_v12, %v683_v54  ;;  %v5641_v17 = vadd.f32 %v1118_v13, %v796_v55  ;;  %v686_v20 = vpop.f32.mrf.mxu0  ;;  %v799_v21 = vpop.f32.mrf.mxu1 }
 0x16b   : > { %2771 = vmatpush.msra.mxu2 %v4571_v24  ;;  %v4569_v24 = vld [vmem:[%s7542_s3 + $0x190] sm:$0xff] }
 0x16c   : > { %7571 = vst [vmem:[#allocation22_spill] sm:$0xff] %v5639_v16  ;;  %v1618_v16 = vld [vmem:[%s5128_s24 + $0xf3] sm:$0xff] }
 0x16d   : > { %7572 = vst [vmem:[#allocation23_spill] sm:$0xff] %v5641_v17  ;;  %4319 = vmatmul.msk.f32.gmra.mxu0 %vm500_vm0, %v1153_v32  ;;  %4351 = vmatmul.msk.f32.gmra.mxu1 %vm500_vm0, %v1153_v32  ;;  %v1155_v32 = vld [vmem:[%s5128_s24 + $0x52] sm:$0xff] }
 0x16e   : > { %4407 = vmatmul.msk.f32.gmra.mxu2 %vm500_vm0, %v1596_v33  ;;  %4439 = vmatmul.msk.f32.gmra.mxu3 %vm500_vm0, %v1596_v33  ;;  %v4475_v33 = vld [vmem:[%s7540_s1 + $0x360] sm:$0xff] }
 0x16f   : > { %2193 = vmatpush.msra.mxu0 %v4475_v33  ;;  %v1156_v33 = vld [vmem:[%s5128_s24 + $0x5a] sm:$0xff]  ;;  %2772 = vmatpush.msra.mxu2 %v4569_v24 }
 0x170   : > { %v4567_v24 = vld [vmem:[%s7542_s3 + $0x180] sm:$0xff] }
 0x171   : > { %v1008_v34 = vpop.f32.mrf.mxu2  ;;  %v1121_v35 = vpop.f32.mrf.mxu3  ;;  %2773 = vmatpush.msra.mxu2 %v4567_v24  ;;  %v4565_v24 = vld [vmem:[%s7542_s3 + $0x170] sm:$0xff] }
 0x172   : > { %v5649_v40 = vadd.f32 %v1008_v34, %v686_v20  ;;  %v5651_v41 = vadd.f32 %v1121_v35, %v799_v21  ;;  %v689_v54 = vpop.f32.mrf.mxu0  ;;  %v802_v55 = vpop.f32.mrf.mxu1  ;;  %v4476_v34 = vld [vmem:[%s7540_s1 + $0x368] sm:$0xff]  ;;  %v1598_v35 = vld [vmem:[%s5128_s24 + $0x53] sm:$0xff] }
 0x173   : > { %2306 = vmatpush.msra.mxu1 %v4476_v34  ;;  %v1599_v34 = vld [vmem:[%s5128_s24 + $0x5b] sm:$0xff]  ;;  %2774 = vmatpush.msra.mxu2 %v4565_v24 }
 0x174   : > { %7573 = vst [vmem:[#allocation24_spill] sm:$0xff] %v5649_v40  ;;  %v1617_v40 = vld [vmem:[%s5128_s24 + $0xeb] sm:$0xff]  ;;  %v4559_v24 = vld [vmem:[%s7542_s3 + $0x140] sm:$0xff] }
 0x175   : > { %7574 = vst [vmem:[#allocation25_spill] sm:$0xff] %v5651_v41  ;;  %4320 = vmatmul.msk.f32.gmra.mxu0 %vm500_vm0, %v1154_v60  ;;  %4352 = vmatmul.msk.f32.gmra.mxu1 %vm500_vm0, %v1154_v60 }
 0x176   : > { %4408 = vmatmul.msk.f32.gmra.mxu2 %vm500_vm0, %v1597_v61  ;;  %4440 = vmatmul.msk.f32.gmra.mxu3 %vm500_vm0, %v1597_v61 }
 0x179   : > { %v1011_v62 = vpop.f32.mrf.mxu2  ;;  %v1124_v3 = vpop.f32.mrf.mxu3 }
 0x17a   : > { %v5659_v12 = vadd.f32 %v1011_v62, %v689_v54  ;;  %v5661_v13 = vadd.f32 %v1124_v3, %v802_v55  ;;  %v692_v20 = vpop.f32.mrf.mxu0  ;;  %v805_v21 = vpop.f32.mrf.mxu1 }
 0x17c   : > { %7575 = vst [vmem:[#allocation26_spill] sm:$0xff] %v5659_v12  ;;  %v1605_v12 = vld [vmem:[%s5128_s24 + $0x8b] sm:$0xff] }
 0x17d   : > { %7576 = vst [vmem:[#allocation27_spill] sm:$0xff] %v5661_v13  ;;  %4321 = vmatmul.msk.f32.gmra.mxu0 %vm500_vm0, %v1155_v32  ;;  %4353 = vmatmul.msk.f32.gmra.mxu1 %vm500_vm0, %v1155_v32  ;;  %v1162_v13 = vld [vmem:[%s5128_s24 + $0x8a] sm:$0xff] }
 0x17e   : > { %4409 = vmatmul.msk.f32.gmra.mxu2 %vm500_vm0, %v1598_v35  ;;  %4441 = vmatmul.msk.f32.gmra.mxu3 %vm500_vm0, %v1598_v35 }
 0x181   : > { %v1014_v54 = vpop.f32.mrf.mxu2  ;;  %v1127_v55 = vpop.f32.mrf.mxu3 }
 0x182   : > { %v5675_v60 = vadd.f32 %v1014_v54, %v692_v20  ;;  %v5677_v61 = vadd.f32 %v1127_v55, %v805_v21  ;;  %v695_v62 = vpop.f32.mrf.mxu0  ;;  %v808_v3 = vpop.f32.mrf.mxu1 }
 0x184   : > { %7577 = vst [vmem:[#allocation28_spill] sm:$0xff] %v5675_v60  ;;  %v1600_v60 = vld [vmem:[%s5128_s24 + $0x63] sm:$0xff] }
 0x185   : > { %7578 = vst [vmem:[#allocation29_spill] sm:$0xff] %v5677_v61  ;;  %4322 = vmatmul.msk.f32.gmra.mxu0 %vm500_vm0, %v1156_v33  ;;  %4354 = vmatmul.msk.f32.gmra.mxu1 %vm500_vm0, %v1156_v33  ;;  %v1157_v61 = vld [vmem:[%s5128_s24 + $0x62] sm:$0xff] }
 0x186   : > { %4410 = vmatmul.msk.f32.gmra.mxu2 %vm500_vm0, %v1599_v34  ;;  %4442 = vmatmul.msk.f32.gmra.mxu3 %vm500_vm0, %v1599_v34 }
 0x189   : > { %v1017_v32 = vpop.f32.mrf.mxu2  ;;  %v1130_v35 = vpop.f32.mrf.mxu3 }
 0x18a   : > { %v5685_v20 = vadd.f32 %v1017_v32, %v695_v62  ;;  %v5687_v54 = vadd.f32 %v1130_v35, %v808_v3  ;;  %v698_v21 = vpop.f32.mrf.mxu0  ;;  %v811_v55 = vpop.f32.mrf.mxu1  ;;  %v4473_v62 = vld [vmem:[%s7540_s1 + $0x350] sm:$0xff]  ;;  %v4474_v3 = vld [vmem:[%s7540_s1 + $0x358] sm:$0xff] }
 0x18b   : > { %2194 = vmatpush.msra.mxu0 %v4473_v62  ;;  %2307 = vmatpush.msra.mxu1 %v4474_v3 }
 0x18c   : > { %7579 = vst [vmem:[#allocation30_spill] sm:$0xff] %v5685_v20  ;;  %v1601_v20 = vld [vmem:[%s5128_s24 + $0x6b] sm:$0xff] }
 0x18d   : > { %7580 = vst [vmem:[#allocation31_spill] sm:$0xff] %v5687_v54  ;;  %4323 = vmatmul.msk.f32.gmra.mxu0 %vm500_vm0, %v1157_v61  ;;  %4355 = vmatmul.msk.f32.gmra.mxu1 %vm500_vm0, %v1157_v61  ;;  %v1158_v54 = vld [vmem:[%s5128_s24 + $0x6a] sm:$0xff] }
 0x18e   : > { %4411 = vmatmul.msk.f32.gmra.mxu2 %vm500_vm0, %v1600_v60  ;;  %4443 = vmatmul.msk.f32.gmra.mxu3 %vm500_vm0, %v1600_v60 }
 0x191   : > { %v1020_v33 = vpop.f32.mrf.mxu2  ;;  %v1133_v34 = vpop.f32.mrf.mxu3 }
 0x192   : > { %v5701_v32 = vadd.f32 %v1020_v33, %v698_v21  ;;  %v5703_v61 = vadd.f32 %v1133_v34, %v811_v55  ;;  %v701_v35 = vpop.f32.mrf.mxu0  ;;  %v814_v60 = vpop.f32.mrf.mxu1 }
 0x194   : > { %7581 = vst [vmem:[#allocation32_spill] sm:$0xff] %v5701_v32  ;;  %v1602_v32 = vld [vmem:[%s5128_s24 + $0x73] sm:$0xff] }
 0x195   : > { %7582 = vst [vmem:[#allocation33_spill] sm:$0xff] %v5703_v61  ;;  %4324 = vmatmul.msk.f32.gmra.mxu0 %vm500_vm0, %v1158_v54  ;;  %4356 = vmatmul.msk.f32.gmra.mxu1 %vm500_vm0, %v1158_v54  ;;  %v1159_v61 = vld [vmem:[%s5128_s24 + $0x72] sm:$0xff] }
 0x196   : > { %4412 = vmatmul.msk.f32.gmra.mxu2 %vm500_vm0, %v1601_v20  ;;  %4444 = vmatmul.msk.f32.gmra.mxu3 %vm500_vm0, %v1601_v20 }
 0x199   : > { %v1023_v62 = vpop.f32.mrf.mxu2  ;;  %v1136_v3 = vpop.f32.mrf.mxu3 }
 0x19a   : > { %v5711_v21 = vadd.f32 %v1023_v62, %v701_v35  ;;  %v5713_v55 = vadd.f32 %v1136_v3, %v814_v60  ;;  %v704_v33 = vpop.f32.mrf.mxu0  ;;  %v817_v34 = vpop.f32.mrf.mxu1 }
 0x19c   : > { %7583 = vst [vmem:[#allocation34_spill] sm:$0xff] %v5711_v21  ;;  %v1603_v21 = vld [vmem:[%s5128_s24 + $0x7b] sm:$0xff] }
 0x19d   : > { %7584 = vst [vmem:[#allocation35_spill] sm:$0xff] %v5713_v55  ;;  %4325 = vmatmul.msk.f32.gmra.mxu0 %vm500_vm0, %v1159_v61  ;;  %4357 = vmatmul.msk.f32.gmra.mxu1 %vm500_vm0, %v1159_v61  ;;  %v1160_v55 = vld [vmem:[%s5128_s24 + $0x7a] sm:$0xff] }
 0x19e   : > { %4413 = vmatmul.msk.f32.gmra.mxu2 %vm500_vm0, %v1602_v32  ;;  %4445 = vmatmul.msk.f32.gmra.mxu3 %vm500_vm0, %v1602_v32  ;;  %v4471_v61 = vld [vmem:[%s7540_s1 + $0x340] sm:$0xff]  ;;  %v4472_v32 = vld [vmem:[%s7540_s1 + $0x348] sm:$0xff] }
 0x19f   : > { %2195 = vmatpush.msra.mxu0 %v4471_v61  ;;  %2308 = vmatpush.msra.mxu1 %v4472_v32  ;;  %v1161_v61 = vld [vmem:[%s5128_s24 + $0x82] sm:$0xff] }
 0x1a0   : > { %v1604_v32 = vld [vmem:[%s5128_s24 + $0x83] sm:$0xff] }
 0x1a1   : > { %v1026_v20 = vpop.f32.mrf.mxu2  ;;  %v1139_v54 = vpop.f32.mrf.mxu3 }
 0x1a2   : > { %v5721_v35 = vadd.f32 %v1026_v20, %v704_v33  ;;  %v5723_v62 = vadd.f32 %v1139_v54, %v817_v34  ;;  %v707_v60 = vpop.f32.mrf.mxu0  ;;  %v820_v3 = vpop.f32.mrf.mxu1 }
 0x1a4   : > { %7585 = vst [vmem:[#allocation36_spill] sm:$0xff] %v5721_v35 }
 0x1a5   : > { %7586 = vst [vmem:[#allocation37_spill] sm:$0xff] %v5723_v62  ;;  %4326 = vmatmul.msk.f32.gmra.mxu0 %vm500_vm0, %v1160_v55  ;;  %4358 = vmatmul.msk.f32.gmra.mxu1 %vm500_vm0, %v1160_v55 }
 0x1a6   : > { %4414 = vmatmul.msk.f32.gmra.mxu2 %vm500_vm0, %v1603_v21  ;;  %4446 = vmatmul.msk.f32.gmra.mxu3 %vm500_vm0, %v1603_v21 }
 0x1a9   : > { %v1029_v33 = vpop.f32.mrf.mxu2  ;;  %v1142_v34 = vpop.f32.mrf.mxu3 }
 0x1aa   : > { %v5737_v20 = vadd.f32 %v1029_v33, %v707_v60  ;;  %v5739_v54 = vadd.f32 %v1142_v34, %v820_v3  ;;  %v1315_v62 = vpop.f32.mrf.mxu0  ;;  %v1428_v35 = vpop.f32.mrf.mxu1 }
 0x1ab   : > { %v1524_v21 = vadd.f32 %v1315_v62, %v5283_v38  ;;  %v1525_v55 = vadd.f32 %v1428_v35, %v5285_v39 }
 0x1ac   : > { %7587 = vst [vmem:[#allocation38_spill] sm:$0xff] %v5737_v20 }
 0x1ad   : > { %7588 = vst [vmem:[#allocation39_spill] sm:$0xff] %v5739_v54  ;;  %4327 = vmatmul.msk.f32.gmra.mxu0 %vm500_vm0, %v1161_v61  ;;  %4359 = vmatmul.msk.f32.gmra.mxu1 %vm500_vm0, %v1161_v61 }
 0x1ae   : > { %4415 = vmatmul.msk.f32.gmra.mxu2 %vm500_vm0, %v1604_v32  ;;  %4447 = vmatmul.msk.f32.gmra.mxu3 %vm500_vm0, %v1604_v32 }
 0x1b1   : > { %v1758_v60 = vpop.f32.mrf.mxu2  ;;  %v1871_v3 = vpop.f32.mrf.mxu3 }
 0x1b2   : > { %v5749_v33 = vadd.f32 %v1758_v60, %v1524_v21  ;;  %v5751_v34 = vadd.f32 %v1871_v3, %v1525_v55  ;;  %v1318_v54 = vpop.f32.mrf.mxu0  ;;  %v1431_v20 = vpop.f32.mrf.mxu1  ;;  %v1163_v60 = vld [vmem:[%s5128_s24 + $0x92] sm:$0xff] }
 0x1b3   : > { %v1526_v38 = vadd.f32 %v1318_v54, %v5293_v46  ;;  %v1527_v39 = vadd.f32 %v1431_v20, %v5295_v47  ;;  %v1606_v46 = vld [vmem:[%s5128_s24 + $0x93] sm:$0xff] }
 0x1b5   : > { %4328 = vmatmul.msk.f32.gmra.mxu0 %vm500_vm0, %v1162_v13  ;;  %4360 = vmatmul.msk.f32.gmra.mxu1 %vm500_vm0, %v1162_v13  ;;  %v4469_v13 = vld [vmem:[%s7540_s1 + $0x330] sm:$0xff] }
 0x1b6   : > { %4416 = vmatmul.msk.f32.gmra.mxu2 %vm500_vm0, %v1605_v12  ;;  %4448 = vmatmul.msk.f32.gmra.mxu3 %vm500_vm0, %v1605_v12  ;;  %v4470_v12 = vld [vmem:[%s7540_s1 + $0x338] sm:$0xff] }
 0x1b7   : > { %2196 = vmatpush.msra.mxu0 %v4469_v13  ;;  %2309 = vmatpush.msra.mxu1 %v4470_v12  ;;  %v1164_v13 = vld [vmem:[%s5128_s24 + $0x9a] sm:$0xff] }
 0x1b9   : > { %v1761_v35 = vpop.f32.mrf.mxu2  ;;  %v1874_v62 = vpop.f32.mrf.mxu3 }
 0x1ba   : > { %v5761_v61 = vadd.f32 %v1761_v35, %v1526_v38  ;;  %v5763_v32 = vadd.f32 %v1874_v62, %v1527_v39  ;;  %v1321_v21 = vpop.f32.mrf.mxu0  ;;  %v1434_v55 = vpop.f32.mrf.mxu1 }
 0x1bb   : > { %v1528_v47 = vadd.f32 %v1321_v21, %v5309_v56  ;;  %v1529_v20 = vadd.f32 %v1434_v55, %v5311_v57 }
 0x1bd   : > { %4329 = vmatmul.msk.f32.gmra.mxu0 %vm500_vm0, %v1163_v60  ;;  %4361 = vmatmul.msk.f32.gmra.mxu1 %vm500_vm0, %v1163_v60  ;;  %v1607_v60 = vld [vmem:[%s5128_s24 + $0x9b] sm:$0xff] }
 0x1be   : > { %4417 = vmatmul.msk.f32.gmra.mxu2 %vm500_vm0, %v1606_v46  ;;  %4449 = vmatmul.msk.f32.gmra.mxu3 %vm500_vm0, %v1606_v46 }
 0x1c1   : > { %v1764_v54 = vpop.f32.mrf.mxu2  ;;  %v1877_v3 = vpop.f32.mrf.mxu3 }
 0x1c2   : > { %v5779_v38 = vadd.f32 %v1764_v54, %v1528_v47  ;;  %v5781_v39 = vadd.f32 %v1877_v3, %v1529_v20  ;;  %v1324_v35 = vpop.f32.mrf.mxu0  ;;  %v1437_v62 = vpop.f32.mrf.mxu1  ;;  %v1165_v54 = vld [vmem:[%s5128_s24 + $0xa2] sm:$0xff] }
 0x1c3   : > { %v1530_v56 = vadd.f32 %v1324_v35, %v5319_v0  ;;  %v1531_v57 = vadd.f32 %v1437_v62, %v5321_v1  ;;  %v1608_v3 = vld [vmem:[%s5128_s24 + $0xa3] sm:$0xff] }
 0x1c4   : > { %v4467_v0 = vld [vmem:[%s7540_s1 + $0x320] sm:$0xff]  ;;  %v4468_v1 = vld [vmem:[%s7540_s1 + $0x328] sm:$0xff] }
 0x1c5   : > { %4330 = vmatmul.msk.f32.gmra.mxu0 %vm500_vm0, %v1164_v13  ;;  %4362 = vmatmul.msk.f32.gmra.mxu1 %vm500_vm0, %v1164_v13 }
 0x1c6   : > { %4418 = vmatmul.msk.f32.gmra.mxu2 %vm500_vm0, %v1607_v60  ;;  %4450 = vmatmul.msk.f32.gmra.mxu3 %vm500_vm0, %v1607_v60 }
 0x1c7   : > { %2197 = vmatpush.msra.mxu0 %v4467_v0  ;;  %2310 = vmatpush.msra.mxu1 %v4468_v1 }
 0x1c9   : > { %v1767_v21 = vpop.f32.mrf.mxu2  ;;  %v1880_v55 = vpop.f32.mrf.mxu3 }
 0x1ca   : > { %v5791_v12 = vadd.f32 %v1767_v21, %v1530_v56  ;;  %v5793_v46 = vadd.f32 %v1880_v55, %v1531_v57  ;;  %v1327_v47 = vpop.f32.mrf.mxu0  ;;  %v1440_v20 = vpop.f32.mrf.mxu1 }
 0x1cb   : > { %v1532_v35 = vadd.f32 %v1327_v47, %v5335_v10  ;;  %v1533_v62 = vadd.f32 %v1440_v20, %v5337_v11 }
 0x1cd   : > { %4331 = vmatmul.msk.f32.gmra.mxu0 %vm500_vm0, %v1165_v54  ;;  %4363 = vmatmul.msk.f32.gmra.mxu1 %vm500_vm0, %v1165_v54  ;;  %v1166_v54 = vld [vmem:[%s5128_s24 + $0xaa] sm:$0xff] }
 0x1ce   : > { %4419 = vmatmul.msk.f32.gmra.mxu2 %vm500_vm0, %v1608_v3  ;;  %4451 = vmatmul.msk.f32.gmra.mxu3 %vm500_vm0, %v1608_v3  ;;  %v1609_v3 = vld [vmem:[%s5128_s24 + $0xab] sm:$0xff] }
 0x1d1   : > { %v1770_v13 = vpop.f32.mrf.mxu2  ;;  %v1883_v60 = vpop.f32.mrf.mxu3 }
 0x1d2   : > { %v5809_v56 = vadd.f32 %v1770_v13, %v1532_v35  ;;  %v5811_v57 = vadd.f32 %v1883_v60, %v1533_v62  ;;  %v1330_v21 = vpop.f32.mrf.mxu0  ;;  %v1443_v55 = vpop.f32.mrf.mxu1  ;;  %v1167_v13 = vld [vmem:[%s5128_s24 + $0xb2] sm:$0xff] }
 0x1d3   : > { %v1534_v10 = vadd.f32 %v1330_v21, %v5345_v18  ;;  %v1535_v11 = vadd.f32 %v1443_v55, %v5347_v19  ;;  %v1610_v60 = vld [vmem:[%s5128_s24 + $0xb3] sm:$0xff] }
 0x1d5   : > { %4332 = vmatmul.msk.f32.gmra.mxu0 %vm500_vm0, %v1166_v54  ;;  %4364 = vmatmul.msk.f32.gmra.mxu1 %vm500_vm0, %v1166_v54 }
 0x1d6   : > { %4420 = vmatmul.msk.f32.gmra.mxu2 %vm500_vm0, %v1609_v3  ;;  %4452 = vmatmul.msk.f32.gmra.mxu3 %vm500_vm0, %v1609_v3 }
 0x1d9   : > { %v1773_v47 = vpop.f32.mrf.mxu2  ;;  %v1886_v20 = vpop.f32.mrf.mxu3 }
 0x1da   : > { %v5821_v0 = vadd.f32 %v1773_v47, %v1534_v10  ;;  %v5823_v1 = vadd.f32 %v1886_v20, %v1535_v11  ;;  %v1333_v35 = vpop.f32.mrf.mxu0  ;;  %v1446_v62 = vpop.f32.mrf.mxu1  ;;  %v1168_v47 = vld [vmem:[%s5128_s24 + $0xba] sm:$0xff] }
 0x1db   : > { %v1536_v18 = vadd.f32 %v1333_v35, %v5355_v26  ;;  %v1537_v19 = vadd.f32 %v1446_v62, %v5357_v27  ;;  %v1611_v20 = vld [vmem:[%s5128_s24 + $0xbb] sm:$0xff] }
 0x1dc   : > { %v4466_v26 = vld [vmem:[%s7540_s1 + $0x318] sm:$0xff] }
 0x1dd   : > { %4333 = vmatmul.msk.f32.gmra.mxu0 %vm500_vm0, %v1167_v13  ;;  %4365 = vmatmul.msk.f32.gmra.mxu1 %vm500_vm0, %v1167_v13  ;;  %v4465_v13 = vld [vmem:[%s7540_s1 + $0x310] sm:$0xff] }
 0x1de   : > { %4421 = vmatmul.msk.f32.gmra.mxu2 %vm500_vm0, %v1610_v60  ;;  %4453 = vmatmul.msk.f32.gmra.mxu3 %vm500_vm0, %v1610_v60 }
 0x1df   : > { %2198 = vmatpush.msra.mxu0 %v4465_v13  ;;  %2311 = vmatpush.msra.mxu1 %v4466_v26  ;;  %v1612_v13 = vld [vmem:[%s5128_s24 + $0xc3] sm:$0xff] }
 0x1e1   : > { %v1776_v21 = vpop.f32.mrf.mxu2  ;;  %v1889_v55 = vpop.f32.mrf.mxu3 }
 0x1e2   : > { %v5833_v54 = vadd.f32 %v1776_v21, %v1536_v18  ;;  %v5835_v3 = vadd.f32 %v1889_v55, %v1537_v19  ;;  %v1336_v10 = vpop.f32.mrf.mxu0  ;;  %v1449_v11 = vpop.f32.mrf.mxu1 }
 0x1e3   : > { %v1538_v27 = vadd.f32 %v1336_v10, %v5371_v36  ;;  %v1539_v35 = vadd.f32 %v1449_v11, %v5373_v37  ;;  %v1170_v10 = vld [vmem:[%s5128_s24 + $0xca] sm:$0xff] }
 0x1e4   : > { %v1613_v11 = vld [vmem:[%s5128_s24 + $0xcb] sm:$0xff] }
 0x1e5   : > { %4334 = vmatmul.msk.f32.gmra.mxu0 %vm500_vm0, %v1168_v47  ;;  %4366 = vmatmul.msk.f32.gmra.mxu1 %vm500_vm0, %v1168_v47  ;;  %v1169_v47 = vld [vmem:[%s5128_s24 + $0xc2] sm:$0xff] }
 0x1e6   : > { %4422 = vmatmul.msk.f32.gmra.mxu2 %vm500_vm0, %v1611_v20  ;;  %4454 = vmatmul.msk.f32.gmra.mxu3 %vm500_vm0, %v1611_v20 }
 0x1e9   : > { %v1779_v62 = vpop.f32.mrf.mxu2  ;;  %v1892_v60 = vpop.f32.mrf.mxu3 }
 0x1ea   : > { %v5851_v18 = vadd.f32 %v1779_v62, %v1538_v27  ;;  %v5853_v19 = vadd.f32 %v1892_v60, %v1539_v35  ;;  %v5855_v21 = vpop.f32.mrf.mxu0  ;;  %v5857_v55 = vpop.f32.mrf.mxu1  ;;  %v1171_v27 = vld [vmem:[%s5128_s24 + $0xd2] sm:$0xff]  ;;  %v4463_v35 = vld [vmem:[%s7540_s1 + $0x300] sm:$0xff]  ;;  %v4464_v62 = vld [vmem:[%s7540_s1 + $0x308] sm:$0xff] }
 0x1eb   : > { %v1614_v60 = vld [vmem:[%s5128_s24 + $0xd3] sm:$0xff]  ;;  %2199 = vmatpush.msra.mxu0 %v4463_v35  ;;  %2312 = vmatpush.msra.mxu1 %v4464_v62  ;;  %v1173_v62 = vld [vmem:[%s5128_s24 + $0xe2] sm:$0xff] }
 0x1ed   : > { %4335 = vmatmul.msk.f32.gmra.mxu0 %vm500_vm0, %v1169_v47  ;;  %4367 = vmatmul.msk.f32.gmra.mxu1 %vm500_vm0, %v1169_v47 }
 0x1ee   : > { %4423 = vmatmul.msk.f32.gmra.mxu2 %vm500_vm0, %v1612_v13  ;;  %4455 = vmatmul.msk.f32.gmra.mxu3 %vm500_vm0, %v1612_v13 }
 0x1f2   : > { %v5865_v36 = vpop.f32.mrf.mxu0  ;;  %v5867_v37 = vpop.f32.mrf.mxu1 }
 0x1f5   : > { %4336 = vmatmul.msk.f32.gmra.mxu0 %vm500_vm0, %v1170_v10  ;;  %4368 = vmatmul.msk.f32.gmra.mxu1 %vm500_vm0, %v1170_v10  ;;  %v1172_v10 = vld [vmem:[%s5128_s24 + $0xda] sm:$0xff] }
 0x1f6   : > { %4424 = vmatmul.msk.f32.gmra.mxu2 %vm500_vm0, %v1613_v11  ;;  %4456 = vmatmul.msk.f32.gmra.mxu3 %vm500_vm0, %v1613_v11  ;;  %v1615_v11 = vld [vmem:[%s5128_s24 + $0xdb] sm:$0xff] }
 0x1fa   : > { %v5875_v20 = vpop.f32.mrf.mxu0  ;;  %v5877_v26 = vpop.f32.mrf.mxu1 }
 0x1fd   : > { %4337 = vmatmul.msk.f32.gmra.mxu0 %vm500_vm0, %v1171_v27  ;;  %4369 = vmatmul.msk.f32.gmra.mxu1 %vm500_vm0, %v1171_v27 }
 0x1fe   : > { %4425 = vmatmul.msk.f32.gmra.mxu2 %vm500_vm0, %v1614_v60  ;;  %4457 = vmatmul.msk.f32.gmra.mxu3 %vm500_vm0, %v1614_v60  ;;  %v1616_v60 = vld [vmem:[%s5128_s24 + $0xe3] sm:$0xff] }
 0x202   : > { %v5891_v47 = vpop.f32.mrf.mxu0  ;;  %v5893_v13 = vpop.f32.mrf.mxu1 }
 0x205   : > { %4338 = vmatmul.msk.f32.gmra.mxu0 %vm500_vm0, %v1172_v10  ;;  %4370 = vmatmul.msk.f32.gmra.mxu1 %vm500_vm0, %v1172_v10 }
 0x206   : > { %4426 = vmatmul.msk.f32.gmra.mxu2 %vm500_vm0, %v1615_v11  ;;  %4458 = vmatmul.msk.f32.gmra.mxu3 %vm500_vm0, %v1615_v11  ;;  %v1174_v11 = vld [vmem:[%s5128_s24 + $0xea] sm:$0xff] }
 0x20a   : > { %v5901_v27 = vpop.f32.mrf.mxu0  ;;  %v5903_v35 = vpop.f32.mrf.mxu1 }
 0x20d   : > { %4339 = vmatmul.msk.f32.gmra.mxu0 %vm500_vm0, %v1173_v62  ;;  %4371 = vmatmul.msk.f32.gmra.mxu1 %vm500_vm0, %v1173_v62 }
 0x20e   : > { %4427 = vmatmul.msk.f32.gmra.mxu2 %vm500_vm0, %v1616_v60  ;;  %4459 = vmatmul.msk.f32.gmra.mxu3 %vm500_vm0, %v1616_v60  ;;  %v1175_v60 = vld [vmem:[%s5128_s24 + $0xf2] sm:$0xff] }
 0x212   : > { %v5911_v10 = vpop.f32.mrf.mxu0  ;;  %v5913_v41 = vpop.f32.mrf.mxu1 }
 0x215   : > { %4340 = vmatmul.msk.f32.gmra.mxu0 %vm500_vm0, %v1174_v11  ;;  %4372 = vmatmul.msk.f32.gmra.mxu1 %vm500_vm0, %v1174_v11 }
 0x216   : > { %4428 = vmatmul.msk.f32.gmra.mxu2 %vm500_vm0, %v1617_v40  ;;  %4460 = vmatmul.msk.f32.gmra.mxu3 %vm500_vm0, %v1617_v40  ;;  %v1176_v40 = vld [vmem:[%s5128_s24 + $0xfa] sm:$0xf] }
 0x21a   : > { %v5921_v62 = vpop.f32.mrf.mxu0  ;;  %v5923_v17 = vpop.f32.mrf.mxu1 }
 0x21d   : > { %4341 = vmatmul.msk.f32.gmra.mxu0 %vm500_vm0, %v1175_v60  ;;  %4373 = vmatmul.msk.f32.gmra.mxu1 %vm500_vm0, %v1175_v60 }
 0x21e   : > { %4429 = vmatmul.msk.f32.gmra.mxu2 %vm500_vm0, %v1618_v16  ;;  %4461 = vmatmul.msk.f32.gmra.mxu3 %vm500_vm0, %v1618_v16  ;;  %v2031_v16 = vld [vmem:[%s5128_s24 + $0x4] sm:$0xff] }
 0x222   : > { %v5931_v11 = vpop.f32.mrf.mxu0  ;;  %v5933_v53 = vpop.f32.mrf.mxu1 }
 0x225   : > { %4342 = vmatmul.msk.f32.gmra.mxu0 %vm500_vm0, %v1176_v40  ;;  %4374 = vmatmul.msk.f32.gmra.mxu1 %vm500_vm0, %v1176_v40  ;;  %v4582_v40 = vld [vmem:[%s7542_s3 + $0x1f8] sm:$0xff] }
 0x226   : > { %4430 = vmatmul.msk.f32.gmra.mxu2 %vm500_vm0, %v1619_v52  ;;  %4462 = vmatmul.msk.f32.gmra.mxu3 %vm500_vm0, %v1619_v52 }
 0x227   : > { %2831 = vmatpush.msra.mxu3 %v4582_v40  ;;  %v4580_v40 = vld [vmem:[%s7542_s3 + $0x1e8] sm:$0xff] }
 0x229   : > { %2832 = vmatpush.msra.mxu3 %v4580_v40  ;;  %v4578_v40 = vld [vmem:[%s7542_s3 + $0x1d8] sm:$0xff] }
 0x22a   : > { %v5941_v60 = vpop.f32.mrf.mxu0  ;;  %v5943_v25 = vpop.f32.mrf.mxu1 }
 0x22b   : > { %7589 = vst [vmem:[#allocation40_spill] sm:$0xff] %v5943_v25  ;;  %2833 = vmatpush.msra.mxu3 %v4578_v40  ;;  %v4576_v40 = vld [vmem:[%s7542_s3 + $0x1c8] sm:$0xff] }
 0x22d   : > { %4487 = vmatmul.msk.f32.vlgmr.msra.gmra.mxu0 %vm500_vm0, %v2031_v16  ;;  %4519 = vmatmul.msk.f32.vlgmr.msra.gmra.mxu1 %vm500_vm0, %v2031_v16 }
 0x22e   : > { %2834 = vmatpush.msra.mxu3 %v4576_v40  ;;  %v4574_v40 = vld [vmem:[%s7542_s3 + $0x1b8] sm:$0xff] }
 0x230   : > { %2835 = vmatpush.msra.mxu3 %v4574_v40  ;;  %v4572_v40 = vld [vmem:[%s7542_s3 + $0x1a8] sm:$0xff] }
 0x232   : > { %v5954_v52 = vpop.f32.mrf.mxu0  ;;  %v5956_v7 = vpop.f32.mrf.mxu1  ;;  %2836 = vmatpush.msra.mxu3 %v4572_v40  ;;  %v4570_v40 = vld [vmem:[%s7542_s3 + $0x198] sm:$0xff] }
 0x233   : > { %7590 = vst [vmem:[#allocation41_spill] sm:$0xff] %v5954_v52 }
 0x234   : > { %7591 = vst [vmem:[#allocation42_spill] sm:$0xff] %v5956_v7  ;;  %2837 = vmatpush.msra.mxu3 %v4570_v40  ;;  %v4568_v40 = vld [vmem:[%s7542_s3 + $0x188] sm:$0xff] }
 0x235   : > { %4488 = vmatmul.msk.f32.gmra.mxu0 %vm500_vm0, %v2032_v6  ;;  %4520 = vmatmul.msk.f32.gmra.mxu1 %vm500_vm0, %v2032_v6 }
 0x236   : > { %2838 = vmatpush.msra.mxu3 %v4568_v40 }
 0x23a   : > { %v5961_v16 = vpop.f32.mrf.mxu0  ;;  %v5963_v51 = vpop.f32.mrf.mxu1 }
 0x23b   : > { %7592 = vst [vmem:[#allocation43_spill] sm:$0xff] %v5961_v16 }
 0x23c   : > { %7593 = vst [vmem:[#allocation44_spill] sm:$0xff] %v5963_v51  ;;  %v2034_v51 = vld [vmem:[%s5128_s24 + $0x1c] sm:$0xff] }
 0x23d   : > { %4489 = vmatmul.msk.f32.gmra.mxu0 %vm500_vm0, %v2033_v50  ;;  %4521 = vmatmul.msk.f32.gmra.mxu1 %vm500_vm0, %v2033_v50 }
 0x242   : > { %v5974_v6 = vpop.f32.mrf.mxu0  ;;  %v5976_v31 = vpop.f32.mrf.mxu1 }
 0x243   : > { %7594 = vst [vmem:[#allocation45_spill] sm:$0xff] %v5974_v6  ;;  %v2037_v6 = vld [vmem:[%s5128_s24 + $0x34] sm:$0xff] }
 0x244   : > { %7595 = vst [vmem:[#allocation46_spill] sm:$0xff] %v5976_v31 }
 0x245   : > { %4490 = vmatmul.msk.f32.gmra.mxu0 %vm500_vm0, %v2034_v51  ;;  %4522 = vmatmul.msk.f32.gmra.mxu1 %vm500_vm0, %v2034_v51 }
 0x24a   : > { %v5981_v50 = vpop.f32.mrf.mxu0  ;;  %v5983_v16 = vpop.f32.mrf.mxu1 }
 0x24b   : > { %7596 = vst [vmem:[#allocation47_spill] sm:$0xff] %v5981_v50 }
 0x24c   : > { %7597 = vst [vmem:[#allocation48_spill] sm:$0xff] %v5983_v16  ;;  %v2036_v16 = vld [vmem:[%s5128_s24 + $0x2c] sm:$0xff] }
 0x24d   : > { %4491 = vmatmul.msk.f32.gmra.mxu0 %vm500_vm0, %v2035_v30  ;;  %4523 = vmatmul.msk.f32.gmra.mxu1 %vm500_vm0, %v2035_v30 }
 0x252   : > { %v5994_v51 = vpop.f32.mrf.mxu0  ;;  %v5996_v50 = vpop.f32.mrf.mxu1 }
 0x253   : > { %7598 = vst [vmem:[#allocation49_spill] sm:$0xff] %v5994_v51  ;;  %v2039_v51 = vld [vmem:[%s5128_s24 + $0x44] sm:$0xff] }
 0x254   : > { %7599 = vst [vmem:[#allocation50_spill] sm:$0xff] %v5996_v50 }
 0x255   : > { %4492 = vmatmul.msk.f32.gmra.mxu0 %vm500_vm0, %v2036_v16  ;;  %4524 = vmatmul.msk.f32.gmra.mxu1 %vm500_vm0, %v2036_v16 }
 0x25a   : > { %v6001_v30 = vpop.f32.mrf.mxu0  ;;  %v6003_v31 = vpop.f32.mrf.mxu1 }
 0x25b   : > { %7600 = vst [vmem:[#allocation51_spill] sm:$0xff] %v6001_v30 }
 0x25c   : > { %7601 = vst [vmem:[#allocation52_spill] sm:$0xff] %v6003_v31  ;;  %v2038_v31 = vld [vmem:[%s5128_s24 + $0x3c] sm:$0xff] }
 0x25d   : > { %4493 = vmatmul.msk.f32.gmra.mxu0 %vm500_vm0, %v2037_v6  ;;  %4525 = vmatmul.msk.f32.gmra.mxu1 %vm500_vm0, %v2037_v6 }
 0x262   : > { %v6014_v16 = vpop.f32.mrf.mxu0  ;;  %v6016_v30 = vpop.f32.mrf.mxu1 }
 0x263   : > { %7602 = vst [vmem:[#allocation53_spill] sm:$0xff] %v6014_v16  ;;  %v2041_v16 = vld [vmem:[%s5128_s24 + $0x54] sm:$0xff] }
 0x264   : > { %7603 = vst [vmem:[#allocation54_spill] sm:$0xff] %v6016_v30 }
 0x265   : > { %4494 = vmatmul.msk.f32.gmra.mxu0 %vm500_vm0, %v2038_v31  ;;  %4526 = vmatmul.msk.f32.gmra.mxu1 %vm500_vm0, %v2038_v31 }
 0x26a   : > { %v6021_v6 = vpop.f32.mrf.mxu0  ;;  %v6023_v50 = vpop.f32.mrf.mxu1 }
 0x26b   : > { %7604 = vst [vmem:[#allocation55_spill] sm:$0xff] %v6021_v6 }
 0x26c   : > { %7605 = vst [vmem:[#allocation56_spill] sm:$0xff] %v6023_v50  ;;  %v2040_v50 = vld [vmem:[%s5128_s24 + $0x4c] sm:$0xff] }
 0x26d   : > { %4495 = vmatmul.msk.f32.gmra.mxu0 %vm500_vm0, %v2039_v51  ;;  %4527 = vmatmul.msk.f32.gmra.mxu1 %vm500_vm0, %v2039_v51 }
 0x272   : > { %v6034_v31 = vpop.f32.mrf.mxu0  ;;  %v6036_v6 = vpop.f32.mrf.mxu1 }
 0x273   : > { %7606 = vst [vmem:[#allocation57_spill] sm:$0xff] %v6034_v31  ;;  %v2043_v31 = vld [vmem:[%s5128_s24 + $0x64] sm:$0xff] }
 0x274   : > { %7607 = vst [vmem:[#allocation58_spill] sm:$0xff] %v6036_v6 }
 0x275   : > { %4496 = vmatmul.msk.f32.gmra.mxu0 %vm500_vm0, %v2040_v50  ;;  %4528 = vmatmul.msk.f32.gmra.mxu1 %vm500_vm0, %v2040_v50 }
 0x27a   : > { %v6041_v51 = vpop.f32.mrf.mxu0  ;;  %v6043_v30 = vpop.f32.mrf.mxu1 }
 0x27b   : > { %7608 = vst [vmem:[#allocation59_spill] sm:$0xff] %v6041_v51 }
 0x27c   : > { %7609 = vst [vmem:[#allocation60_spill] sm:$0xff] %v6043_v30  ;;  %v2042_v30 = vld [vmem:[%s5128_s24 + $0x5c] sm:$0xff] }
 0x27d   : > { %4497 = vmatmul.msk.f32.gmra.mxu0 %vm500_vm0, %v2041_v16  ;;  %4529 = vmatmul.msk.f32.gmra.mxu1 %vm500_vm0, %v2041_v16 }
 0x282   : > { %v6054_v50 = vpop.f32.mrf.mxu0  ;;  %v6056_v51 = vpop.f32.mrf.mxu1 }
 0x283   : > { %7610 = vst [vmem:[#allocation61_spill] sm:$0xff] %v6054_v50  ;;  %v2045_v50 = vld [vmem:[%s5128_s24 + $0x74] sm:$0xff] }
 0x284   : > { %7611 = vst [vmem:[#allocation62_spill] sm:$0xff] %v6056_v51 }
 0x285   : > { %4498 = vmatmul.msk.f32.gmra.mxu0 %vm500_vm0, %v2042_v30  ;;  %4530 = vmatmul.msk.f32.gmra.mxu1 %vm500_vm0, %v2042_v30 }
 0x28a   : > { %v6061_v16 = vpop.f32.mrf.mxu0  ;;  %v6063_v6 = vpop.f32.mrf.mxu1 }
 0x28b   : > { %7612 = vst [vmem:[#allocation63_spill] sm:$0xff] %v6061_v16 }
 0x28c   : > { %7613 = vst [vmem:[#allocation64_spill] sm:$0xff] %v6063_v6  ;;  %v2044_v6 = vld [vmem:[%s5128_s24 + $0x6c] sm:$0xff] }
 0x28d   : > { %4499 = vmatmul.msk.f32.gmra.mxu0 %vm500_vm0, %v2043_v31  ;;  %4531 = vmatmul.msk.f32.gmra.mxu1 %vm500_vm0, %v2043_v31 }
 0x292   : > { %v6074_v30 = vpop.f32.mrf.mxu0  ;;  %v6076_v16 = vpop.f32.mrf.mxu1 }
 0x293   : > { %7614 = vst [vmem:[#allocation65_spill] sm:$0xff] %v6074_v30  ;;  %v2047_v30 = vld [vmem:[%s5128_s24 + $0x84] sm:$0xff] }
 0x294   : > { %7615 = vst [vmem:[#allocation66_spill] sm:$0xff] %v6076_v16 }
 0x295   : > { %4500 = vmatmul.msk.f32.gmra.mxu0 %vm500_vm0, %v2044_v6  ;;  %4532 = vmatmul.msk.f32.gmra.mxu1 %vm500_vm0, %v2044_v6 }
 0x29a   : > { %v6081_v31 = vpop.f32.mrf.mxu0  ;;  %v6083_v51 = vpop.f32.mrf.mxu1 }
 0x29b   : > { %7616 = vst [vmem:[#allocation67_spill] sm:$0xff] %v6081_v31 }
 0x29c   : > { %7617 = vst [vmem:[#allocation68_spill] sm:$0xff] %v6083_v51  ;;  %v2046_v51 = vld [vmem:[%s5128_s24 + $0x7c] sm:$0xff] }
 0x29d   : > { %4501 = vmatmul.msk.f32.gmra.mxu0 %vm500_vm0, %v2045_v50  ;;  %4533 = vmatmul.msk.f32.gmra.mxu1 %vm500_vm0, %v2045_v50 }
 0x2a2   : > { %v6094_v6 = vpop.f32.mrf.mxu0  ;;  %v6096_v31 = vpop.f32.mrf.mxu1 }
 0x2a3   : > { %7618 = vst [vmem:[#allocation69_spill] sm:$0xff] %v6094_v6  ;;  %v2050_v6 = vld [vmem:[%s5128_s24 + $0x9c] sm:$0xff] }
 0x2a4   : > { %7619 = vst [vmem:[#allocation70_spill] sm:$0xff] %v6096_v31 }
 0x2a5   : > { %4502 = vmatmul.msk.f32.gmra.mxu0 %vm500_vm0, %v2046_v51  ;;  %4534 = vmatmul.msk.f32.gmra.mxu1 %vm500_vm0, %v2046_v51  ;;  %v4566_v51 = vld [vmem:[%s7542_s3 + $0x178] sm:$0xff] }
 0x2a6   : > { %2839 = vmatpush.msra.mxu3 %v4566_v51  ;;  %v4560_v51 = vld [vmem:[%s7542_s3 + $0x148] sm:$0xff] }
 0x2aa   : > { %v2201_v50 = vpop.f32.mrf.mxu0  ;;  %v2314_v16 = vpop.f32.mrf.mxu1 }
 0x2ab   : > { %v2410_v7 = vadd.f32 %v2201_v50, %v5749_v33  ;;  %v2411_v9 = vadd.f32 %v2314_v16, %v5751_v34  ;;  %v4563_v33 = vld [vmem:[%s7542_s3 + $0x160] sm:$0xff]  ;;  %v2048_v16 = vld [vmem:[%s5128_s24 + $0x8c] sm:$0xff] }
 0x2ac   : > { %2775 = vmatpush.msra.mxu2 %v4563_v33 }
 0x2ad   : > { %v2474_v52 = vmax.f32 %v2410_v7, %v2411_v9  ;;  %4503 = vmatmul.msk.f32.gmra.mxu0 %vm500_vm0, %v2047_v30  ;;  %4535 = vmatmul.msk.f32.gmra.mxu1 %vm500_vm0, %v2047_v30  ;;  %v4564_v9 = vld [vmem:[%s7542_s3 + $0x168] sm:$0xff]  ;;  %v4561_v30 = vld [vmem:[%s7542_s3 + $0x150] sm:$0xff] }
 0x2ae   : > { %2840 = vmatpush.msra.mxu3 %v4564_v9  ;;  %2776 = vmatpush.msra.mxu2 %v4561_v30  ;;  %v6141_v9 = vpop.f32.mrf.mxu2 }
 0x2af   : > { %2506 = vst [vmem:[#allocation2] sm:$0xff] %v2474_v52  ;;  %v4562_v52 = vld [vmem:[%s7542_s3 + $0x158] sm:$0xff] }
 0x2b0   : > { %2841 = vmatpush.msra.mxu3 %v4562_v52  ;;  %2777 = vmatpush.msra.mxu2 %v4559_v24  ;;  %v4554_v24 = vld [vmem:[%s7542_s3 + $0x118] sm:$0xff] }
 0x2b2   : > { %v2204_v7 = vpop.f32.mrf.mxu0  ;;  %v2317_v34 = vpop.f32.mrf.mxu1  ;;  %2842 = vmatpush.msra.mxu3 %v4560_v51 }
 0x2b3   : > { %v2412_v40 = vadd.f32 %v2204_v7, %v5761_v61  ;;  %v2413_v50 = vadd.f32 %v2317_v34, %v5763_v32  ;;  %v4557_v61 = vld [vmem:[%s7542_s3 + $0x130] sm:$0xff]  ;;  %v4558_v32 = vld [vmem:[%s7542_s3 + $0x138] sm:$0xff]  ;;  %v6143_v7 = vpop.f32.mrf.mxu3  ;;  %v4555_v34 = vld [vmem:[%s7542_s3 + $0x120] sm:$0xff] }
 0x2b4   : > { %2778 = vmatpush.msra.mxu2 %v4557_v61  ;;  %2843 = vmatpush.msra.mxu3 %v4558_v32  ;;  %v4551_v61 = vld [vmem:[%s7542_s3 + $0x100] sm:$0xff]  ;;  %v4552_v32 = vld [vmem:[%s7542_s3 + $0x108] sm:$0xff] }
 0x2b5   : > { %v2475_v33 = vmax.f32 %v2412_v40, %v2413_v50  ;;  %4504 = vmatmul.msk.f32.gmra.mxu0 %vm500_vm0, %v2048_v16  ;;  %4536 = vmatmul.msk.f32.gmra.mxu1 %vm500_vm0, %v2048_v16  ;;  %v4556_v16 = vld [vmem:[%s7542_s3 + $0x128] sm:$0xff]  ;;  %v2049_v40 = vld [vmem:[%s5128_s24 + $0x94] sm:$0xff] }
 0x2b6   : > { %2779 = vmatpush.msra.mxu2 %v4555_v34  ;;  %2844 = vmatpush.msra.mxu3 %v4556_v16  ;;  %v4553_v50 = vld [vmem:[%s7542_s3 + $0x110] sm:$0xff] }
 0x2b7   : > { %2507 = vst [vmem:[#allocation2 + $0x8] sm:$0xff] %v2475_v33 }
 0x2b8   : > { %2780 = vmatpush.msra.mxu2 %v4553_v50  ;;  %2845 = vmatpush.msra.mxu3 %v4554_v24  ;;  %v6179_v50 = vpop.f32.mrf.mxu2 }
 0x2ba   : > { %v2207_v30 = vpop.f32.mrf.mxu0  ;;  %v2320_v52 = vpop.f32.mrf.mxu1  ;;  %2781 = vmatpush.msra.mxu2 %v4551_v61  ;;  %2846 = vmatpush.msra.mxu3 %v4552_v32 }
 0x2bb   : > { %v2414_v51 = vadd.f32 %v2207_v30, %v5779_v38  ;;  %v2415_v33 = vadd.f32 %v2320_v52, %v5781_v39  ;;  %v6171_v38 = vld [vmem:[%s7541_s2] ss:$0 sm:$0xff]  ;;  %v4613_v30 = vld [vmem:[%s7542_s3 + $0x2f0] sm:$0xff]  ;;  %v6181_v24 = vpop.f32.mrf.mxu3 }
 0x2bc   : > { %3075 = vmatpush.msrb.mxu0 %v4613_v30 }
 0x2bd   : > { %v2476_v34 = vmax.f32 %v2414_v51, %v2415_v33  ;;  %4505 = vmatmul.msk.f32.gmra.mxu0 %vm500_vm0, %v2049_v40  ;;  %4537 = vmatmul.msk.f32.gmra.mxu1 %vm500_vm0, %v2049_v40  ;;  %v4614_v40 = vld [vmem:[%s7542_s3 + $0x2f8] sm:$0xff] }
 0x2be   : > { %v2538_v39 = vld [vmem:[#allocation2] ss:$2 sm:$0xff]  ;;  %v2570_v16 = vld [vmem:[#allocation2 + $0x1] ss:$2 sm:$0xff]  ;;  %3140 = vmatpush.msrb.mxu1 %v4614_v40 }
 0x2bf   : > { %v2601_v52 = vmax.f32 %v2538_v39, %v2570_v16  ;;  %2508 = vst [vmem:[#allocation2 + $0x10] sm:$0xff] %v2476_v34  ;;  %v2051_v40 = vld [vmem:[%s5128_s24 + $0xa4] sm:$0xff] }
 0x2c0   : > { %v6190_v8 = vpop.f32.mrf.mxu2 }
 0x2c1   : > { %v2621_v51 = vadd.f32 %v6171_v38, %v2601_v52 }
 0x2c2   : > { %v2210_v33 = vpop.f32.mrf.mxu0  ;;  %v2323_v31 = vpop.f32.mrf.mxu1 }
 0x2c3   : > { %v2416_v61 = vadd.f32 %v2210_v33, %v5791_v12  ;;  %v2417_v32 = vadd.f32 %v2323_v31, %v5793_v46  ;;  %v2637_v34 = vmax.f32 %v2621_v51, 0.0  ;;  %v6192_v52 = vpop.f32.mrf.mxu3  ;;  %v4611_v51 = vld [vmem:[%s7542_s3 + $0x2e0] sm:$0xff] }
 0x2c4   : > { %3076 = vmatpush.msrb.mxu0 %v4611_v51 }
 0x2c5   : > { %v2477_v39 = vmax.f32 %v2416_v61, %v2417_v32  ;;  %4506 = vmatmul.msk.f32.gmra.mxu0 %vm500_vm0, %v2050_v6  ;;  %4538 = vmatmul.msk.f32.gmra.mxu1 %vm500_vm0, %v2050_v6  ;;  %2653 = vst [vmem:[#allocation3] sm:$0xff] %v2637_v34  ;;  %v2052_v32 = vld [vmem:[%s5128_s24 + $0xac] sm:$0xff] }
 0x2c7   : > { %2509 = vst [vmem:[#allocation2 + $0x18] sm:$0xff] %v2477_v39 }
 0x2ca   : > { %v2213_v16 = vpop.f32.mrf.mxu0  ;;  %v2326_v30 = vpop.f32.mrf.mxu1 }
 0x2cb   : > { %v2418_v25 = vadd.f32 %v2213_v16, %v5809_v56  ;;  %v2419_v12 = vadd.f32 %v2326_v30, %v5811_v57  ;;  %v4612_v56 = vld [vmem:[%s7542_s3 + $0x2e8] sm:$0xff]  ;;  %v6208_v30 = vpop.f32.mrf.mxu2 }
 0x2cc   : > { %3141 = vmatpush.msrb.mxu1 %v4612_v56 }
 0x2cd   : > { %v2478_v46 = vmax.f32 %v2418_v25, %v2419_v12  ;;  %4507 = vmatmul.msk.f32.gmra.mxu0 %vm500_vm0, %v2051_v40  ;;  %4539 = vmatmul.msk.f32.gmra.mxu1 %vm500_vm0, %v2051_v40  ;;  %v6210_v40 = vpop.f32.mrf.mxu3 }
 0x2ce   : > { %v2540_v31 = vld [vmem:[#allocation2 + $0x10] ss:$2 sm:$0xff]  ;;  %v2572_v6 = vld [vmem:[#allocation2 + $0x11] ss:$2 sm:$0xff] }
 0x2cf   : > { %v2602_v33 = vmax.f32 %v2540_v31, %v2572_v6  ;;  %2510 = vst [vmem:[#allocation2 + $0x20] sm:$0xff] %v2478_v46  ;;  %v2053_v6 = vld [vmem:[%s5128_s24 + $0xb4] sm:$0xff] }
 0x2d1   : > { %v2622_v25 = vadd.f32 %v6171_v38, %v2602_v33 }
 0x2d2   : > { %v2216_v57 = vpop.f32.mrf.mxu0  ;;  %v2329_v61 = vpop.f32.mrf.mxu1 }
 0x2d3   : > { %v2420_v34 = vadd.f32 %v2216_v57, %v5821_v0  ;;  %v2421_v39 = vadd.f32 %v2329_v61, %v5823_v1  ;;  %v2638_v16 = vmax.f32 %v2622_v25, 0.0  ;;  %v4609_v57 = vld [vmem:[%s7542_s3 + $0x2d0] sm:$0xff]  ;;  %v6222_v61 = vpop.f32.mrf.mxu2 }
 0x2d4   : > { %3077 = vmatpush.msrb.mxu0 %v4609_v57 }
 0x2d5   : > { %v2479_v12 = vmax.f32 %v2420_v34, %v2421_v39  ;;  %4508 = vmatmul.msk.f32.gmra.mxu0 %vm500_vm0, %v2052_v32  ;;  %4540 = vmatmul.msk.f32.gmra.mxu1 %vm500_vm0, %v2052_v32  ;;  %2654 = vst [vmem:[#allocation3 + $0x8] sm:$0xff] %v2638_v16  ;;  %v4610_v32 = vld [vmem:[%s7542_s3 + $0x2d8] sm:$0xff] }
 0x2d6   : > { %3142 = vmatpush.msrb.mxu1 %v4610_v32 }
 0x2d7   : > { %2511 = vst [vmem:[#allocation2 + $0x28] sm:$0xff] %v2479_v12  ;;  %v2054_v12 = vld [vmem:[%s5128_s24 + $0xbc] sm:$0xff] }
 0x2da   : > { %v2219_v46 = vpop.f32.mrf.mxu0  ;;  %v2332_v31 = vpop.f32.mrf.mxu1 }
 0x2db   : > { %v2422_v51 = vadd.f32 %v2219_v46, %v5833_v54  ;;  %v2423_v0 = vadd.f32 %v2332_v31, %v5835_v3  ;;  %v6224_v54 = vpop.f32.mrf.mxu3 }
 0x2dc   : > { %v2717_v1 = vld [vmem:[#allocation3 + $0x1] sm:$0xff] }
 0x2dd   : > { %v2480_v33 = vmax.f32 %v2422_v51, %v2423_v0  ;;  %4509 = vmatmul.msk.f32.gmra.mxu0 %vm500_vm0, %v2053_v6  ;;  %4541 = vmatmul.msk.f32.gmra.mxu1 %vm500_vm0, %v2053_v6  ;;  %v1540_v0 = vadd.f32 %v5855_v21, %v5381_v48  ;;  %v4607_v21 = vld [vmem:[%s7542_s3 + $0x2c0] sm:$0xff] }
 0x2de   : > { %v2542_v56 = vld [vmem:[#allocation2 + $0x20] ss:$2 sm:$0xff]  ;;  %v2574_v25 = vld [vmem:[#allocation2 + $0x21] ss:$2 sm:$0xff]  ;;  %2782 = vmatmul.f32.vlgmr.msra.gmra.mxu2 %v2717_v1  ;;  %2847 = vmatmul.f32.vlgmr.msra.gmra.mxu3 %v2717_v1  ;;  %v1541_v1 = vadd.f32 %v5857_v55, %v5383_v49  ;;  %v1542_v55 = vadd.f32 %v5865_v36, %v5404_v63 }
 0x2df   : > { %2512 = vst [vmem:[#allocation2 + $0x30] sm:$0xff] %v2480_v33  ;;  %v2603_v3 = vmax.f32 %v2542_v56, %v2574_v25  ;;  %v1983_v33 = vadd.f32 %v6141_v9, %v1540_v0  ;;  %v6241_v56 = vpop.f32.mrf.mxu2  ;;  %v1543_v9 = vadd.f32 %v5867_v37, %v5406_v2  ;;  %3078 = vmatpush.msrb.mxu0 %v4607_v21  ;;  %v2056_v63 = vld [vmem:[%s5128_s24 + $0xcc] sm:$0xff] }
 0x2e0   : > { %v4600_v21 = vld [vmem:[%s7542_s3 + $0x288] sm:$0xff] }
 0x2e1   : > { %v2623_v34 = vadd.f32 %v6171_v38, %v2603_v3  ;;  %v2055_v3 = vld [vmem:[%s5128_s24 + $0xc4] sm:$0xff] }
 0x2e2   : > { %v2222_v39 = vpop.f32.mrf.mxu0  ;;  %v2335_v16 = vpop.f32.mrf.mxu1 }
 0x2e3   : > { %v2424_v46 = vadd.f32 %v2222_v39, %v5851_v18  ;;  %v2425_v31 = vadd.f32 %v2335_v16, %v5853_v19  ;;  %v2639_v6 = vmax.f32 %v2623_v34, 0.0  ;;  %v1984_v18 = vadd.f32 %v6143_v7, %v1541_v1  ;;  %v6243_v19 = vpop.f32.mrf.mxu3 }
 0x2e5   : > { %v2481_v51 = vmax.f32 %v2424_v46, %v2425_v31  ;;  %4510 = vmatmul.msk.f32.gmra.mxu0 %vm500_vm0, %v2054_v12  ;;  %4542 = vmatmul.msk.f32.gmra.mxu1 %vm500_vm0, %v2054_v12  ;;  %2655 = vst [vmem:[#allocation3 + $0x10] sm:$0xff] %v2639_v6  ;;  %v4608_v12 = vld [vmem:[%s7542_s3 + $0x2c8] sm:$0xff]  ;;  %v1985_v46 = vadd.f32 %v6179_v50, %v1542_v55  ;;  %v4605_v50 = vld [vmem:[%s7542_s3 + $0x2b0] sm:$0xff] }
 0x2e6   : > { %3143 = vmatpush.msrb.mxu1 %v4608_v12  ;;  %v1986_v31 = vadd.f32 %v6181_v24, %v1543_v9  ;;  %v4606_v24 = vld [vmem:[%s7542_s3 + $0x2b8] sm:$0xff]  ;;  %3079 = vmatpush.msrb.mxu0 %v4605_v50 }
 0x2e7   : > { %2513 = vst [vmem:[#allocation2 + $0x38] sm:$0xff] %v2481_v51  ;;  %v6262_v36 = vpop.f32.mrf.mxu2 }
 0x2e8   : > { %3144 = vmatpush.msrb.mxu1 %v4606_v24 }
 0x2ea   : > { %v2225_v25 = vpop.f32.mrf.mxu0  ;;  %v2338_v57 = vpop.f32.mrf.mxu1 }
 0x2eb   : > { %v2426_v32 = vadd.f32 %v2225_v25, %v1983_v33  ;;  %v2427_v34 = vadd.f32 %v2338_v57, %v1984_v18  ;;  %v6264_v2 = vpop.f32.mrf.mxu3  ;;  %v1544_v25 = vadd.f32 %v5875_v20, %v5443_v22  ;;  %v1545_v57 = vadd.f32 %v5877_v26, %v5445_v23  ;;  %v2057_v23 = vld [vmem:[%s5128_s24 + $0xd4] sm:$0xff] }
 0x2ec   : > { %v2718_v39 = vld [vmem:[#allocation3 + $0x9] sm:$0xff] }
 0x2ed   : > { %v2482_v16 = vmax.f32 %v2426_v32, %v2427_v34  ;;  %4511 = vmatmul.msk.f32.gmra.mxu0 %vm500_vm0, %v2055_v3  ;;  %4543 = vmatmul.msk.f32.gmra.mxu1 %vm500_vm0, %v2055_v3  ;;  %v4603_v3 = vld [vmem:[%s7542_s3 + $0x2a0] sm:$0xff]  ;;  %v4604_v32 = vld [vmem:[%s7542_s3 + $0x2a8] sm:$0xff]  ;;  %v1987_v34 = vadd.f32 %v6190_v8, %v1544_v25  ;;  %v4601_v26 = vld [vmem:[%s7542_s3 + $0x290] sm:$0xff] }
 0x2ee   : > { %v2544_v48 = vld [vmem:[#allocation2 + $0x30] ss:$2 sm:$0xff]  ;;  %v2576_v49 = vld [vmem:[#allocation2 + $0x31] ss:$2 sm:$0xff]  ;;  %2785 = vmatmul.f32.gmra.mxu2 %v2718_v39  ;;  %2850 = vmatmul.f32.gmra.mxu3 %v2718_v39  ;;  %v1988_v39 = vadd.f32 %v6192_v52, %v1545_v57  ;;  %v4599_v52 = vld [vmem:[%s7542_s3 + $0x280] sm:$0xff] }
 0x2ef   : > { %2514 = vst [vmem:[#allocation2 + $0x40] sm:$0xff] %v2482_v16  ;;  %v2604_v7 = vmax.f32 %v2544_v48, %v2576_v49  ;;  %3080 = vmatpush.msrb.mxu0 %v4603_v3  ;;  %3145 = vmatpush.msrb.mxu1 %v4604_v32  ;;  %v4602_v16 = vld [vmem:[%s7542_s3 + $0x298] sm:$0xff]  ;;  %v6299_v55 = vpop.f32.mrf.mxu2  ;;  %v4593_v57 = vld [vmem:[%s7542_s3 + $0x250] sm:$0xff]  ;;  %v4591_v3 = vld [vmem:[%s7542_s3 + $0x240] sm:$0xff] }
 0x2f0   : > { %v4592_v32 = vld [vmem:[%s7542_s3 + $0x248] sm:$0xff] }
 0x2f1   : > { %v2624_v6 = vadd.f32 %v6171_v38, %v2604_v7  ;;  %3081 = vmatpush.msrb.mxu0 %v4601_v26  ;;  %3146 = vmatpush.msrb.mxu1 %v4602_v16  ;;  %v4590_v26 = vld [vmem:[%s7542_s3 + $0x238] sm:$0xff] }
 0x2f2   : > { %v2228_v51 = vpop.f32.mrf.mxu0  ;;  %v2341_v0 = vpop.f32.mrf.mxu1 }
 0x2f3   : > { %v2428_v37 = vadd.f32 %v2228_v51, %v1985_v46  ;;  %v2429_v1 = vadd.f32 %v2341_v0, %v1986_v31  ;;  %v2640_v33 = vmax.f32 %v2624_v6, 0.0  ;;  %v6301_v9 = vpop.f32.mrf.mxu3  ;;  %v4597_v31 = vld [vmem:[%s7542_s3 + $0x270] sm:$0xff]  ;;  %v1546_v6 = vadd.f32 %v5891_v47, %v5471_v42  ;;  %3082 = vmatpush.msrb.mxu0 %v4599_v52  ;;  %3147 = vmatpush.msrb.mxu1 %v4600_v21  ;;  %v4596_v42 = vld [vmem:[%s7542_s3 + $0x268] sm:$0xff] }
 0x2f4   : > { %v1547_v51 = vadd.f32 %v5893_v13, %v5473_v43 }
 0x2f5   : > { %v2483_v18 = vmax.f32 %v2428_v37, %v2429_v1  ;;  %4512 = vmatmul.msk.f32.gmra.mxu0 %vm500_vm0, %v2056_v63  ;;  %4544 = vmatmul.msk.f32.gmra.mxu1 %vm500_vm0, %v2056_v63  ;;  %2656 = vst [vmem:[#allocation3 + $0x18] sm:$0xff] %v2640_v33  ;;  %v4598_v63 = vld [vmem:[%s7542_s3 + $0x278] sm:$0xff]  ;;  %v4595_v37 = vld [vmem:[%s7542_s3 + $0x260] sm:$0xff]  ;;  %v1989_v47 = vadd.f32 %v6208_v30, %v1546_v6  ;;  %v4584_v6 = vld [vmem:[%s7542_s3 + $0x208] sm:$0xff] }
 0x2f6   : > { %v1990_v43 = vadd.f32 %v6210_v40, %v1547_v51  ;;  %3083 = vmatpush.msrb.mxu0 %v4597_v31  ;;  %3148 = vmatpush.msrb.mxu1 %v4598_v63  ;;  %v4594_v30 = vld [vmem:[%s7542_s3 + $0x258] sm:$0xff]  ;;  %v1550_v51 = vadd.f32 %v5911_v10, %v5515_v14 }
 0x2f7   : > { %2515 = vst [vmem:[#allocation2 + $0x48] sm:$0xff] %v2483_v18  ;;  %v2058_v18 = vld [vmem:[%s5128_s24 + $0xdc] sm:$0xff] }
 0x2f8   : > { %3084 = vmatpush.msrb.mxu0 %v4595_v37  ;;  %3149 = vmatpush.msrb.mxu1 %v4596_v42  ;;  %v1993_v37 = vadd.f32 %v6241_v56, %v1550_v51  ;;  %v1552_v56 = vadd.f32 %v5921_v62, %v5525_v28  ;;  %v1555_v62 = vadd.f32 %v5933_v53, %v5543_v45  ;;  %v7620_v53 = vld [vmem:[#allocation40_spill] sm:$0xff] }
 0x2f9   : > { %v1556_v45 = vadd.f32 %v5941_v60, %v5551_v58  ;;  %v7621_v58 = vld [vmem:[#allocation10_spill] sm:$0xff] }
 0x2fa   : > { %v2231_v22 = vpop.f32.mrf.mxu0  ;;  %v2344_v20 = vpop.f32.mrf.mxu1  ;;  %3085 = vmatpush.msrb.mxu0 %v4593_v57  ;;  %3150 = vmatpush.msrb.mxu1 %v4594_v30  ;;  %v2061_v30 = vld [vmem:[%s5128_s24 + $0xf4] sm:$0xff] }
 0x2fb   : > { %v2430_v48 = vadd.f32 %v2231_v22, %v1987_v34  ;;  %v2431_v49 = vadd.f32 %v2344_v20, %v1988_v39  ;;  %v1548_v34 = vadd.f32 %v5901_v27, %v5505_v4  ;;  %v1549_v39 = vadd.f32 %v5903_v35, %v5507_v5  ;;  %v6343_v22 = vpop.f32.mrf.mxu2  ;;  %v6345_v20 = vpop.f32.mrf.mxu3  ;;  %v4587_v5 = vld [vmem:[%s7542_s3 + $0x220] sm:$0xff]  ;;  %v4588_v35 = vld [vmem:[%s7542_s3 + $0x228] sm:$0xff] }
 0x2fc   : > { %v2719_v8 = vld [vmem:[#allocation3 + $0x11] sm:$0xff]  ;;  %3086 = vmatpush.msrb.mxu0 %v4591_v3  ;;  %3151 = vmatpush.msrb.mxu1 %v4592_v32 }
 0x2fd   : > { %v2484_v7 = vmax.f32 %v2430_v48, %v2431_v49  ;;  %4513 = vmatmul.msk.f32.gmra.mxu0 %vm500_vm0, %v2057_v23  ;;  %4545 = vmatmul.msk.f32.gmra.mxu1 %vm500_vm0, %v2057_v23  ;;  %v4589_v23 = vld [vmem:[%s7542_s3 + $0x230] sm:$0xff]  ;;  %v1991_v4 = vadd.f32 %v6222_v61, %v1548_v34  ;;  %v1992_v27 = vadd.f32 %v6224_v54, %v1549_v39  ;;  %v2059_v49 = vld [vmem:[%s5128_s24 + $0xe4] sm:$0xff]  ;;  %v4586_v54 = vld [vmem:[%s7542_s3 + $0x218] sm:$0xff] }
 0x2fe   : > { %v2546_v12 = vld [vmem:[#allocation2 + $0x40] ss:$2 sm:$0xff]  ;;  %v2578_v46 = vld [vmem:[#allocation2 + $0x41] ss:$2 sm:$0xff]  ;;  %2788 = vmatmul.f32.gmra.mxu2 %v2719_v8  ;;  %2853 = vmatmul.f32.gmra.mxu3 %v2719_v8  ;;  %v4585_v61 = vld [vmem:[%s7542_s3 + $0x210] sm:$0xff] }
 0x2ff   : > { %2516 = vst [vmem:[#allocation2 + $0x50] sm:$0xff] %v2484_v7  ;;  %v2605_v0 = vmax.f32 %v2546_v12, %v2578_v46  ;;  %3087 = vmatpush.msrb.mxu0 %v4589_v23  ;;  %3152 = vmatpush.msrb.mxu1 %v4590_v26  ;;  %v4583_v12 = vld [vmem:[%s7542_s3 + $0x200] sm:$0xff]  ;;  %v1998_v26 = vadd.f32 %v6301_v9, %v1555_v62 }
 0x300   : > { %v1999_v9 = vadd.f32 %v6343_v22, %v1556_v45  ;;  %v7624_v22 = vld [vmem:[#allocation42_spill] sm:$0xff] }
 0x301   : > { %v2625_v13 = vadd.f32 %v6171_v38, %v2605_v0  ;;  %3088 = vmatpush.msrb.mxu0 %v4587_v5  ;;  %3153 = vmatpush.msrb.mxu1 %v4588_v35  ;;  %v1551_v0 = vadd.f32 %v5913_v41, %v5517_v15  ;;  %v2060_v15 = vld [vmem:[%s5128_s24 + $0xec] sm:$0xff]  ;;  %v2062_v35 = vld [vmem:[%s5128_s24 + $0xfc] sm:$0xf]  ;;  %s380_s24 = scalar_lea.vmem [#allocation5], %s4132_s14 }
 0x302   : > { %v2234_v1 = vpop.f32.mrf.mxu0  ;;  %v2347_v33 = vpop.f32.mrf.mxu1  ;;  %s4066_s12 = sshll.u32 %s380_s24, 4  ;;  %s4067_s12 = int_to_ptr.vmem [resolvable:$true] %s4066_s12 }
 0x303   : > { %v2432_v50 = vadd.f32 %v2234_v1, %v1989_v47  ;;  %v2433_v24 = vadd.f32 %v2347_v33, %v1990_v43  ;;  %v2641_v25 = vmax.f32 %v2625_v13, 0.0  ;;  %3089 = vmatpush.msrb.mxu0 %v4585_v61  ;;  %3154 = vmatpush.msrb.mxu1 %v4586_v54  ;;  %v1994_v42 = vadd.f32 %v6243_v19, %v1551_v0  ;;  %v6382_v47 = vpop.f32.mrf.mxu2  ;;  %v6384_v43 = vpop.f32.mrf.mxu3  ;;  %v7623_v0 = vld [vmem:[#allocation11_spill] sm:$0xff] }
 0x304   : > { %v1553_v19 = vadd.f32 %v5923_v17, %v5527_v29  ;;  %v1554_v17 = vadd.f32 %v5931_v11, %v5541_v44 }
 0x305   : > { %v2485_v40 = vmax.f32 %v2432_v50, %v2433_v24  ;;  %4514 = vmatmul.msk.f32.gmra.mxu0 %vm500_vm0, %v2058_v18  ;;  %4546 = vmatmul.msk.f32.gmra.mxu1 %vm500_vm0, %v2058_v18  ;;  %2657 = vst [vmem:[#allocation3 + $0x20] sm:$0xff] %v2641_v25  ;;  %v1995_v50 = vadd.f32 %v6262_v36, %v1552_v56 }
 0x306   : > { %3090 = vmatpush.msrb.mxu0 %v4583_v12  ;;  %3155 = vmatpush.msrb.mxu1 %v4584_v6  ;;  %v1996_v24 = vadd.f32 %v6264_v2, %v1553_v19  ;;  %v1997_v2 = vadd.f32 %v6299_v55, %v1554_v17  ;;  %v1557_v55 = vadd.f32 %v7620_v53, %v5553_v59  ;;  %v7622_v59 = vld [vmem:[#allocation41_spill] sm:$0xff] }
 0x307   : > { %2517 = vst [vmem:[#allocation2 + $0x58] sm:$0xff] %v2485_v40  ;;  %v1558_v60 = vadd.f32 %v7622_v59, %v7621_v58  ;;  %v2714_v53 = vld [vmem:[%s7542_s3 + $0xe8] sm:$0xff] }
 0x30a   : > { %v2237_v16 = vpop.f32.mrf.mxu0  ;;  %v2350_v48 = vpop.f32.mrf.mxu1 }
 0x30b   : > { %v2434_v8 = vadd.f32 %v2237_v16, %v1991_v4  ;;  %v2435_v52 = vadd.f32 %v2350_v48, %v1992_v27  ;;  %v6397_v40 = vpop.f32.mrf.mxu2  ;;  %v6399_v3 = vpop.f32.mrf.mxu3 }
 0x30c   : > { %v2720_v21 = vld [vmem:[#allocation3 + $0x19] sm:$0xff] }
 0x30d   : > { %v2486_v7 = vmax.f32 %v2434_v8, %v2435_v52  ;;  %4515 = vmatmul.msk.f32.gmra.mxu0 %vm500_vm0, %v2059_v49  ;;  %4547 = vmatmul.msk.f32.gmra.mxu1 %vm500_vm0, %v2059_v49  ;;  %v2000_v52 = vadd.f32 %v6345_v20, %v1557_v55  ;;  %v2711_v55 = vld [vmem:[%s7542_s3 + $0xd0] sm:$0xff]  ;;  %v3029_v59 = vld [vmem:[#allocation3 + $0x1a] sm:$0xff] }
 0x30e   : > { %v2548_v46 = vld [vmem:[#allocation2 + $0x50] ss:$2 sm:$0xff]  ;;  %v2580_v31 = vld [vmem:[#allocation2 + $0x51] ss:$2 sm:$0xff]  ;;  %2791 = vmatmul.f32.gmra.mxu2 %v2720_v21  ;;  %2856 = vmatmul.f32.gmra.mxu3 %v2720_v21 }
 0x30f   : > { %2518 = vst [vmem:[#allocation2 + $0x60] sm:$0xff] %v2486_v7  ;;  %v2606_v63 = vmax.f32 %v2548_v46, %v2580_v31  ;;  %v3026_v31 = vld [vmem:[#allocation3 + $0x2] sm:$0xff] }
 0x311   : > { %v2626_v13 = vadd.f32 %v6171_v38, %v2606_v63  ;;  %v1559_v63 = vadd.f32 %v7624_v22, %v7623_v0  ;;  %v7635_v0 = vld [vmem:[#allocation17_spill] sm:$0xff]  ;;  %v7636_v22 = vld [vmem:[#allocation48_spill] sm:$0xff] }
 0x312   : > { %v2240_v14 = vpop.f32.mrf.mxu0  ;;  %v2353_v10 = vpop.f32.mrf.mxu1 }
 0x313   : > { %v2436_v41 = vadd.f32 %v2240_v14, %v1993_v37  ;;  %v2437_v1 = vadd.f32 %v2353_v10, %v1994_v42  ;;  %v2642_v33 = vmax.f32 %v2626_v13, 0.0  ;;  %v6411_v8 = vpop.f32.mrf.mxu2  ;;  %v6413_v44 = vpop.f32.mrf.mxu3  ;;  %v2715_v13 = vld [vmem:[%s7542_s3 + $0xf0] sm:$0xff]  ;;  %v2716_v14 = vld [vmem:[%s7542_s3 + $0xf8] sm:$0xff]  ;;  %v2001_v10 = vadd.f32 %v6382_v47, %v1558_v60  ;;  %v7627_v47 = vld [vmem:[#allocation13_spill] sm:$0xff] }
 0x314   : > { %2896 = vmatpush.msrb.mxu2 %v2715_v13  ;;  %2961 = vmatpush.msrb.mxu3 %v2716_v14 }
 0x315   : > { %v2487_v18 = vmax.f32 %v2436_v41, %v2437_v1  ;;  %4516 = vmatmul.msk.f32.gmra.mxu0 %vm500_vm0, %v2060_v15  ;;  %4548 = vmatmul.msk.f32.gmra.mxu1 %vm500_vm0, %v2060_v15  ;;  %2658 = vst [vmem:[#allocation3 + $0x28] sm:$0xff] %v2642_v33  ;;  %v2002_v15 = vadd.f32 %v6384_v43, %v1559_v63 }
 0x316   : > { %2962 = vmatpush.msrb.mxu3 %v2714_v53  ;;  %v1565_v63 = vadd.f32 %v7636_v22, %v7635_v0  ;;  %v7648_v0 = vld [vmem:[#allocation54_spill] sm:$0xff] }
 0x317   : > { %2519 = vst [vmem:[#allocation2 + $0x68] sm:$0xff] %v2487_v18 }
 0x31a   : > { %v2243_v25 = vpop.f32.mrf.mxu0  ;;  %v2356_v57 = vpop.f32.mrf.mxu1 }
 0x31b   : > { %v2438_v32 = vadd.f32 %v2243_v25, %v1995_v50  ;;  %v2439_v34 = vadd.f32 %v2356_v57, %v1996_v24  ;;  %v6427_v20 = vpop.f32.mrf.mxu2  ;;  %v6429_v37 = vpop.f32.mrf.mxu3  ;;  %v3027_v24 = vld [vmem:[#allocation3 + $0xa] sm:$0xff]  ;;  %v7625_v25 = vld [vmem:[#allocation12_spill] sm:$0xff]  ;;  %v7626_v57 = vld [vmem:[#allocation43_spill] sm:$0xff] }
 0x31c   : > { %v2721_v39 = vld [vmem:[#allocation3 + $0x21] sm:$0xff]  ;;  %v2008_v13 = vadd.f32 %v6429_v37, %v1565_v63  ;;  %v7637_v37 = vld [vmem:[#allocation18_spill] sm:$0xff] }
 0x31d   : > { %v2488_v23 = vmax.f32 %v2438_v32, %v2439_v34  ;;  %4517 = vmatmul.msk.f32.gmra.mxu0 %vm500_vm0, %v2061_v30  ;;  %4549 = vmatmul.msk.f32.gmra.mxu1 %vm500_vm0, %v2061_v30  ;;  %v1560_v30 = vadd.f32 %v7626_v57, %v7625_v25  ;;  %v7628_v32 = vld [vmem:[#allocation44_spill] sm:$0xff]  ;;  %v7638_v57 = vld [vmem:[#allocation49_spill] sm:$0xff] }
 0x31e   : > { %v2550_v28 = vld [vmem:[#allocation2 + $0x60] ss:$2 sm:$0xff]  ;;  %v2582_v29 = vld [vmem:[#allocation2 + $0x61] ss:$2 sm:$0xff]  ;;  %2794 = vmatmul.f32.gmra.mxu2 %v2721_v39  ;;  %2859 = vmatmul.f32.gmra.mxu3 %v2721_v39  ;;  %v1561_v43 = vadd.f32 %v7628_v32, %v7627_v47  ;;  %v7639_v47 = vld [vmem:[#allocation19_spill] sm:$0xff] }
 0x31f   : > { %2520 = vst [vmem:[#allocation2 + $0x70] sm:$0xff] %v2488_v23  ;;  %v2607_v36 = vmax.f32 %v2550_v28, %v2582_v29  ;;  %v2003_v34 = vadd.f32 %v6397_v40, %v1560_v30  ;;  %v2713_v40 = vld [vmem:[%s7542_s3 + $0xe0] sm:$0xff]  ;;  %v1566_v30 = vadd.f32 %v7638_v57, %v7637_v37  ;;  %v7640_v32 = vld [vmem:[#allocation50_spill] sm:$0xff] }
 0x320   : > { %v2004_v39 = vadd.f32 %v6399_v3, %v1561_v43  ;;  %v7629_v3 = vld [vmem:[#allocation14_spill] sm:$0xff]  ;;  %2897 = vmatpush.msrb.mxu2 %v2713_v40  ;;  %v1567_v43 = vadd.f32 %v7640_v32, %v7639_v47  ;;  %v7651_v32 = vld [vmem:[#allocation25_spill] sm:$0xff] }
 0x321   : > { %v2627_v4 = vadd.f32 %v6171_v38, %v2607_v36 }
 0x322   : > { %v2246_v27 = vpop.f32.mrf.mxu0  ;;  %v2359_v5 = vpop.f32.mrf.mxu1  ;;  %2898 = vmatpush.msrb.mxu2 %v2711_v55 }
 0x323   : > { %v2440_v16 = vadd.f32 %v2246_v27, %v1997_v2  ;;  %v2441_v48 = vadd.f32 %v2359_v5, %v1998_v26  ;;  %v2643_v49 = vmax.f32 %v2627_v4, 0.0  ;;  %v6449_v23 = vpop.f32.mrf.mxu2  ;;  %v6451_v28 = vpop.f32.mrf.mxu3  ;;  %v3028_v4 = vld [vmem:[#allocation3 + $0x12] sm:$0xff] }
 0x325   : > { %v2489_v11 = vmax.f32 %v2440_v16, %v2441_v48  ;;  %4518 = vmatmul.msk.f32.gmra.mxu0 %vm500_vm0, %v2062_v35  ;;  %4550 = vmatmul.msk.f32.gmra.mxu1 %vm500_vm0, %v2062_v35  ;;  %2659 = vst [vmem:[#allocation3 + $0x30] sm:$0xff] %v2643_v49  ;;  %v7630_v35 = vld [vmem:[#allocation45_spill] sm:$0xff]  ;;  %v7631_v48 = vld [vmem:[#allocation15_spill] sm:$0xff]  ;;  %v7632_v49 = vld [vmem:[#allocation46_spill] sm:$0xff] }
 0x326   : > { %v1562_v16 = vadd.f32 %v7630_v35, %v7629_v3 }
 0x327   : > { %2521 = vst [vmem:[#allocation2 + $0x78] sm:$0xff] %v2489_v11  ;;  %v1563_v11 = vadd.f32 %v7632_v49, %v7631_v48  ;;  %v7644_v49 = vld [vmem:[#allocation52_spill] sm:$0xff] }
 0x32a   : > { %v2249_v21 = vpop.f32.mrf.mxu0  ;;  %v2362_v61 = vpop.f32.mrf.mxu1 }
 0x32b   : > { %v2442_v54 = vadd.f32 %v2249_v21, %v1999_v9  ;;  %v2443_v7 = vadd.f32 %v2362_v61, %v2000_v52  ;;  %v2712_v9 = vld [vmem:[%s7542_s3 + $0xd8] sm:$0xff]  ;;  %v2005_v52 = vadd.f32 %v6411_v8, %v1562_v16  ;;  %v2006_v21 = vadd.f32 %v6413_v44, %v1563_v11  ;;  %v7633_v8 = vld [vmem:[#allocation16_spill] sm:$0xff] }
 0x32c   : > { %v2722_v12 = vld [vmem:[#allocation3 + $0x29] sm:$0xff]  ;;  %2963 = vmatpush.msrb.mxu3 %v2712_v9  ;;  %v7634_v44 = vld [vmem:[#allocation47_spill] sm:$0xff]  ;;  %v7641_v16 = vld [vmem:[#allocation20_spill] sm:$0xff] }
 0x32d   : > { %v2490_v46 = vmax.f32 %v2442_v54, %v2443_v7  ;;  %2797 = vmatmul.f32.gmra.mxu2 %v2722_v12  ;;  %2862 = vmatmul.f32.gmra.mxu3 %v2722_v12  ;;  %v1824_v12 = vpop.f32.mrf.mxu2  ;;  %v1564_v60 = vadd.f32 %v7634_v44, %v7633_v8  ;;  %v3031_v35 = vld [vmem:[#allocation3 + $0x2a] sm:$0xff]  ;;  %v2705_v8 = vld [vmem:[%s7542_s3 + $0xa0] sm:$0xff] }
 0x32e   : > { %v2552_v6 = vld [vmem:[#allocation2 + $0x70] ss:$2 sm:$0xff]  ;;  %v2584_v51 = vld [vmem:[#allocation2 + $0x71] ss:$2 sm:$0xff]  ;;  %3091 = vmatmul.f32.vlgmr.msrb.gmra.mxu0 %v3026_v31  ;;  %3156 = vmatmul.f32.vlgmr.msrb.gmra.mxu1 %v3026_v31 }
 0x32f   : > { %2522 = vst [vmem:[#allocation2 + $0x80] sm:$0xff] %v2490_v46  ;;  %v2608_v42 = vmax.f32 %v2552_v6, %v2584_v51  ;;  %v1937_v46 = vpop.f32.mrf.mxu3  ;;  %v7645_v44 = vld [vmem:[#allocation22_spill] sm:$0xff] }
 0x331   : > { %v2628_v41 = vadd.f32 %v6171_v38, %v2608_v42  ;;  %v2007_v42 = vadd.f32 %v6427_v20, %v1564_v60  ;;  %v2709_v20 = vld [vmem:[%s7542_s3 + $0xc0] sm:$0xff]  ;;  %v7647_v60 = vld [vmem:[#allocation23_spill] sm:$0xff] }
 0x332   : > { %v2252_v1 = vpop.f32.mrf.mxu0  ;;  %v2365_v33 = vpop.f32.mrf.mxu1  ;;  %2899 = vmatpush.msrb.mxu2 %v2709_v20  ;;  %v1571_v22 = vadd.f32 %v7648_v0, %v7647_v60  ;;  %v7657_v0 = vld [vmem:[#allocation28_spill] sm:$0xff] }
 0x333   : > { %v2444_v18 = vadd.f32 %v2252_v1, %v2001_v10  ;;  %v2445_v56 = vadd.f32 %v2365_v33, %v2002_v15  ;;  %v6440_v19 = vmax.f32 %v2628_v41, 0.0 }
 0x335   : > { %v2491_v50 = vmax.f32 %v2444_v18, %v2445_v56  ;;  %2660 = vst [vmem:[#allocation3 + $0x38] sm:$0xff] %v6440_v19  ;;  %v6481_v33 = vpop.f32.mrf.mxu2 }
 0x336   : > { %3094 = vmatmul.f32.gmra.mxu0 %v3027_v24  ;;  %3159 = vmatmul.f32.gmra.mxu1 %v3027_v24 }
 0x337   : > { %2523 = vst [vmem:[#allocation2 + $0x88] sm:$0xff] %v2491_v50  ;;  %v6483_v18 = vpop.f32.mrf.mxu3  ;;  %v3030_v50 = vld [vmem:[#allocation3 + $0x22] sm:$0xff] }
 0x33a   : > { %v2255_v29 = vpop.f32.mrf.mxu0  ;;  %v2368_v17 = vpop.f32.mrf.mxu1 }
 0x33b   : > { %v2446_v62 = vadd.f32 %v2255_v29, %v2003_v34  ;;  %v2447_v36 = vadd.f32 %v2368_v17, %v2004_v39  ;;  %v2710_v39 = vld [vmem:[%s7542_s3 + $0xc8] sm:$0xff]  ;;  %v2707_v29 = vld [vmem:[%s7542_s3 + $0xb0] sm:$0xff]  ;;  %v2708_v17 = vld [vmem:[%s7542_s3 + $0xb8] sm:$0xff] }
 0x33c   : > { %v2723_v2 = vld [vmem:[#allocation3 + $0x31] sm:$0xff]  ;;  %2964 = vmatpush.msrb.mxu3 %v2710_v39  ;;  %2900 = vmatpush.msrb.mxu2 %v2707_v29 }
 0x33d   : > { %v2492_v26 = vmax.f32 %v2446_v62, %v2447_v36  ;;  %2800 = vmatmul.f32.gmra.mxu2 %v2723_v2  ;;  %2865 = vmatmul.f32.gmra.mxu3 %v2723_v2  ;;  %v2009_v62 = vadd.f32 %v6449_v23, %v1566_v30  ;;  %v2010_v36 = vadd.f32 %v6451_v28, %v1567_v43  ;;  %v7642_v23 = vld [vmem:[#allocation51_spill] sm:$0xff]  ;;  %v7643_v28 = vld [vmem:[#allocation21_spill] sm:$0xff]  ;;  %v7652_v43 = vld [vmem:[#allocation56_spill] sm:$0xff] }
 0x33e   : > { %v2554_v27 = vld [vmem:[#allocation2 + $0x80] ss:$2 sm:$0xff]  ;;  %v2586_v5 = vld [vmem:[#allocation2 + $0x81] ss:$2 sm:$0xff]  ;;  %3097 = vmatmul.f32.gmra.mxu0 %v3028_v4  ;;  %3162 = vmatmul.f32.gmra.mxu1 %v3028_v4  ;;  %v1568_v48 = vadd.f32 %v7642_v23, %v7641_v16  ;;  %v1569_v11 = vadd.f32 %v7644_v49, %v7643_v28 }
 0x33f   : > { %2524 = vst [vmem:[#allocation2 + $0x90] sm:$0xff] %v2492_v26  ;;  %v2609_v45 = vmax.f32 %v2554_v27, %v2586_v5  ;;  %2965 = vmatpush.msrb.mxu3 %v2708_v17  ;;  %v1943_v53 = vpop.f32.mrf.mxu3  ;;  %2901 = vmatpush.msrb.mxu2 %v2705_v8  ;;  %v2701_v23 = vld [vmem:[%s7542_s3 + $0x80] sm:$0xff]  ;;  %v7654_v28 = vld [vmem:[#allocation57_spill] sm:$0xff] }
 0x340   : > { %v2011_v55 = vadd.f32 %v1824_v12, %v1568_v48  ;;  %v2012_v9 = vadd.f32 %v1937_v46, %v1569_v11  ;;  %v7646_v12 = vld [vmem:[#allocation53_spill] sm:$0xff]  ;;  %v7653_v48 = vld [vmem:[#allocation26_spill] sm:$0xff]  ;;  %v7655_v11 = vld [vmem:[#allocation27_spill] sm:$0xff] }
 0x341   : > { %v2629_v61 = vadd.f32 %v6171_v38, %v2609_v45  ;;  %v1830_v45 = vpop.f32.mrf.mxu2  ;;  %v1570_v46 = vadd.f32 %v7646_v12, %v7645_v44  ;;  %v1574_v49 = vadd.f32 %v7654_v28, %v7653_v48 }
 0x342   : > { %v2258_v54 = vpop.f32.mrf.mxu0  ;;  %v2371_v7 = vpop.f32.mrf.mxu1 }
 0x343   : > { %v2448_v31 = vadd.f32 %v2258_v54, %v2005_v52  ;;  %v2449_v6 = vadd.f32 %v2371_v7, %v2006_v21  ;;  %v6472_v51 = vmax.f32 %v2629_v61, 0.0 }
 0x345   : > { %v2493_v58 = vmax.f32 %v2448_v31, %v2449_v6  ;;  %2661 = vst [vmem:[#allocation3 + $0x40] sm:$0xff] %v6472_v51  ;;  %v3032_v6 = vld [vmem:[#allocation3 + $0x32] sm:$0xff] }
 0x346   : > { %3100 = vmatmul.f32.gmra.mxu0 %v3029_v59  ;;  %3165 = vmatmul.f32.gmra.mxu1 %v3029_v59 }
 0x347   : > { %2525 = vst [vmem:[#allocation2 + $0x98] sm:$0xff] %v2493_v58 }
 0x34a   : > { %v2261_v14 = vpop.f32.mrf.mxu0  ;;  %v2374_v10 = vpop.f32.mrf.mxu1 }
 0x34b   : > { %v2450_v15 = vadd.f32 %v2261_v14, %v2007_v42  ;;  %v2451_v41 = vadd.f32 %v2374_v10, %v2008_v13  ;;  %v2706_v42 = vld [vmem:[%s7542_s3 + $0xa8] sm:$0xff]  ;;  %v2703_v13 = vld [vmem:[%s7542_s3 + $0x90] sm:$0xff]  ;;  %v2704_v14 = vld [vmem:[%s7542_s3 + $0x98] sm:$0xff]  ;;  %v2013_v10 = vadd.f32 %v6481_v33, %v1570_v46 }
 0x34c   : > { %v2724_v1 = vld [vmem:[#allocation3 + $0x39] sm:$0xff]  ;;  %2966 = vmatpush.msrb.mxu3 %v2706_v42  ;;  %2902 = vmatpush.msrb.mxu2 %v2703_v13 }
 0x34d   : > { %v2494_v56 = vmax.f32 %v2450_v15, %v2451_v41  ;;  %2803 = vmatmul.f32.gmra.mxu2 %v2724_v1  ;;  %2868 = vmatmul.f32.gmra.mxu3 %v2724_v1  ;;  %v2014_v15 = vadd.f32 %v6483_v18, %v1571_v22  ;;  %v1833_v41 = vpop.f32.mrf.mxu2  ;;  %v1946_v1 = vpop.f32.mrf.mxu3  ;;  %v3033_v30 = vld [vmem:[#allocation3 + $0x3a] sm:$0xff] }
 0x34e   : > { %v2556_v24 = vld [vmem:[#allocation2 + $0x90] ss:$2 sm:$0xff]  ;;  %v2588_v25 = vld [vmem:[#allocation2 + $0x91] ss:$2 sm:$0xff]  ;;  %3103 = vmatmul.f32.gmra.mxu0 %v3030_v50  ;;  %3168 = vmatmul.f32.gmra.mxu1 %v3030_v50  ;;  %v7649_v33 = vld [vmem:[#allocation24_spill] sm:$0xff] }
 0x34f   : > { %2526 = vst [vmem:[#allocation2 + $0xa0] sm:$0xff] %v2494_v56  ;;  %v2610_v34 = vmax.f32 %v2556_v24, %v2588_v25  ;;  %2967 = vmatpush.msrb.mxu3 %v2704_v14  ;;  %v7650_v18 = vld [vmem:[#allocation55_spill] sm:$0xff]  ;;  %2903 = vmatpush.msrb.mxu2 %v2701_v23  ;;  %v7660_v42 = vld [vmem:[#allocation60_spill] sm:$0xff] }
 0x350   : > { %v1572_v47 = vadd.f32 %v7650_v18, %v7649_v33  ;;  %v7658_v22 = vld [vmem:[#allocation59_spill] sm:$0xff]  ;;  %v7661_v33 = vld [vmem:[#allocation30_spill] sm:$0xff]  ;;  %v7662_v18 = vld [vmem:[#allocation61_spill] sm:$0xff] }
 0x351   : > { %v2630_v2 = vadd.f32 %v6171_v38, %v2610_v34  ;;  %v1573_v34 = vadd.f32 %v7652_v43, %v7651_v32  ;;  %v7663_v32 = vld [vmem:[#allocation31_spill] sm:$0xff]  ;;  %v7664_v43 = vld [vmem:[#allocation62_spill] sm:$0xff] }
 0x352   : > { %v2264_v26 = vpop.f32.mrf.mxu0  ;;  %v2377_v4 = vpop.f32.mrf.mxu1  ;;  %v2015_v39 = vadd.f32 %v1830_v45, %v1572_v47  ;;  %v7656_v45 = vld [vmem:[#allocation58_spill] sm:$0xff]  ;;  %v1578_v47 = vadd.f32 %v7662_v18, %v7661_v33 }
 0x353   : > { %v2452_v27 = vadd.f32 %v2264_v26, %v2009_v62  ;;  %v2453_v5 = vadd.f32 %v2377_v4, %v2010_v36  ;;  %v6504_v40 = vmax.f32 %v2630_v2, 0.0  ;;  %v2016_v29 = vadd.f32 %v1943_v53, %v1573_v34 }
 0x354   : > { %v1575_v53 = vadd.f32 %v7656_v45, %v7655_v11  ;;  %v1579_v34 = vadd.f32 %v7664_v43, %v7663_v32  ;;  %v7666_v11 = vld [vmem:[#allocation63_spill] sm:$0xff] }
 0x355   : > { %v2495_v3 = vmax.f32 %v2452_v27, %v2453_v5  ;;  %2662 = vst [vmem:[#allocation3 + $0x48] sm:$0xff] %v6504_v40  ;;  %v1836_v36 = vpop.f32.mrf.mxu2  ;;  %v1949_v2 = vpop.f32.mrf.mxu3 }
 0x356   : > { %3106 = vmatmul.f32.gmra.mxu0 %v3031_v35  ;;  %3171 = vmatmul.f32.gmra.mxu1 %v3031_v35 }
 0x357   : > { %2527 = vst [vmem:[#allocation2 + $0xa8] sm:$0xff] %v2495_v3 }
 0x35a   : > { %v2267_v52 = vpop.f32.mrf.mxu0  ;;  %v2380_v21 = vpop.f32.mrf.mxu1 }
 0x35b   : > { %v2454_v61 = vadd.f32 %v2267_v52, %v2011_v55  ;;  %v2455_v54 = vadd.f32 %v2380_v21, %v2012_v9  ;;  %v2702_v9 = vld [vmem:[%s7542_s3 + $0x88] sm:$0xff]  ;;  %v2699_v52 = vld [vmem:[%s7542_s3 + $0x70] sm:$0xff]  ;;  %v2700_v21 = vld [vmem:[%s7542_s3 + $0x78] sm:$0xff] }
 0x35c   : > { %v2725_v7 = vld [vmem:[#allocation3 + $0x41] sm:$0xff]  ;;  %2968 = vmatpush.msrb.mxu3 %v2702_v9  ;;  %2904 = vmatpush.msrb.mxu2 %v2699_v52 }
 0x35d   : > { %v2496_v31 = vmax.f32 %v2454_v61, %v2455_v54  ;;  %2806 = vmatmul.f32.gmra.mxu2 %v2725_v7  ;;  %2871 = vmatmul.f32.gmra.mxu3 %v2725_v7  ;;  %v3034_v3 = vld [vmem:[#allocation3 + $0x42] sm:$0xff]  ;;  %v2017_v61 = vadd.f32 %v1833_v41, %v1574_v49  ;;  %v2018_v54 = vadd.f32 %v1946_v1, %v1575_v53  ;;  %v1839_v44 = vpop.f32.mrf.mxu2  ;;  %v1952_v12 = vpop.f32.mrf.mxu3 }
 0x35e   : > { %v2558_v58 = vld [vmem:[#allocation2 + $0xa0] ss:$2 sm:$0xff]  ;;  %v2590_v59 = vld [vmem:[#allocation2 + $0xa1] ss:$2 sm:$0xff]  ;;  %3109 = vmatmul.f32.gmra.mxu0 %v3032_v6  ;;  %3174 = vmatmul.f32.gmra.mxu1 %v3032_v6 }
 0x35f   : > { %2528 = vst [vmem:[#allocation2 + $0xb0] sm:$0xff] %v2496_v31  ;;  %v2611_v63 = vmax.f32 %v2558_v58, %v2590_v59  ;;  %2969 = vmatpush.msrb.mxu3 %v2700_v21  ;;  %v7665_v49 = vld [vmem:[#allocation32_spill] sm:$0xff]  ;;  %v7667_v53 = vld [vmem:[#allocation33_spill] sm:$0xff] }
 0x360   : > { %v1580_v45 = vadd.f32 %v7666_v11, %v7665_v49  ;;  %v4670_v11 = vld [vmem:[%s7542_s3 + $0x4b8] sm:$0xff] }
 0x361   : > { %v2631_v56 = vadd.f32 %v6171_v38, %v2611_v63  ;;  %v1576_v63 = vadd.f32 %v7658_v22, %v7657_v0  ;;  %v2693_v0 = vld [vmem:[%s7542_s3 + $0x40] sm:$0xff]  ;;  %v7669_v22 = vld [vmem:[#allocation34_spill] sm:$0xff] }
 0x362   : > { %v2270_v50 = vpop.f32.mrf.mxu0  ;;  %v2383_v24 = vpop.f32.mrf.mxu1 }
 0x363   : > { %v2456_v25 = vadd.f32 %v2270_v50, %v2013_v10  ;;  %v2457_v20 = vadd.f32 %v2383_v24, %v2014_v15  ;;  %v6530_v37 = vmax.f32 %v2631_v56, 0.0  ;;  %v2019_v14 = vadd.f32 %v1836_v36, %v1576_v63  ;;  %v2695_v36 = vld [vmem:[%s7542_s3 + $0x50] sm:$0xff]  ;;  %v7670_v63 = vld [vmem:[#allocation65_spill] sm:$0xff] }
 0x365   : > { %v2497_v57 = vmax.f32 %v2456_v25, %v2457_v20  ;;  %2663 = vst [vmem:[#allocation3 + $0x50] sm:$0xff] %v6530_v37 }
 0x366   : > { %3112 = vmatmul.f32.gmra.mxu0 %v3033_v30  ;;  %3177 = vmatmul.f32.gmra.mxu1 %v3033_v30  ;;  %v2697_v30 = vld [vmem:[%s7542_s3 + $0x60] sm:$0xff] }
 0x367   : > { %2529 = vst [vmem:[#allocation2 + $0xb8] sm:$0xff] %v2497_v57  ;;  %2905 = vmatpush.msrb.mxu2 %v2697_v30  ;;  %v4676_v30 = vld [vmem:[%s7542_s3 + $0x4e8] sm:$0xff] }
 0x369   : > { %2906 = vmatpush.msrb.mxu2 %v2695_v36  ;;  %v4671_v36 = vld [vmem:[%s7542_s3 + $0x4c0] sm:$0xff] }
 0x36a   : > { %v2273_v17 = vpop.f32.mrf.mxu0  ;;  %v2386_v62 = vpop.f32.mrf.mxu1 }
 0x36b   : > { %v2458_v26 = vadd.f32 %v2273_v17, %v2015_v39  ;;  %v2459_v4 = vadd.f32 %v2386_v62, %v2016_v29  ;;  %v1842_v39 = vpop.f32.mrf.mxu2  ;;  %v1955_v29 = vpop.f32.mrf.mxu3  ;;  %v2698_v62 = vld [vmem:[%s7542_s3 + $0x68] sm:$0xff]  ;;  %2907 = vmatpush.msrb.mxu2 %v2693_v0 }
 0x36c   : > { %v2726_v27 = vld [vmem:[#allocation3 + $0x49] sm:$0xff]  ;;  %2970 = vmatpush.msrb.mxu3 %v2698_v62  ;;  %v2023_v52 = vadd.f32 %v1842_v39, %v1580_v45  ;;  %v4674_v39 = vld [vmem:[%s7542_s3 + $0x4d8] sm:$0xff]  ;;  %v4667_v45 = vld [vmem:[%s7542_s3 + $0x4a0] sm:$0xff] }
 0x36d   : > { %v2498_v5 = vmax.f32 %v2458_v26, %v2459_v4  ;;  %2809 = vmatmul.f32.gmra.mxu2 %v2726_v27  ;;  %2874 = vmatmul.f32.gmra.mxu3 %v2726_v27  ;;  %v3035_v60 = vld [vmem:[#allocation3 + $0x4a] sm:$0xff]  ;;  %v2021_v26 = vadd.f32 %v1839_v44, %v1578_v47  ;;  %v2022_v4 = vadd.f32 %v1952_v12, %v1579_v34  ;;  %v6580_v27 = vld [vmem:[%s7541_s2] ss:$0 sm:$0xff] }
 0x36e   : > { %v2560_v35 = vld [vmem:[#allocation2 + $0xb0] ss:$2 sm:$0xff]  ;;  %v2592_v16 = vld [vmem:[#allocation2 + $0xb1] ss:$2 sm:$0xff]  ;;  %3115 = vmatmul.f32.gmra.mxu0 %v3034_v3  ;;  %3180 = vmatmul.f32.gmra.mxu1 %v3034_v3 }
 0x36f   : > { %2530 = vst [vmem:[#allocation2 + $0xc0] sm:$0xff] %v2498_v5  ;;  %v2612_v55 = vmax.f32 %v2560_v35, %v2592_v16  ;;  %v4673_v47 = vld [vmem:[%s7542_s3 + $0x4d0] sm:$0xff] }
 0x371   : > { %v2632_v7 = vadd.f32 %v6171_v38, %v2612_v55  ;;  %v7659_v38 = vld [vmem:[#allocation29_spill] sm:$0xff]  ;;  %v7668_v55 = vld [vmem:[#allocation64_spill] sm:$0xff] }
 0x372   : > { %v2276_v31 = vpop.f32.mrf.mxu0  ;;  %v2389_v6 = vpop.f32.mrf.mxu1  ;;  %v1577_v13 = vadd.f32 %v7660_v42, %v7659_v38  ;;  %v1581_v9 = vadd.f32 %v7668_v55, %v7667_v53  ;;  %v1582_v38 = vadd.f32 %v7670_v63, %v7669_v22  ;;  %v7671_v42 = vld [vmem:[#allocation35_spill] sm:$0xff] }
 0x373   : > { %v2460_v58 = vadd.f32 %v2276_v31, %v2017_v61  ;;  %v2461_v59 = vadd.f32 %v2389_v6, %v2018_v54  ;;  %v6554_v8 = vmax.f32 %v2632_v7, 0.0  ;;  %v1845_v61 = vpop.f32.mrf.mxu2  ;;  %v1958_v54 = vpop.f32.mrf.mxu3 }
 0x374   : > { %v2020_v10 = vadd.f32 %v1949_v2, %v1577_v13  ;;  %v2696_v2 = vld [vmem:[%s7542_s3 + $0x58] sm:$0xff]  ;;  %v2024_v21 = vadd.f32 %v1955_v29, %v1581_v9  ;;  %v7672_v13 = vld [vmem:[#allocation66_spill] sm:$0xff]  ;;  %v2689_v29 = vld [vmem:[%s7542_s3 + $0x20] sm:$0xff] }
 0x375   : > { %v2499_v46 = vmax.f32 %v2460_v58, %v2461_v59  ;;  %2664 = vst [vmem:[#allocation3 + $0x58] sm:$0xff] %v6554_v8  ;;  %2971 = vmatpush.msrb.mxu3 %v2696_v2  ;;  %v2690_v2 = vld [vmem:[%s7542_s3 + $0x28] sm:$0xff] }
 0x376   : > { %3118 = vmatmul.f32.gmra.mxu0 %v3035_v60  ;;  %3183 = vmatmul.f32.gmra.mxu1 %v3035_v60  ;;  %v4668_v9 = vld [vmem:[%s7542_s3 + $0x4a8] sm:$0xff] }
 0x377   : > { %2531 = vst [vmem:[#allocation2 + $0xc8] sm:$0xff] %v2499_v46 }
 0x37a   : > { %v2279_v15 = vpop.f32.mrf.mxu0  ;;  %v2392_v41 = vpop.f32.mrf.mxu1 }
 0x37b   : > { %v2462_v1 = vadd.f32 %v2279_v15, %v2019_v14  ;;  %v2463_v56 = vadd.f32 %v2392_v41, %v2020_v10  ;;  %v1583_v14 = vadd.f32 %v7672_v13, %v7671_v42  ;;  %v2694_v15 = vld [vmem:[%s7542_s3 + $0x48] sm:$0xff]  ;;  %v2691_v41 = vld [vmem:[%s7542_s3 + $0x30] sm:$0xff]  ;;  %v1961_v62 = vpop.f32.mrf.mxu3 }
 0x37c   : > { %v2727_v50 = vld [vmem:[#allocation3 + $0x51] sm:$0xff]  ;;  %2972 = vmatpush.msrb.mxu3 %v2694_v15  ;;  %2908 = vmatpush.msrb.mxu2 %v2691_v41  ;;  %v7678_v13 = vld [vmem:[#allocation69_spill] sm:$0xff] }
 0x37d   : > { %v3036_v24 = vld [vmem:[#allocation3 + $0x52] sm:$0xff]  ;;  %v2500_v25 = vmax.f32 %v2462_v1, %v2463_v56  ;;  %2812 = vmatmul.f32.gmra.mxu2 %v2727_v50  ;;  %2877 = vmatmul.f32.gmra.mxu3 %v2727_v50 }
 0x37e   : > { %v2562_v20 = vld [vmem:[#allocation2 + $0xc0] ss:$2 sm:$0xff]  ;;  %v2594_v57 = vld [vmem:[#allocation2 + $0xc1] ss:$2 sm:$0xff]  ;;  %3121 = vmatmul.f32.gmra.mxu0 %v3036_v24  ;;  %3186 = vmatmul.f32.gmra.mxu1 %v3036_v24  ;;  %v2692_v1 = vld [vmem:[%s7542_s3 + $0x38] sm:$0xff] }
 0x37f   : > { %2532 = vst [vmem:[#allocation2 + $0xd0] sm:$0xff] %v2500_v25  ;;  %v2613_v17 = vmax.f32 %v2562_v20, %v2594_v57  ;;  %v4677_v56 = vld [vmem:[%s7542_s3 + $0x4f0] sm:$0xff]  ;;  %v4678_v50 = vld [vmem:[%s7542_s3 + $0x4f8] sm:$0xff]  ;;  %v4675_v24 = vld [vmem:[%s7542_s3 + $0x4e0] sm:$0xff]  ;;  %v2025_v25 = vadd.f32 %v1845_v61, %v1582_v38  ;;  %v2026_v20 = vadd.f32 %v1958_v54, %v1583_v14  ;;  %2973 = vmatpush.msrb.mxu3 %v2692_v1 }
 0x380   : > { %3497 = vmatpush.msra.mxu0 %v4677_v56  ;;  %3562 = vmatpush.msra.mxu1 %v4678_v50  ;;  %v4664_v38 = vld [vmem:[%s7542_s3 + $0x488] sm:$0xff]  ;;  %v7677_v42 = vld [vmem:[#allocation38_spill] sm:$0xff]  ;;  %v4662_v50 = vld [vmem:[%s7542_s3 + $0x478] sm:$0xff] }
 0x381   : > { %v2633_v5 = vadd.f32 %v6580_v27, %v2613_v17  ;;  %v1848_v17 = vpop.f32.mrf.mxu2  ;;  %2909 = vmatpush.msrb.mxu2 %v2689_v29  ;;  %2974 = vmatpush.msrb.mxu3 %v2690_v2  ;;  %v1586_v14 = vadd.f32 %v7678_v13, %v7677_v42  ;;  %v7680_v15 = vld [vmem:[#allocation70_spill] sm:$0xff]  ;;  %v4658_v29 = vld [vmem:[%s7542_s3 + $0x458] sm:$0xff]  ;;  %v4655_v2 = vld [vmem:[%s7542_s3 + $0x440] sm:$0xff] }
 0x382   : > { %v2282_v3 = vpop.f32.mrf.mxu0  ;;  %v2395_v35 = vpop.f32.mrf.mxu1  ;;  %3498 = vmatpush.msra.mxu0 %v4675_v24  ;;  %3563 = vmatpush.msra.mxu1 %v4676_v30  ;;  %v4661_v56 = vld [vmem:[%s7542_s3 + $0x470] sm:$0xff] }
 0x383   : > { %v2464_v16 = vadd.f32 %v2282_v3, %v2021_v26  ;;  %v2465_v23 = vadd.f32 %v2395_v35, %v2022_v4  ;;  %v6583_v48 = vmax.f32 %v2633_v5, 0.0  ;;  %v4672_v4 = vld [vmem:[%s7542_s3 + $0x4c8] sm:$0xff]  ;;  %v4669_v5 = vld [vmem:[%s7542_s3 + $0x4b0] sm:$0xff]  ;;  %v7673_v3 = vld [vmem:[#allocation36_spill] sm:$0xff]  ;;  %v1964_v0 = vpop.f32.mrf.mxu3 }
 0x384   : > { %3499 = vmatpush.msra.mxu0 %v4673_v47  ;;  %3564 = vmatpush.msra.mxu1 %v4674_v39  ;;  %v7674_v35 = vld [vmem:[#allocation67_spill] sm:$0xff]  ;;  %v4657_v39 = vld [vmem:[%s7542_s3 + $0x450] sm:$0xff] }
 0x385   : > { %v2501_v28 = vmax.f32 %v2464_v16, %v2465_v23  ;;  %2665 = vst [vmem:[#allocation3 + $0x60] sm:$0xff] %v6583_v48  ;;  %v1584_v16 = vadd.f32 %v7674_v35, %v7673_v3  ;;  %v7675_v23 = vld [vmem:[#allocation37_spill] sm:$0xff]  ;;  %v4651_v3 = vld [vmem:[%s7542_s3 + $0x420] sm:$0xff] }
 0x386   : > { %3500 = vmatpush.msra.mxu0 %v4671_v36  ;;  %3565 = vmatpush.msra.mxu1 %v4672_v4  ;;  %v2686_v36 = vld [vmem:[%s7542_s3 + $0x8] sm:$0xff]  ;;  %v4653_v4 = vld [vmem:[%s7542_s3 + $0x430] sm:$0xff] }
 0x387   : > { %2533 = vst [vmem:[#allocation2 + $0xd8] sm:$0xff] %v2501_v28  ;;  %v7676_v28 = vld [vmem:[#allocation68_spill] sm:$0xff]  ;;  %v2027_v53 = vadd.f32 %v1848_v17, %v1584_v16  ;;  %v4652_v35 = vld [vmem:[%s7542_s3 + $0x428] sm:$0xff] }
 0x388   : > { %v1585_v49 = vadd.f32 %v7676_v28, %v7675_v23  ;;  %3501 = vmatpush.msra.mxu0 %v4669_v5  ;;  %3566 = vmatpush.msra.mxu1 %v4670_v11  ;;  %v4654_v5 = vld [vmem:[%s7542_s3 + $0x438] sm:$0xff]  ;;  %v4649_v28 = vld [vmem:[%s7542_s3 + $0x410] sm:$0xff] }
 0x389   : > { %v4645_v11 = vld [vmem:[%s7542_s3 + $0x3f0] sm:$0xff] }
 0x38a   : > { %v2285_v7 = vpop.f32.mrf.mxu0  ;;  %v2398_v31 = vpop.f32.mrf.mxu1  ;;  %v2028_v55 = vadd.f32 %v1961_v62, %v1585_v49  ;;  %3502 = vmatpush.msra.mxu0 %v4667_v45  ;;  %3567 = vmatpush.msra.mxu1 %v4668_v9  ;;  %v2685_v62 = vld [vmem:[%s7542_s3] sm:$0xff]  ;;  %v4650_v49 = vld [vmem:[%s7542_s3 + $0x418] sm:$0xff] }
 0x38b   : > { %v2466_v6 = vadd.f32 %v2285_v7, %v2023_v52  ;;  %v2467_v58 = vadd.f32 %v2398_v31, %v2024_v21  ;;  %v4665_v7 = vld [vmem:[%s7542_s3 + $0x490] sm:$0xff]  ;;  %v4646_v45 = vld [vmem:[%s7542_s3 + $0x3f8] sm:$0xff]  ;;  %v6769_v13 = vpop.f32.mrf.mxu3 }
 0x38c   : > { %v2728_v59 = vld [vmem:[#allocation3 + $0x59] sm:$0xff]  ;;  %3503 = vmatpush.msra.mxu0 %v4665_v7 }
 0x38d   : > { %v3037_v44 = vld [vmem:[#allocation3 + $0x5a] sm:$0xff]  ;;  %v2502_v12 = vmax.f32 %v2466_v6, %v2467_v58  ;;  %2815 = vmatmul.f32.gmra.mxu2 %v2728_v59  ;;  %2880 = vmatmul.f32.gmra.mxu3 %v2728_v59 }
 0x38e   : > { %v2564_v46 = vld [vmem:[#allocation2 + $0xd0] ss:$2 sm:$0xff]  ;;  %v2596_v60 = vld [vmem:[#allocation2 + $0xd1] ss:$2 sm:$0xff]  ;;  %3124 = vmatmul.f32.gmra.mxu0 %v3037_v44  ;;  %3189 = vmatmul.f32.gmra.mxu1 %v3037_v44  ;;  %v4663_v44 = vld [vmem:[%s7542_s3 + $0x480] sm:$0xff] }
 0x38f   : > { %2534 = vst [vmem:[#allocation2 + $0xe0] sm:$0xff] %v2502_v12  ;;  %v2614_v10 = vmax.f32 %v2564_v46, %v2596_v60  ;;  %v4666_v58 = vld [vmem:[%s7542_s3 + $0x498] sm:$0xff]  ;;  %v2687_v12 = vld [vmem:[%s7542_s3 + $0x10] sm:$0xff]  ;;  %v1851_v60 = vpop.f32.mrf.mxu2  ;;  %3504 = vmatpush.msra.mxu0 %v4663_v44  ;;  %v4643_v7 = vld [vmem:[%s7542_s3 + $0x3e0] sm:$0xff] }
 0x390   : > { %v2688_v46 = vld [vmem:[%s7542_s3 + $0x18] sm:$0xff]  ;;  %3568 = vmatpush.msra.mxu1 %v4666_v58  ;;  %2910 = vmatpush.msrb.mxu2 %v2687_v12  ;;  %v2029_v24 = vadd.f32 %v1851_v60, %v1586_v14  ;;  %v4640_v60 = vld [vmem:[%s7542_s3 + $0x3c8] sm:$0xff] }
 0x391   : > { %v2634_v57 = vadd.f32 %v6580_v27, %v2614_v10  ;;  %v7679_v10 = vld [vmem:[#allocation39_spill] sm:$0xff]  ;;  %2975 = vmatpush.msrb.mxu3 %v2688_v46  ;;  %3505 = vmatpush.msra.mxu0 %v4661_v56  ;;  %v4639_v46 = vld [vmem:[%s7542_s3 + $0x3c0] sm:$0xff]  ;;  %v2670_v14 = vld [vmem:[#allocation3 + $0x8] sm:$0xff] }
 0x392   : > { %v2288_v33 = vpop.f32.mrf.mxu0  ;;  %v2401_v18 = vpop.f32.mrf.mxu1  ;;  %v1587_v41 = vadd.f32 %v7680_v15, %v7679_v10  ;;  %3569 = vmatpush.msra.mxu1 %v4664_v38  ;;  %2911 = vmatpush.msrb.mxu2 %v2685_v62  ;;  %v4638_v38 = vld [vmem:[%s7542_s3 + $0x3b8] sm:$0xff]  ;;  %v3449_v10 = vld [vmem:[#allocation3 + $0xc] sm:$0xff]  ;;  %v4635_v15 = vld [vmem:[%s7542_s3 + $0x3a0] sm:$0xff] }
 0x393   : > { %v2468_v32 = vadd.f32 %v2288_v33, %v2025_v25  ;;  %v2469_v43 = vadd.f32 %v2401_v18, %v2026_v20  ;;  %v6622_v34 = vmax.f32 %v2634_v57, 0.0  ;;  %v4659_v33 = vld [vmem:[%s7542_s3 + $0x460] sm:$0xff]  ;;  %v4660_v18 = vld [vmem:[%s7542_s3 + $0x468] sm:$0xff]  ;;  %2976 = vmatpush.msrb.mxu3 %v2686_v36  ;;  %v6779_v56 = vpop.f32.mrf.mxu3  ;;  %v4629_v36 = vld [vmem:[%s7542_s3 + $0x370] sm:$0xff] }
 0x394   : > { %v2030_v25 = vadd.f32 %v1964_v0, %v1587_v41  ;;  %3570 = vmatpush.msra.mxu1 %v4662_v50  ;;  %3506 = vmatpush.msra.mxu0 %v4659_v33  ;;  %v2669_v0 = vld [vmem:[#allocation3] sm:$0xff]  ;;  %v4636_v41 = vld [vmem:[%s7542_s3 + $0x3a8] sm:$0xff]  ;;  %v2671_v50 = vld [vmem:[#allocation3 + $0x10] sm:$0xff] }
 0x395   : > { %v2503_v26 = vmax.f32 %v2468_v32, %v2469_v43  ;;  %2666 = vst [vmem:[#allocation3 + $0x68] sm:$0xff] %v6622_v34  ;;  %3286 = vmatpush.msra.mxu2 %v4645_v11  ;;  %3351 = vmatpush.msra.mxu3 %v4646_v45  ;;  %v2672_v33 = vld [vmem:[#allocation3 + $0x18] sm:$0xff]  ;;  %v3452_v62 = vld [vmem:[#allocation3 + $0x24] sm:$0xff]  ;;  %v4625_v45 = vld [vmem:[%s7542_s3 + $0x350] sm:$0xff] }
 0x396   : > { %3571 = vmatpush.msra.mxu1 %v4660_v18  ;;  %3507 = vmatpush.msra.mxu0 %v4657_v39  ;;  %v3451_v18 = vld [vmem:[#allocation3 + $0x1c] sm:$0xff]  ;;  %v3454_v11 = vld [vmem:[#allocation3 + $0x34] sm:$0xff] }
 0x397   : > { %2535 = vst [vmem:[#allocation2 + $0xe8] sm:$0xff] %v2503_v26  ;;  %v4656_v26 = vld [vmem:[%s7542_s3 + $0x448] sm:$0xff]  ;;  %3287 = vmatpush.msra.mxu2 %v4643_v7  ;;  %v6767_v42 = vpop.f32.mrf.mxu2 }
 0x398   : > { %3572 = vmatpush.msra.mxu1 %v4658_v29  ;;  %3508 = vmatpush.msra.mxu0 %v4655_v2  ;;  %v4630_v2 = vld [vmem:[%s7542_s3 + $0x378] sm:$0xff]  ;;  %v4624_v7 = vld [vmem:[%s7542_s3 + $0x348] sm:$0xff] }
 0x39a   : > { %v2291_v52 = vpop.f32.mrf.mxu0  ;;  %v2404_v21 = vpop.f32.mrf.mxu1  ;;  %3573 = vmatpush.msra.mxu1 %v4656_v26  ;;  %3509 = vmatpush.msra.mxu0 %v4653_v4 }
 0x39b   : > { %v2470_v61 = vadd.f32 %v2291_v52, %v2027_v53  ;;  %v2471_v54 = vadd.f32 %v2404_v21, %v2028_v55  ;;  %v4647_v52 = vld [vmem:[%s7542_s3 + $0x400] sm:$0xff]  ;;  %v4648_v21 = vld [vmem:[%s7542_s3 + $0x408] sm:$0xff] }
 0x39c   : > { %v2729_v31 = vld [vmem:[#allocation3 + $0x61] sm:$0xff]  ;;  %3574 = vmatpush.msra.mxu1 %v4654_v5  ;;  %3510 = vmatpush.msra.mxu0 %v4651_v3  ;;  %v3453_v3 = vld [vmem:[#allocation3 + $0x2c] sm:$0xff] }
 0x39d   : > { %v3038_v6 = vld [vmem:[#allocation3 + $0x62] sm:$0xff]  ;;  %v2504_v59 = vmax.f32 %v2470_v61, %v2471_v54  ;;  %2818 = vmatmul.f32.gmra.mxu2 %v2729_v31  ;;  %2883 = vmatmul.f32.gmra.mxu3 %v2729_v31 }
 0x39e   : > { %v2566_v22 = vld [vmem:[#allocation2 + $0xe0] ss:$2 sm:$0xff]  ;;  %v2598_v63 = vld [vmem:[#allocation2 + $0xe1] ss:$2 sm:$0xff]  ;;  %3127 = vmatmul.f32.gmra.mxu0 %v3038_v6  ;;  %3192 = vmatmul.f32.gmra.mxu1 %v3038_v6 }
 0x39f   : > { %2536 = vst [vmem:[#allocation2 + $0xf0] sm:$0xff] %v2504_v59  ;;  %v2615_v1 = vmax.f32 %v2566_v22, %v2598_v63  ;;  %3575 = vmatpush.msra.mxu1 %v4652_v35  ;;  %3511 = vmatpush.msra.mxu0 %v4649_v28  ;;  %v4644_v31 = vld [vmem:[%s7542_s3 + $0x3e8] sm:$0xff]  ;;  %v4642_v59 = vld [vmem:[%s7542_s3 + $0x3d8] sm:$0xff]  ;;  %v4637_v63 = vld [vmem:[%s7542_s3 + $0x3b0] sm:$0xff] }
 0x3a0   : > { %3352 = vmatpush.msra.mxu3 %v4644_v31  ;;  %v3448_v22 = vld [vmem:[#allocation3 + $0x4] sm:$0xff] }
 0x3a1   : > { %v2635_v20 = vadd.f32 %v6580_v27, %v2615_v1  ;;  %3576 = vmatpush.msra.mxu1 %v4650_v49  ;;  %3512 = vmatpush.msra.mxu0 %v4647_v52  ;;  %v6777_v1 = vpop.f32.mrf.mxu2  ;;  %v4796_v5 = vld [vmem:[#allocation3 + $0x28] sm:$0xff]  ;;  %v4627_v35 = vld [vmem:[%s7542_s3 + $0x360] sm:$0xff]  ;;  %v4797_v49 = vld [vmem:[#allocation3 + $0x30] sm:$0xff] }
 0x3a2   : > { %v2294_v57 = vpop.f32.mrf.mxu0  ;;  %v2407_v30 = vpop.f32.mrf.mxu1  ;;  %3353 = vmatpush.msra.mxu3 %v4642_v59  ;;  %v4621_v59 = vld [vmem:[%s7542_s3 + $0x330] sm:$0xff] }
 0x3a3   : > { %v2472_v47 = vadd.f32 %v2294_v57, %v2029_v24  ;;  %v2473_v32 = vadd.f32 %v2407_v30, %v2030_v25  ;;  %v6691_v43 = vmax.f32 %v2635_v20, 0.0  ;;  %3577 = vmatpush.msra.mxu1 %v4648_v21  ;;  %v3450_v24 = vld [vmem:[#allocation3 + $0x14] sm:$0xff]  ;;  %v6789_v30 = vpop.f32.mrf.mxu3 }
 0x3a4   : > { %3354 = vmatpush.msra.mxu3 %v4640_v60  ;;  %v4633_v25 = vld [vmem:[%s7542_s3 + $0x390] sm:$0xff]  ;;  %v4634_v20 = vld [vmem:[%s7542_s3 + $0x398] sm:$0xff] }
 0x3a5   : > { %v2505_v17 = vmax.f32 %v2472_v47, %v2473_v32  ;;  %2667 = vst [vmem:[#allocation3 + $0x70] sm:$0xff] %v6691_v43  ;;  %v4631_v47 = vld [vmem:[%s7542_s3 + $0x380] sm:$0xff]  ;;  %v4632_v32 = vld [vmem:[%s7542_s3 + $0x388] sm:$0xff] }
 0x3a6   : > { %3355 = vmatpush.msra.mxu3 %v4638_v38 }
 0x3a7   : > { %2537 = vst [vmem:[#allocation2 + $0xf8] sm:$0xf] %v2505_v17  ;;  %v2673_v17 = vld [vmem:[#allocation3 + $0x20] sm:$0xff] }
 0x3a8   : > { %3356 = vmatpush.msra.mxu3 %v4636_v41  ;;  %v4617_v41 = vld [vmem:[%s7542_s3 + $0x310] sm:$0xff] }
 0x3a9   : > { %v6787_v57 = vpop.f32.mrf.mxu2 }
 0x3aa   : > { %3357 = vmatpush.msra.mxu3 %v4634_v20  ;;  %v4615_v20 = vld [vmem:[%s7542_s3 + $0x300] sm:$0xff] }
 0x3ab   : > { %v6799_v29 = vpop.f32.mrf.mxu3 }
 0x3ac   : > { %v2730_v16 = vld [vmem:[#allocation3 + $0x69] sm:$0xff]  ;;  %3358 = vmatpush.msra.mxu3 %v4632_v32 }
 0x3ad   : > { %v3039_v23 = vld [vmem:[#allocation3 + $0x6a] sm:$0xff]  ;;  %2821 = vmatmul.f32.gmra.mxu2 %v2730_v16  ;;  %2886 = vmatmul.f32.gmra.mxu3 %v2730_v16 }
 0x3ae   : > { %v2568_v53 = vld [vmem:[#allocation2 + $0xf0] ss:$2 sm:$0x3f]  ;;  %v2600_v55 = vld [vmem:[#allocation2 + $0xf1] ss:$2 sm:$0x3f]  ;;  %3130 = vmatmul.f32.gmra.mxu0 %v3039_v23  ;;  %3195 = vmatmul.f32.gmra.mxu1 %v3039_v23 }
 0x3af   : > { %v2616_v9 = vmax.f32 %v2568_v53, %v2600_v55  ;;  %3359 = vmatpush.msra.mxu3 %v4630_v2  ;;  %v4628_v16 = vld [vmem:[%s7542_s3 + $0x368] sm:$0xff]  ;;  %v4626_v53 = vld [vmem:[%s7542_s3 + $0x358] sm:$0xff]  ;;  %v6827_v55 = vpop.f32.mrf.mxu0 }
 0x3b1   : > { %v2636_v61 = vadd.f32 %v6580_v27, %v2616_v9  ;;  %v4641_v27 = vld [vmem:[%s7542_s3 + $0x3d0] sm:$0xff]  ;;  %v6797_v39 = vpop.f32.mrf.mxu2  ;;  %3360 = vmatpush.msra.mxu3 %v4628_v16  ;;  %v6829_v9 = vpop.f32.mrf.mxu1 }
 0x3b2   : > { %3288 = vmatpush.msra.mxu2 %v4641_v27  ;;  %v3456_v27 = vld [vmem:[#allocation3 + $0x44] sm:$0xff] }
 0x3b3   : > { %v2652_v54 = vmax.f32 %v2636_v61, 0.0  ;;  %v6809_v4 = vpop.f32.mrf.mxu3  ;;  %3361 = vmatpush.msra.mxu3 %v4626_v53  ;;  %v3455_v61 = vld [vmem:[#allocation3 + $0x3c] sm:$0xff] }
 0x3b4   : > { %3289 = vmatpush.msra.mxu2 %v4639_v46 }
 0x3b5   : > { %2668 = vst [vmem:[#allocation3 + $0x78] sm:$0x3f] %v2652_v54  ;;  %v4623_v54 = vld [vmem:[%s7542_s3 + $0x340] sm:$0xff]  ;;  %3362 = vmatpush.msra.mxu3 %v4624_v7 }
 0x3b6   : > { %3290 = vmatpush.msra.mxu2 %v4637_v63  ;;  %v4620_v63 = vld [vmem:[%s7542_s3 + $0x328] sm:$0xff] }
 0x3b8   : > { %3291 = vmatpush.msra.mxu2 %v4635_v15  ;;  %v3458_v15 = vld [vmem:[#allocation3 + $0x54] sm:$0xff] }
 0x3b9   : > { %v6807_v26 = vpop.f32.mrf.mxu2 }
 0x3ba   : > { %3292 = vmatpush.msra.mxu2 %v4633_v25 }
 0x3bb   : > { %v6819_v28 = vpop.f32.mrf.mxu3 }
 0x3bc   : > { %v2731_v6 = vld [vmem:[#allocation3 + $0x71] sm:$0xff]  ;;  %v2732_v44 = vld [vmem:[#allocation3 + $0x79] sm:$0x3]  ;;  %3293 = vmatpush.msra.mxu2 %v4631_v47 }
 0x3bd   : > { %v3040_v58 = vld [vmem:[#allocation3 + $0x72] sm:$0xff]  ;;  %2824 = vmatmul.f32.gmra.mxu2 %v2731_v6  ;;  %2889 = vmatmul.f32.gmra.mxu3 %v2731_v6  ;;  %v3041_v12 = vld [vmem:[#allocation3 + $0x7a] sm:$0x3] }
 0x3be   : > { %3133 = vmatmul.f32.gmra.mxu0 %v3040_v58  ;;  %3198 = vmatmul.f32.gmra.mxu1 %v3040_v58  ;;  %v6847_v58 = vpop.f32.mrf.mxu0  ;;  %v2684_v53 = vld [vmem:[#allocation3 + $0x78] sm:$0x3] }
 0x3bf   : > { %3294 = vmatpush.msra.mxu2 %v4629_v36 }
 0x3c1   : > { %3295 = vmatpush.msra.mxu2 %v4627_v35  ;;  %v6817_v23 = vpop.f32.mrf.mxu2 }
 0x3c3   : > { %3296 = vmatpush.msra.mxu2 %v4625_v45  ;;  %v6833_v21 = vpop.f32.mrf.mxu3 }
 0x3c5   : > { %2827 = vmatmul.f32.gmra.mxu2 %v2732_v44  ;;  %2892 = vmatmul.f32.gmra.mxu3 %v2732_v44  ;;  %v4622_v44 = vld [vmem:[%s7542_s3 + $0x338] sm:$0xff] }
 0x3c6   : > { %3136 = vmatmul.f32.gmra.mxu0 %v3041_v12  ;;  %3201 = vmatmul.f32.gmra.mxu1 %v3041_v12  ;;  %v6863_v60 = vpop.f32.mrf.mxu0 }
 0x3c7   : > { %3297 = vmatpush.msra.mxu2 %v4623_v54  ;;  %3363 = vmatpush.msra.mxu3 %v4622_v44 }
 0x3c9   : > { %v6831_v52 = vpop.f32.mrf.mxu2  ;;  %3298 = vmatpush.msra.mxu2 %v4621_v59  ;;  %3364 = vmatpush.msra.mxu3 %v4620_v63  ;;  %v3237_v59 = vld [vmem:[#allocation3 + $0x3] sm:$0xff] }
 0x3cd   : > { %2912 = vmatmul.f32.vlgmr.msrb.gmra.mxu2 %v2669_v0  ;;  %2977 = vmatmul.f32.vlgmr.msrb.gmra.mxu3 %v2669_v0  ;;  %v3457_v0 = vld [vmem:[#allocation3 + $0x4c] sm:$0xff] }
 0x3ce   : > { %3513 = vmatmul.f32.vlgmr.msra.gmra.mxu0 %v3448_v22  ;;  %3578 = vmatmul.f32.vlgmr.msra.gmra.mxu1 %v3448_v22  ;;  %v4619_v22 = vld [vmem:[%s7542_s3 + $0x320] sm:$0xff] }
 0x3cf   : > { %3299 = vmatpush.msra.mxu2 %v4619_v22  ;;  %v3238_v22 = vld [vmem:[#allocation3 + $0xb] sm:$0xff] }
 0x3d0   : > { %v6845_v6 = vpop.f32.mrf.mxu3 }
 0x3d1   : > { %v6843_v31 = vpop.f32.mrf.mxu2  ;;  %3300 = vmatpush.msra.mxu2 %v4617_v41  ;;  %v3239_v41 = vld [vmem:[#allocation3 + $0x13] sm:$0xff] }
 0x3d3   : > { %3301 = vmatpush.msra.mxu2 %v4615_v20  ;;  %v3240_v20 = vld [vmem:[#allocation3 + $0x1b] sm:$0xff] }
 0x3d5   : > { %2915 = vmatmul.f32.gmra.mxu2 %v2670_v14  ;;  %2980 = vmatmul.f32.gmra.mxu3 %v2670_v14 }
 0x3d6   : > { %3516 = vmatmul.f32.gmra.mxu0 %v3449_v10  ;;  %3581 = vmatmul.f32.gmra.mxu1 %v3449_v10  ;;  %v6879_v10 = vpop.f32.mrf.mxu0 }
 0x3dd   : > { %2918 = vmatmul.f32.gmra.mxu2 %v2671_v50  ;;  %2983 = vmatmul.f32.gmra.mxu3 %v2671_v50  ;;  %v4618_v50 = vld [vmem:[%s7542_s3 + $0x318] sm:$0xff] }
 0x3de   : > { %3519 = vmatmul.f32.gmra.mxu0 %v3450_v24  ;;  %3584 = vmatmul.f32.gmra.mxu1 %v3450_v24 }
 0x3df   : > { %3365 = vmatpush.msra.mxu3 %v4618_v50 }
 0x3e0   : > { %v6859_v12 = vpop.f32.mrf.mxu2  ;;  %v6861_v46 = vpop.f32.mrf.mxu3 }
 0x3e1   : > { %7681 = vst [vmem:[#allocation40_spill] sm:$0xff] %v6859_v12 }
 0x3e2   : > { %7682 = vst [vmem:[#allocation10_spill] sm:$0xff] %v6861_v46 }
 0x3e5   : > { %2921 = vmatmul.f32.gmra.mxu2 %v2672_v33  ;;  %2986 = vmatmul.f32.gmra.mxu3 %v2672_v33  ;;  %v4616_v33 = vld [vmem:[%s7542_s3 + $0x308] sm:$0xff] }
 0x3e6   : > { %3522 = vmatmul.f32.gmra.mxu0 %v3451_v18  ;;  %3587 = vmatmul.f32.gmra.mxu1 %v3451_v18  ;;  %v6903_v18 = vpop.f32.mrf.mxu0 }
 0x3e7   : > { %3366 = vmatpush.msra.mxu3 %v4616_v33 }
 0x3ed   : > { %2924 = vmatmul.f32.gmra.mxu2 %v2673_v17  ;;  %2989 = vmatmul.f32.gmra.mxu3 %v2673_v17  ;;  %v3460_v17 = vld [vmem:[#allocation3 + $0x64] sm:$0xff] }
 0x3ee   : > { %3525 = vmatmul.f32.gmra.mxu0 %v3452_v62  ;;  %3590 = vmatmul.f32.gmra.mxu1 %v3452_v62  ;;  %v6917_v2 = vpop.f32.mrf.mxu0 }
 0x3f0   : > { %v6875_v38 = vpop.f32.mrf.mxu2  ;;  %v6877_v14 = vpop.f32.mrf.mxu3 }
 0x3f1   : > { %7683 = vst [vmem:[#allocation41_spill] sm:$0xff] %v6875_v38 }
 0x3f2   : > { %7684 = vst [vmem:[#allocation11_spill] sm:$0xff] %v6877_v14 }
 0x3f5   : > { %2927 = vmatmul.f32.gmra.mxu2 %v4796_v5  ;;  %2992 = vmatmul.f32.gmra.mxu3 %v4796_v5 }
 0x3f6   : > { %3528 = vmatmul.f32.gmra.mxu0 %v3453_v3  ;;  %3593 = vmatmul.f32.gmra.mxu1 %v3453_v3  ;;  %v3461_v3 = vld [vmem:[#allocation3 + $0x6c] sm:$0xff]  ;;  %v6927_v16 = vpop.f32.mrf.mxu0 }
 0x3fd   : > { %2930 = vmatmul.f32.gmra.mxu2 %v4797_v49  ;;  %2995 = vmatmul.f32.gmra.mxu3 %v4797_v49 }
 0x3fe   : > { %3531 = vmatmul.f32.gmra.mxu0 %v3454_v11  ;;  %3596 = vmatmul.f32.gmra.mxu1 %v3454_v11  ;;  %v3462_v11 = vld [vmem:[#allocation3 + $0x74] sm:$0xff]  ;;  %v6937_v54 = vpop.f32.mrf.mxu0 }
 0x3ff   : > { %7695 = vst [vmem:[#allocation47_spill] sm:$0xff] %v6937_v54 }
 0x400   : > { %v6891_v24 = vpop.f32.mrf.mxu2  ;;  %v6893_v25 = vpop.f32.mrf.mxu3 }
 0x401   : > { %7685 = vst [vmem:[#allocation42_spill] sm:$0xff] %v6891_v24 }
 0x402   : > { %7686 = vst [vmem:[#allocation12_spill] sm:$0xff] %v6893_v25 }
 0x405   : > { %2933 = vmatmul.f32.gmra.mxu2 %v6440_v19  ;;  %2998 = vmatmul.f32.gmra.mxu3 %v6440_v19  ;;  %v6849_v19 = vpop.f32.mrf.mxu1 }
 0x406   : > { %3534 = vmatmul.f32.gmra.mxu0 %v3455_v61  ;;  %3599 = vmatmul.f32.gmra.mxu1 %v3455_v61  ;;  %v3463_v61 = vld [vmem:[#allocation3 + $0x7c] sm:$0x3] }
 0x40d   : > { %2936 = vmatmul.f32.gmra.mxu2 %v6472_v51  ;;  %3001 = vmatmul.f32.gmra.mxu3 %v6472_v51  ;;  %v6865_v51 = vpop.f32.mrf.mxu1 }
 0x40e   : > { %3537 = vmatmul.f32.gmra.mxu0 %v3456_v27  ;;  %3602 = vmatmul.f32.gmra.mxu1 %v3456_v27 }
 0x410   : > { %v6907_v32 = vpop.f32.mrf.mxu2 }
 0x411   : > { %7687 = vst [vmem:[#allocation43_spill] sm:$0xff] %v6907_v32 }
 0x415   : > { %2939 = vmatmul.f32.gmra.mxu2 %v6504_v40  ;;  %3004 = vmatmul.f32.gmra.mxu3 %v6504_v40  ;;  %v6881_v40 = vpop.f32.mrf.mxu1 }
 0x416   : > { %3540 = vmatmul.f32.gmra.mxu0 %v3457_v0  ;;  %3605 = vmatmul.f32.gmra.mxu1 %v3457_v0 }
 0x41d   : > { %2942 = vmatmul.f32.gmra.mxu2 %v6530_v37  ;;  %3007 = vmatmul.f32.gmra.mxu3 %v6530_v37  ;;  %v3459_v37 = vld [vmem:[#allocation3 + $0x5c] sm:$0xff]  ;;  %v6905_v47 = vpop.f32.mrf.mxu1 }
 0x41e   : > { %3543 = vmatmul.f32.gmra.mxu0 %v3458_v15  ;;  %3608 = vmatmul.f32.gmra.mxu1 %v3458_v15 }
 0x420   : > { %v6913_v62 = vpop.f32.mrf.mxu2 }
 0x421   : > { %7689 = vst [vmem:[#allocation44_spill] sm:$0xff] %v6913_v62 }
 0x425   : > { %2945 = vmatmul.f32.gmra.mxu2 %v6554_v8  ;;  %3010 = vmatmul.f32.gmra.mxu3 %v6554_v8  ;;  %v6909_v8 = vpop.f32.mrf.mxu3  ;;  %v6919_v5 = vpop.f32.mrf.mxu1 }
 0x426   : > { %3546 = vmatmul.f32.gmra.mxu0 %v3459_v37  ;;  %3611 = vmatmul.f32.gmra.mxu1 %v3459_v37  ;;  %7688 = vst [vmem:[#allocation13_spill] sm:$0xff] %v6909_v8 }
 0x42d   : > { %2948 = vmatmul.f32.gmra.mxu2 %v6583_v48  ;;  %3013 = vmatmul.f32.gmra.mxu3 %v6583_v48  ;;  %v6915_v36 = vpop.f32.mrf.mxu3  ;;  %v6929_v49 = vpop.f32.mrf.mxu1 }
 0x42e   : > { %3549 = vmatmul.f32.gmra.mxu0 %v3460_v17  ;;  %3614 = vmatmul.f32.gmra.mxu1 %v3460_v17  ;;  %7690 = vst [vmem:[#allocation14_spill] sm:$0xff] %v6915_v36  ;;  %v3244_v36 = vld [vmem:[#allocation3 + $0x3b] sm:$0xff] }
 0x430   : > { %v6923_v35 = vpop.f32.mrf.mxu2 }
 0x431   : > { %7691 = vst [vmem:[#allocation45_spill] sm:$0xff] %v6923_v35 }
 0x435   : > { %2951 = vmatmul.f32.gmra.mxu2 %v6622_v34  ;;  %3016 = vmatmul.f32.gmra.mxu3 %v6622_v34  ;;  %v6925_v48 = vpop.f32.mrf.mxu3  ;;  %v6939_v7 = vpop.f32.mrf.mxu1 }
 0x436   : > { %3552 = vmatmul.f32.gmra.mxu0 %v3461_v3  ;;  %3617 = vmatmul.f32.gmra.mxu1 %v3461_v3  ;;  %7692 = vst [vmem:[#allocation15_spill] sm:$0xff] %v6925_v48  ;;  %v6961_v3 = vpop.f32.mrf.mxu0 }
 0x437   : > { %7696 = vst [vmem:[#allocation17_spill] sm:$0xff] %v6939_v7 }
 0x438   : > { %7699 = vst [vmem:[#allocation49_spill] sm:$0xff] %v6961_v3 }
 0x43d   : > { %2954 = vmatmul.f32.gmra.mxu2 %v6691_v43  ;;  %3019 = vmatmul.f32.gmra.mxu3 %v6691_v43 }
 0x43e   : > { %3555 = vmatmul.f32.gmra.mxu0 %v3462_v11  ;;  %3620 = vmatmul.f32.gmra.mxu1 %v3462_v11  ;;  %v6963_v11 = vpop.f32.mrf.mxu1 }
 0x43f   : > { %7700 = vst [vmem:[#allocation19_spill] sm:$0xff] %v6963_v11  ;;  %v3250_v11 = vld [vmem:[#allocation3 + $0x6b] sm:$0xff] }
 0x440   : > { %v6933_v45 = vpop.f32.mrf.mxu2  ;;  %v6935_v34 = vpop.f32.mrf.mxu3 }
 0x441   : > { %7693 = vst [vmem:[#allocation46_spill] sm:$0xff] %v6933_v45 }
 0x442   : > { %7694 = vst [vmem:[#allocation16_spill] sm:$0xff] %v6935_v34  ;;  %v3243_v34 = vld [vmem:[#allocation3 + $0x33] sm:$0xff] }
 0x445   : > { %2957 = vmatmul.f32.gmra.mxu2 %v2684_v53  ;;  %3022 = vmatmul.f32.gmra.mxu3 %v2684_v53  ;;  %v3241_v53 = vld [vmem:[#allocation3 + $0x23] sm:$0xff] }
 0x446   : > { %3558 = vmatmul.f32.gmra.mxu0 %v3463_v61  ;;  %3623 = vmatmul.f32.gmra.mxu1 %v3463_v61 }
 0x448   : > { %v6941_v27 = vpop.f32.mrf.mxu2  ;;  %v6943_v43 = vpop.f32.mrf.mxu3 }
 0x449   : > { %7697 = vst [vmem:[#allocation48_spill] sm:$0xff] %v6941_v27 }
 0x44a   : > { %7698 = vst [vmem:[#allocation18_spill] sm:$0xff] %v6943_v43  ;;  %v6971_v43 = vpop.f32.mrf.mxu1 }
 0x44b   : > { %7702 = vst [vmem:[#allocation20_spill] sm:$0xff] %v6971_v43 }
 0x44d   : > { %3302 = vmatmul.f32.vlgmr.msra.gmra.mxu2 %v3237_v59  ;;  %3367 = vmatmul.f32.vlgmr.msra.gmra.mxu3 %v3237_v59 }
 0x450   : > { %v6945_v44 = vpop.f32.mrf.mxu2  ;;  %v6947_v0 = vpop.f32.mrf.mxu3 }
 0x455   : > { %3305 = vmatmul.f32.gmra.mxu2 %v3238_v22  ;;  %3370 = vmatmul.f32.gmra.mxu3 %v3238_v22  ;;  %v3242_v22 = vld [vmem:[#allocation3 + $0x2b] sm:$0xff] }
 0x458   : > { %v6949_v63 = vpop.f32.mrf.mxu2  ;;  %v6951_v15 = vpop.f32.mrf.mxu3 }
 0x45d   : > { %3308 = vmatmul.f32.gmra.mxu2 %v3239_v41  ;;  %3373 = vmatmul.f32.gmra.mxu3 %v3239_v41  ;;  %v6969_v41 = vpop.f32.mrf.mxu0 }
 0x45e   : > { %7701 = vst [vmem:[#allocation50_spill] sm:$0xff] %v6969_v41 }
 0x460   : > { %v6953_v50 = vpop.f32.mrf.mxu2  ;;  %v6955_v37 = vpop.f32.mrf.mxu3 }
 0x465   : > { %3311 = vmatmul.f32.gmra.mxu2 %v3240_v20  ;;  %3376 = vmatmul.f32.gmra.mxu3 %v3240_v20  ;;  %v6977_v45 = vpop.f32.mrf.mxu0 }
 0x466   : > { %7703 = vst [vmem:[#allocation51_spill] sm:$0xff] %v6977_v45 }
 0x468   : > { %v6957_v33 = vpop.f32.mrf.mxu2  ;;  %v6959_v17 = vpop.f32.mrf.mxu3 }
 0x46d   : > { %3314 = vmatmul.f32.gmra.mxu2 %v3241_v53  ;;  %3379 = vmatmul.f32.gmra.mxu3 %v3241_v53  ;;  %v6979_v53 = vpop.f32.mrf.mxu1  ;;  %v6985_v62 = vpop.f32.mrf.mxu0 }
 0x46e   : > { %7704 = vst [vmem:[#allocation21_spill] sm:$0xff] %v6979_v53 }
 0x46f   : > { %7705 = vst [vmem:[#allocation52_spill] sm:$0xff] %v6985_v62 }
 0x470   : > { %v6965_v61 = vpop.f32.mrf.mxu2  ;;  %v6967_v59 = vpop.f32.mrf.mxu3 }
 0x475   : > { %3317 = vmatmul.f32.gmra.mxu2 %v3242_v22  ;;  %3382 = vmatmul.f32.gmra.mxu3 %v3242_v22  ;;  %v6987_v22 = vpop.f32.mrf.mxu1  ;;  %v6993_v45 = vpop.f32.mrf.mxu0 }
 0x476   : > { %7706 = vst [vmem:[#allocation22_spill] sm:$0xff] %v6987_v22 }
 0x477   : > { %7707 = vst [vmem:[#allocation53_spill] sm:$0xff] %v6993_v45 }
 0x478   : > { %v6973_v20 = vpop.f32.mrf.mxu2  ;;  %v6975_v27 = vpop.f32.mrf.mxu3 }
 0x47d   : > { %3320 = vmatmul.f32.gmra.mxu2 %v3243_v34  ;;  %3385 = vmatmul.f32.gmra.mxu3 %v3243_v34  ;;  %v3245_v34 = vld [vmem:[#allocation3 + $0x43] sm:$0xff]  ;;  %v6995_v53 = vpop.f32.mrf.mxu1  ;;  %v7001_v62 = vpop.f32.mrf.mxu0 }
 0x47e   : > { %7708 = vst [vmem:[#allocation23_spill] sm:$0xff] %v6995_v53 }
 0x47f   : > { %7711 = vst [vmem:[#allocation55_spill] sm:$0xff] %v7001_v62 }
 0x480   : > { %v6981_v48 = vpop.f32.mrf.mxu2  ;;  %v6983_v35 = vpop.f32.mrf.mxu3 }
 0x485   : > { %3323 = vmatmul.f32.gmra.mxu2 %v3244_v36  ;;  %3388 = vmatmul.f32.gmra.mxu3 %v3244_v36  ;;  %v3246_v36 = vld [vmem:[#allocation3 + $0x4b] sm:$0xff]  ;;  %v7003_v22 = vpop.f32.mrf.mxu1  ;;  %v7009_v45 = vpop.f32.mrf.mxu0 }
 0x486   : > { %7712 = vst [vmem:[#allocation25_spill] sm:$0xff] %v7003_v22 }
 0x487   : > { %7715 = vst [vmem:[#allocation57_spill] sm:$0xff] %v7009_v45 }
 0x488   : > { %v6989_v8 = vpop.f32.mrf.mxu2  ;;  %v6991_v32 = vpop.f32.mrf.mxu3 }
 0x48d   : > { %3326 = vmatmul.f32.gmra.mxu2 %v3245_v34  ;;  %3391 = vmatmul.f32.gmra.mxu3 %v3245_v34  ;;  %v3247_v34 = vld [vmem:[#allocation3 + $0x53] sm:$0xff]  ;;  %v7011_v53 = vpop.f32.mrf.mxu1 }
 0x48e   : > { %7716 = vst [vmem:[#allocation27_spill] sm:$0xff] %v7011_v53 }
 0x490   : > { %v6997_v25 = vpop.f32.mrf.mxu2  ;;  %v6999_v24 = vpop.f32.mrf.mxu3 }
 0x491   : > { %7709 = vst [vmem:[#allocation54_spill] sm:$0xff] %v6997_v25 }
 0x492   : > { %7710 = vst [vmem:[#allocation24_spill] sm:$0xff] %v6999_v24 }
 0x495   : > { %3329 = vmatmul.f32.gmra.mxu2 %v3246_v36  ;;  %3394 = vmatmul.f32.gmra.mxu3 %v3246_v36  ;;  %v3248_v36 = vld [vmem:[#allocation3 + $0x5b] sm:$0xff] }
 0x498   : > { %v7005_v43 = vpop.f32.mrf.mxu2  ;;  %v7007_v41 = vpop.f32.mrf.mxu3 }
 0x499   : > { %7713 = vst [vmem:[#allocation56_spill] sm:$0xff] %v7005_v43  ;;  %v7021_v43 = vpop.f32.mrf.mxu0 }
 0x49a   : > { %7714 = vst [vmem:[#allocation26_spill] sm:$0xff] %v7007_v41  ;;  %v7023_v41 = vpop.f32.mrf.mxu1 }
 0x49b   : > { %7721 = vst [vmem:[#allocation60_spill] sm:$0xff] %v7021_v43 }
 0x49c   : > { %7722 = vst [vmem:[#allocation30_spill] sm:$0xff] %v7023_v41 }
 0x49d   : > { %3332 = vmatmul.f32.gmra.mxu2 %v3247_v34  ;;  %3397 = vmatmul.f32.gmra.mxu3 %v3247_v34  ;;  %v3249_v34 = vld [vmem:[#allocation3 + $0x63] sm:$0xff] }
 0x4a0   : > { %v7013_v14 = vpop.f32.mrf.mxu2  ;;  %v7015_v38 = vpop.f32.mrf.mxu3 }
 0x4a1   : > { %7717 = vst [vmem:[#allocation58_spill] sm:$0xff] %v7013_v14  ;;  %v3514_v14 = vpop.f32.mrf.mxu0 }
 0x4a2   : > { %7718 = vst [vmem:[#allocation28_spill] sm:$0xff] %v7015_v38  ;;  %v3579_v38 = vpop.f32.mrf.mxu1 }
 0x4a5   : > { %3335 = vmatmul.f32.gmra.mxu2 %v3248_v36  ;;  %3400 = vmatmul.f32.gmra.mxu3 %v3248_v36 }
 0x4a8   : > { %v7017_v62 = vpop.f32.mrf.mxu2  ;;  %v7019_v22 = vpop.f32.mrf.mxu3 }
 0x4a9   : > { %7719 = vst [vmem:[#allocation59_spill] sm:$0xff] %v7017_v62  ;;  %v3517_v43 = vpop.f32.mrf.mxu0 }
 0x4aa   : > { %7720 = vst [vmem:[#allocation29_spill] sm:$0xff] %v7019_v22  ;;  %v3251_v22 = vld [vmem:[#allocation3 + $0x73] sm:$0xff]  ;;  %v3582_v3 = vpop.f32.mrf.mxu1 }
 0x4ad   : > { %3338 = vmatmul.f32.gmra.mxu2 %v3249_v34  ;;  %3403 = vmatmul.f32.gmra.mxu3 %v3249_v34 }
 0x4b0   : > { %v7025_v45 = vpop.f32.mrf.mxu2  ;;  %v7027_v53 = vpop.f32.mrf.mxu3 }
 0x4b1   : > { %7723 = vst [vmem:[#allocation61_spill] sm:$0xff] %v7025_v45  ;;  %v3252_v45 = vld [vmem:[#allocation3 + $0x7b] sm:$0x3] }
 0x4b2   : > { %7724 = vst [vmem:[#allocation31_spill] sm:$0xff] %v7027_v53  ;;  %v3520_v53 = vpop.f32.mrf.mxu0  ;;  %v3585_v24 = vpop.f32.mrf.mxu1 }
 0x4b5   : > { %3341 = vmatmul.f32.gmra.mxu2 %v3250_v11  ;;  %3406 = vmatmul.f32.gmra.mxu3 %v3250_v11  ;;  %v4694_v11 = vld [vmem:[%s7544_s5 + $0xf8] sm:$0xff] }
 0x4b6   : > { %3783 = vmatpush.msrb.mxu2 %v4694_v11  ;;  %v2917_v11 = vadd.f32 %v6949_v63, %v6777_v1 }
 0x4b8   : > { %v7029_v36 = vpop.f32.mrf.mxu2  ;;  %v7031_v62 = vpop.f32.mrf.mxu3 }
 0x4b9   : > { %7725 = vst [vmem:[#allocation62_spill] sm:$0xff] %v7029_v36 }
 0x4ba   : > { %7726 = vst [vmem:[#allocation32_spill] sm:$0xff] %v7031_v62  ;;  %v7050_v12 = vpop.f32.mrf.mxu0  ;;  %v7052_v7 = vpop.f32.mrf.mxu1 }
 0x4bd   : > { %3344 = vmatmul.f32.gmra.mxu2 %v3251_v22  ;;  %3409 = vmatmul.f32.gmra.mxu3 %v3251_v22  ;;  %v2914_v22 = vadd.f32 %v6945_v44, %v6767_v42  ;;  %v2982_v42 = vadd.f32 %v6951_v15, %v6779_v56 }
 0x4c0   : > { %v7033_v41 = vpop.f32.mrf.mxu2  ;;  %v7035_v34 = vpop.f32.mrf.mxu3 }
 0x4c1   : > { %7727 = vst [vmem:[#allocation63_spill] sm:$0xff] %v7033_v41  ;;  %v3205_v41 = vadd.f32 %v6827_v55, %v2914_v22  ;;  %v3207_v55 = vadd.f32 %v6847_v58, %v2917_v11  ;;  %v2985_v58 = vadd.f32 %v6955_v37, %v6789_v30  ;;  %v2988_v30 = vadd.f32 %v6959_v17, %v6799_v29  ;;  %v3760_v17 = vld [vmem:[%s7544_s5 + $0x70] sm:$0xff] }
 0x4c2   : > { %7728 = vst [vmem:[#allocation33_spill] sm:$0xff] %v7035_v34  ;;  %v2979_v34 = vadd.f32 %v6947_v0, %v6769_v13 }
 0x4c3   : > { %v3210_v22 = vadd.f32 %v6865_v51, %v2985_v58  ;;  %v3212_v29 = vadd.f32 %v6881_v40, %v2988_v30  ;;  %v3759_v30 = vld [vmem:[%s7544_s5 + $0x68] sm:$0xff] }
 0x4c5   : > { %3347 = vmatmul.f32.gmra.mxu2 %v3252_v45  ;;  %3412 = vmatmul.f32.gmra.mxu3 %v3252_v45  ;;  %v3206_v45 = vadd.f32 %v6829_v9, %v2979_v34  ;;  %v3208_v9 = vadd.f32 %v6849_v19, %v2982_v42  ;;  %v4693_v34 = vld [vmem:[%s7544_s5 + $0xf0] sm:$0xff]  ;;  %v3526_v19 = vpop.f32.mrf.mxu0 }
 0x4c6   : > { %3784 = vmatpush.msrb.mxu2 %v4693_v34 }
 0x4c8   : > { %v7040_v36 = vpop.f32.mrf.mxu2  ;;  %v7042_v62 = vpop.f32.mrf.mxu3 }
 0x4c9   : > { %7729 = vst [vmem:[#allocation64_spill] sm:$0xff] %v7040_v36 }
 0x4d0   : > { %v3303_v46 = vpop.f32.mrf.mxu2  ;;  %v3368_v25 = vpop.f32.mrf.mxu3 }
 0x4d1   : > { %v3416_v36 = vadd.f32 %v3303_v46, %v3205_v41  ;;  %v3417_v54 = vadd.f32 %v3368_v25, %v3206_v45  ;;  %v4692_v46 = vld [vmem:[%s7544_s5 + $0xe8] sm:$0xff] }
 0x4d2   : > { %3785 = vmatpush.msrb.mxu2 %v4692_v46 }
 0x4d3   : > { %v3627_v44 = vadd.f32 %v3514_v14, %v3416_v36  ;;  %v3628_v13 = vadd.f32 %v3579_v38, %v3417_v54  ;;  %v2920_v38 = vadd.f32 %v6953_v50, %v6787_v57  ;;  %v3591_v54 = vpop.f32.mrf.mxu1  ;;  %v2923_v57 = vadd.f32 %v6957_v33, %v6797_v39  ;;  %v4691_v33 = vld [vmem:[%s7544_s5 + $0xe0] sm:$0xff] }
 0x4d4   : > { %3786 = vmatpush.msrb.mxu2 %v4691_v33 }
 0x4d5   : > { %v3659_v0 = vmax.f32 %v3627_v44, %v3628_v13  ;;  %v3209_v36 = vadd.f32 %v6863_v60, %v2920_v38  ;;  %v7083_v60 = vld [vmem:[%s7543_s4] ss:$0 sm:$0xff]  ;;  %v3211_v39 = vadd.f32 %v6879_v10, %v2923_v57  ;;  %v4690_v10 = vld [vmem:[%s7544_s5 + $0xd8] sm:$0xff] }
 0x4d6   : > { %3787 = vmatpush.msrb.mxu2 %v4690_v10 }
 0x4d7   : > { %3675 = vst [vmem:[#allocation2] sm:$0xff] %v3659_v0 }
 0x4d8   : > { %v3306_v1 = vpop.f32.mrf.mxu2  ;;  %v3371_v25 = vpop.f32.mrf.mxu3 }
 0x4d9   : > { %v3418_v56 = vadd.f32 %v3306_v1, %v3207_v55  ;;  %v3419_v14 = vadd.f32 %v3371_v25, %v3208_v9  ;;  %v2926_v1 = vadd.f32 %v6965_v61, %v6807_v26  ;;  %v2991_v25 = vadd.f32 %v6967_v59, %v6809_v4 }
 0x4da   : > { %v2929_v4 = vadd.f32 %v6973_v20, %v6817_v23  ;;  %v4689_v23 = vld [vmem:[%s7544_s5 + $0xd0] sm:$0xff] }
 0x4db   : > { %v3629_v63 = vadd.f32 %v3517_v43, %v3418_v56  ;;  %v3630_v15 = vadd.f32 %v3582_v3, %v3419_v14  ;;  %v7076_v43 = vpop.f32.mrf.mxu0  ;;  %v7078_v3 = vpop.f32.mrf.mxu1  ;;  %3788 = vmatpush.msrb.mxu2 %v4689_v23 }
 0x4dd   : > { %v3660_v41 = vmax.f32 %v3629_v63, %v3630_v15 }
 0x4df   : > { %3676 = vst [vmem:[#allocation2 + $0x8] sm:$0xff] %v3660_v41  ;;  %v3213_v41 = vadd.f32 %v6903_v18, %v2926_v1  ;;  %v3215_v18 = vadd.f32 %v6917_v2, %v2929_v4  ;;  %v4688_v2 = vld [vmem:[%s7544_s5 + $0xc8] sm:$0xff] }
 0x4e0   : > { %v3309_v45 = vpop.f32.mrf.mxu2  ;;  %v3374_v11 = vpop.f32.mrf.mxu3  ;;  %3789 = vmatpush.msrb.mxu2 %v4688_v2  ;;  %v7739_v2 = vld [vmem:[#allocation56_spill] sm:$0xff] }
 0x4e1   : > { %v3420_v42 = vadd.f32 %v3309_v45, %v3209_v36  ;;  %v3421_v44 = vadd.f32 %v3374_v11, %v3210_v22  ;;  %v3214_v36 = vadd.f32 %v6905_v47, %v2991_v25  ;;  %v7731_v25 = vld [vmem:[#allocation17_spill] sm:$0xff] }
 0x4e3   : > { %v3631_v50 = vadd.f32 %v3520_v53, %v3420_v42  ;;  %v3632_v37 = vadd.f32 %v3585_v24, %v3421_v44  ;;  %v3761_v24 = vld [vmem:[%s7544_s5 + $0x78] sm:$0xff]  ;;  %v3532_v63 = vpop.f32.mrf.mxu0  ;;  %v3597_v15 = vpop.f32.mrf.mxu1 }
 0x4e4   : > { %3803 = vmatpush.msrb.mxu3 %v3761_v24 }
 0x4e5   : > { %v3661_v13 = vmax.f32 %v3631_v50, %v3632_v37 }
 0x4e6   : > { %v3691_v51 = vld [vmem:[#allocation2] ss:$2 sm:$0xff]  ;;  %v3699_v0 = vld [vmem:[#allocation2 + $0x1] ss:$2 sm:$0xff]  ;;  %3804 = vmatpush.msrb.mxu3 %v3760_v17 }
 0x4e7   : > { %v3707_v55 = vmax.f32 %v3691_v51, %v3699_v0  ;;  %3677 = vst [vmem:[#allocation2 + $0x10] sm:$0xff] %v3661_v13  ;;  %v2932_v13 = vadd.f32 %v6981_v48, %v6831_v52  ;;  %v2997_v51 = vadd.f32 %v6983_v35, %v6833_v21  ;;  %v3000_v21 = vadd.f32 %v6991_v32, %v6845_v6  ;;  %v4687_v6 = vld [vmem:[%s7544_s5 + $0xc0] sm:$0xff]  ;;  %v3756_v32 = vld [vmem:[%s7544_s5 + $0x50] sm:$0xff] }
 0x4e8   : > { %v3312_v53 = vpop.f32.mrf.mxu2  ;;  %v3377_v9 = vpop.f32.mrf.mxu3  ;;  %3805 = vmatpush.msrb.mxu3 %v3759_v30  ;;  %3790 = vmatpush.msrb.mxu2 %v4687_v6 }
 0x4e9   : > { %v3422_v40 = vadd.f32 %v3312_v53, %v3211_v39  ;;  %v3423_v34 = vadd.f32 %v3377_v9, %v3212_v29  ;;  %v3719_v46 = vadd.f32 %v7083_v60, %v3707_v55  ;;  %v3217_v24 = vadd.f32 %v6927_v16, %v2932_v13 }
 0x4ea   : > { %v3218_v33 = vadd.f32 %v6929_v49, %v2997_v51  ;;  %v2935_v9 = vadd.f32 %v6989_v8, %v6843_v31  ;;  %v7730_v49 = vld [vmem:[#allocation47_spill] sm:$0xff] }
 0x4eb   : > { %v3633_v56 = vadd.f32 %v7050_v12, %v3422_v40  ;;  %v3634_v14 = vadd.f32 %v7052_v7, %v3423_v34  ;;  %v3727_v38 = vmax.f32 %v3719_v46, 0.0  ;;  %v2994_v12 = vadd.f32 %v6975_v27, %v6819_v28  ;;  %v3758_v28 = vld [vmem:[%s7544_s5 + $0x60] sm:$0xff]  ;;  %v3757_v31 = vld [vmem:[%s7544_s5 + $0x58] sm:$0xff] }
 0x4ec   : > { %3806 = vmatpush.msrb.mxu3 %v3758_v28  ;;  %v3219_v1 = vadd.f32 %v7730_v49, %v2935_v9  ;;  %v4685_v9 = vld [vmem:[%s7544_s5 + $0xb0] sm:$0xff] }
 0x4ed   : > { %v3662_v58 = vmax.f32 %v3633_v56, %v3634_v14  ;;  %3735 = vst [vmem:[#allocation4] sm:$0xff] %v3727_v38  ;;  %v3216_v47 = vadd.f32 %v6919_v5, %v2994_v12  ;;  %v3535_v5 = vpop.f32.mrf.mxu0  ;;  %v3220_v56 = vadd.f32 %v7731_v25, %v3000_v21  ;;  %v4686_v38 = vld [vmem:[%s7544_s5 + $0xb8] sm:$0xff]  ;;  %v3754_v21 = vld [vmem:[%s7544_s5 + $0x40] sm:$0xff] }
 0x4ee   : > { %3807 = vmatpush.msrb.mxu3 %v3757_v31  ;;  %3791 = vmatpush.msrb.mxu2 %v4686_v38  ;;  %v7747_v25 = vld [vmem:[#allocation28_spill] sm:$0xff] }
 0x4ef   : > { %3678 = vst [vmem:[#allocation2 + $0x18] sm:$0xff] %v3662_v58 }
 0x4f0   : > { %v3315_v26 = vpop.f32.mrf.mxu2  ;;  %v3380_v61 = vpop.f32.mrf.mxu3  ;;  %3808 = vmatpush.msrb.mxu3 %v3756_v32  ;;  %3792 = vmatpush.msrb.mxu2 %v4685_v9 }
 0x4f1   : > { %v3424_v22 = vadd.f32 %v3315_v26, %v3213_v41  ;;  %v3425_v45 = vadd.f32 %v3380_v61, %v3214_v36  ;;  %v7732_v41 = vld [vmem:[#allocation40_spill] sm:$0xff]  ;;  %v7733_v36 = vld [vmem:[#allocation54_spill] sm:$0xff] }
 0x4f2   : > { %v2938_v26 = vadd.f32 %v7733_v36, %v7732_v41  ;;  %v7734_v61 = vld [vmem:[#allocation10_spill] sm:$0xff] }
 0x4f3   : > { %v3635_v7 = vadd.f32 %v3526_v19, %v3424_v22  ;;  %v3636_v59 = vadd.f32 %v3591_v54, %v3425_v45  ;;  %v3600_v19 = vpop.f32.mrf.mxu1  ;;  %v7735_v22 = vld [vmem:[#allocation24_spill] sm:$0xff] }
 0x4f4   : > { %v3003_v45 = vadd.f32 %v7735_v22, %v7734_v61 }
 0x4f5   : > { %v3663_v11 = vmax.f32 %v3635_v7, %v3636_v59  ;;  %v3538_v35 = vpop.f32.mrf.mxu0 }
 0x4f6   : > { %v3692_v42 = vld [vmem:[#allocation2 + $0x10] ss:$2 sm:$0xff]  ;;  %v3700_v44 = vld [vmem:[#allocation2 + $0x11] ss:$2 sm:$0xff] }
 0x4f7   : > { %v3708_v57 = vmax.f32 %v3692_v42, %v3700_v44  ;;  %3679 = vst [vmem:[#allocation2 + $0x20] sm:$0xff] %v3663_v11  ;;  %v7736_v44 = vld [vmem:[#allocation49_spill] sm:$0xff] }
 0x4f8   : > { %v3318_v27 = vpop.f32.mrf.mxu2  ;;  %v3383_v20 = vpop.f32.mrf.mxu3 }
 0x4f9   : > { %v3426_v54 = vadd.f32 %v3318_v27, %v3215_v18  ;;  %v3427_v50 = vadd.f32 %v3383_v20, %v3216_v47  ;;  %v3720_v37 = vadd.f32 %v7083_v60, %v3708_v57  ;;  %v3221_v57 = vadd.f32 %v7736_v44, %v2938_v26  ;;  %v7737_v18 = vld [vmem:[#allocation19_spill] sm:$0xff]  ;;  %v7738_v20 = vld [vmem:[#allocation41_spill] sm:$0xff] }
 0x4fa   : > { %v3222_v47 = vadd.f32 %v7737_v18, %v3003_v45  ;;  %v4683_v45 = vld [vmem:[%s7544_s5 + $0xa0] sm:$0xff]  ;;  %v3753_v18 = vld [vmem:[%s7544_s5 + $0x38] sm:$0xff] }
 0x4fb   : > { %v3637_v0 = vadd.f32 %v7076_v43, %v3426_v54  ;;  %v3638_v55 = vadd.f32 %v7078_v3, %v3427_v50  ;;  %v3728_v39 = vmax.f32 %v3720_v37, 0.0  ;;  %v3603_v43 = vpop.f32.mrf.mxu1  ;;  %v2941_v54 = vadd.f32 %v7739_v2, %v7738_v20  ;;  %v7740_v50 = vld [vmem:[#allocation11_spill] sm:$0xff]  ;;  %v7754_v2 = vld [vmem:[#allocation52_spill] sm:$0xff] }
 0x4fd   : > { %v3664_v29 = vmax.f32 %v3637_v0, %v3638_v55  ;;  %3736 = vst [vmem:[#allocation4 + $0x8] sm:$0xff] %v3728_v39  ;;  %v3541_v59 = vpop.f32.mrf.mxu0 }
 0x4ff   : > { %3680 = vst [vmem:[#allocation2 + $0x28] sm:$0xff] %v3664_v29 }
 0x500   : > { %v3321_v17 = vpop.f32.mrf.mxu2  ;;  %v3386_v53 = vpop.f32.mrf.mxu3 }
 0x501   : > { %v3428_v52 = vadd.f32 %v3321_v17, %v3217_v24  ;;  %v3429_v48 = vadd.f32 %v3386_v53, %v3218_v33  ;;  %v7742_v33 = vld [vmem:[#allocation50_spill] sm:$0xff]  ;;  %v7743_v53 = vld [vmem:[#allocation20_spill] sm:$0xff] }
 0x502   : > { %v3223_v17 = vadd.f32 %v7742_v33, %v2941_v54 }
 0x503   : > { %v3639_v3 = vadd.f32 %v3532_v63, %v3428_v52  ;;  %v3640_v10 = vadd.f32 %v3597_v15, %v3429_v48  ;;  %v3606_v11 = vpop.f32.mrf.mxu1  ;;  %v3755_v48 = vld [vmem:[%s7544_s5 + $0x48] sm:$0xff] }
 0x504   : > { %3809 = vmatpush.msrb.mxu3 %v3755_v48 }
 0x505   : > { %v3665_v40 = vmax.f32 %v3639_v3, %v3640_v10  ;;  %v3544_v39 = vpop.f32.mrf.mxu0  ;;  %v4684_v3 = vld [vmem:[%s7544_s5 + $0xa8] sm:$0xff] }
 0x506   : > { %v3693_v34 = vld [vmem:[#allocation2 + $0x20] ss:$2 sm:$0xff]  ;;  %v3701_v46 = vld [vmem:[#allocation2 + $0x21] ss:$2 sm:$0xff]  ;;  %3810 = vmatpush.msrb.mxu3 %v3754_v21  ;;  %3793 = vmatpush.msrb.mxu2 %v4684_v3  ;;  %v7758_v21 = vld [vmem:[#allocation14_spill] sm:$0xff] }
 0x507   : > { %v3709_v16 = vmax.f32 %v3693_v34, %v3701_v46  ;;  %3681 = vst [vmem:[#allocation2 + $0x30] sm:$0xff] %v3665_v40  ;;  %v7744_v46 = vld [vmem:[#allocation42_spill] sm:$0xff] }
 0x508   : > { %v3324_v8 = vpop.f32.mrf.mxu2  ;;  %v3389_v14 = vpop.f32.mrf.mxu3  ;;  %3794 = vmatpush.msrb.mxu2 %v4683_v45  ;;  %3811 = vmatpush.msrb.mxu3 %v3753_v18  ;;  %v7765_v45 = vld [vmem:[#allocation32_spill] sm:$0xff]  ;;  %v4705_v18 = vld [vmem:[%s7544_s5 + $0x150] sm:$0xff] }
 0x509   : > { %v3430_v58 = vadd.f32 %v3324_v8, %v3219_v1  ;;  %v3431_v63 = vadd.f32 %v3389_v14, %v3220_v56  ;;  %v3721_v15 = vadd.f32 %v7083_v60, %v3709_v16  ;;  %v7745_v16 = vld [vmem:[#allocation58_spill] sm:$0xff]  ;;  %v7746_v1 = vld [vmem:[#allocation12_spill] sm:$0xff]  ;;  %v7748_v14 = vld [vmem:[#allocation51_spill] sm:$0xff] }
 0x50a   : > { %v2944_v49 = vadd.f32 %v7745_v16, %v7744_v46  ;;  %v3009_v56 = vadd.f32 %v7747_v25, %v7746_v1  ;;  %v3749_v46 = vld [vmem:[%s7544_s5 + $0x18] sm:$0xff]  ;;  %v3748_v1 = vld [vmem:[%s7544_s5 + $0x10] sm:$0xff]  ;;  %v7760_v25 = vld [vmem:[#allocation53_spill] sm:$0xff] }
 0x50b   : > { %v3641_v4 = vadd.f32 %v3535_v5, %v3430_v58  ;;  %v3642_v12 = vadd.f32 %v3600_v19, %v3431_v63  ;;  %v3729_v7 = vmax.f32 %v3721_v15, 0.0  ;;  %v7741_v5 = vld [vmem:[#allocation26_spill] sm:$0xff]  ;;  %v3609_v29 = vpop.f32.mrf.mxu1  ;;  %v7749_v58 = vld [vmem:[#allocation21_spill] sm:$0xff] }
 0x50c   : > { %v3006_v19 = vadd.f32 %v7741_v5, %v7740_v50  ;;  %v3225_v38 = vadd.f32 %v7748_v14, %v2944_v49  ;;  %v3226_v63 = vadd.f32 %v7749_v58, %v3009_v56  ;;  %v7755_v50 = vld [vmem:[#allocation22_spill] sm:$0xff] }
 0x50d   : > { %v3666_v42 = vmax.f32 %v3641_v4, %v3642_v12  ;;  %3737 = vst [vmem:[#allocation4 + $0x10] sm:$0xff] %v3729_v7  ;;  %v3547_v36 = vpop.f32.mrf.mxu0  ;;  %v7750_v4 = vld [vmem:[#allocation43_spill] sm:$0xff]  ;;  %v4709_v49 = vld [vmem:[%s7544_s5 + $0x170] sm:$0xff] }
 0x50e   : > { %v3224_v52 = vadd.f32 %v7743_v53, %v3006_v19  ;;  %v7751_v12 = vld [vmem:[#allocation59_spill] sm:$0xff]  ;;  %v3752_v19 = vld [vmem:[%s7544_s5 + $0x30] sm:$0xff]  ;;  %v7757_v53 = vld [vmem:[#allocation61_spill] sm:$0xff] }
 0x50f   : > { %3682 = vst [vmem:[#allocation2 + $0x38] sm:$0xff] %v3666_v42  ;;  %v2947_v7 = vadd.f32 %v7751_v12, %v7750_v4  ;;  %3812 = vmatpush.msrb.mxu3 %v3752_v19  ;;  %v4703_v19 = vld [vmem:[%s7544_s5 + $0x140] sm:$0xff] }
 0x510   : > { %v3327_v30 = vpop.f32.mrf.mxu2  ;;  %v3392_v23 = vpop.f32.mrf.mxu3 }
 0x511   : > { %v3432_v28 = vadd.f32 %v3327_v30, %v3221_v57  ;;  %v3433_v27 = vadd.f32 %v3392_v23, %v3222_v47  ;;  %v4682_v47 = vld [vmem:[%s7544_s5 + $0x98] sm:$0xff]  ;;  %v3227_v54 = vadd.f32 %v7754_v2, %v2947_v7  ;;  %v7767_v2 = vld [vmem:[#allocation25_spill] sm:$0xff] }
 0x512   : > { %3795 = vmatpush.msrb.mxu2 %v4682_v47  ;;  %v4725_v47 = vld [vmem:[%s7544_s5 + $0x1f0] sm:$0xff] }
 0x513   : > { %v3643_v37 = vadd.f32 %v3538_v35, %v3432_v28  ;;  %v3644_v13 = vadd.f32 %v3603_v43, %v3433_v27  ;;  %v3612_v26 = vpop.f32.mrf.mxu1  ;;  %v4681_v27 = vld [vmem:[%s7544_s5 + $0x90] sm:$0xff] }
 0x514   : > { %3796 = vmatpush.msrb.mxu2 %v4681_v27  ;;  %v7766_v27 = vld [vmem:[#allocation55_spill] sm:$0xff] }
 0x515   : > { %v3667_v51 = vmax.f32 %v3643_v37, %v3644_v13  ;;  %v4680_v37 = vld [vmem:[%s7544_s5 + $0x88] sm:$0xff]  ;;  %v3550_v48 = vpop.f32.mrf.mxu0 }
 0x516   : > { %v3694_v0 = vld [vmem:[#allocation2 + $0x30] ss:$2 sm:$0xff]  ;;  %v3702_v55 = vld [vmem:[#allocation2 + $0x31] ss:$2 sm:$0xff]  ;;  %v3751_v13 = vld [vmem:[%s7544_s5 + $0x28] sm:$0xff]  ;;  %3797 = vmatpush.msrb.mxu2 %v4680_v37 }
 0x517   : > { %v3710_v24 = vmax.f32 %v3694_v0, %v3702_v55  ;;  %3683 = vst [vmem:[#allocation2 + $0x40] sm:$0xff] %v3667_v51  ;;  %v4679_v55 = vld [vmem:[%s7544_s5 + $0x80] sm:$0xff]  ;;  %3813 = vmatpush.msrb.mxu3 %v3751_v13 }
 0x518   : > { %v3330_v35 = vpop.f32.mrf.mxu2  ;;  %v3395_v43 = vpop.f32.mrf.mxu3  ;;  %3798 = vmatpush.msrb.mxu2 %v4679_v55 }
 0x519   : > { %v3434_v10 = vadd.f32 %v3330_v35, %v3223_v17  ;;  %v3435_v40 = vadd.f32 %v3395_v43, %v3224_v52  ;;  %v3722_v34 = vadd.f32 %v7083_v60, %v3710_v24  ;;  %v3750_v24 = vld [vmem:[%s7544_s5 + $0x20] sm:$0xff]  ;;  %v7759_v35 = vld [vmem:[#allocation31_spill] sm:$0xff] }
 0x51a   : > { %v7756_v17 = vld [vmem:[#allocation44_spill] sm:$0xff]  ;;  %v3015_v43 = vadd.f32 %v7759_v35, %v7758_v21  ;;  %3814 = vmatpush.msrb.mxu3 %v3750_v24  ;;  %v7768_v24 = vld [vmem:[#allocation46_spill] sm:$0xff] }
 0x51b   : > { %v3645_v31 = vadd.f32 %v3541_v59, %v3434_v10  ;;  %v3646_v6 = vadd.f32 %v3606_v11, %v3435_v40  ;;  %v3730_v32 = vmax.f32 %v3722_v34, 0.0  ;;  %v7752_v59 = vld [vmem:[#allocation13_spill] sm:$0xff]  ;;  %v2950_v52 = vadd.f32 %v7757_v53, %v7756_v17  ;;  %v3615_v9 = vpop.f32.mrf.mxu1  ;;  %v4710_v40 = vld [vmem:[%s7544_s5 + $0x178] sm:$0xff] }
 0x51c   : > { %v7753_v11 = vld [vmem:[#allocation29_spill] sm:$0xff]  ;;  %3844 = vmatpush.msra.mxu2 %v4710_v40  ;;  %3815 = vmatpush.msrb.mxu3 %v3749_v46  ;;  %v4722_v53 = vld [vmem:[%s7544_s5 + $0x1d8] sm:$0xff] }
 0x51d   : > { %v3668_v8 = vmax.f32 %v3645_v31, %v3646_v6  ;;  %3738 = vst [vmem:[#allocation4 + $0x18] sm:$0xff] %v3730_v32  ;;  %v3012_v42 = vadd.f32 %v7753_v11, %v7752_v59  ;;  %v3229_v56 = vadd.f32 %v7760_v25, %v2950_v52  ;;  %v7761_v31 = vld [vmem:[#allocation23_spill] sm:$0xff]  ;;  %v4708_v32 = vld [vmem:[%s7544_s5 + $0x168] sm:$0xff]  ;;  %v7770_v52 = vld [vmem:[#allocation16_spill] sm:$0xff] }
 0x51e   : > { %3845 = vmatpush.msra.mxu2 %v4709_v49  ;;  %v3230_v6 = vadd.f32 %v7761_v31, %v3015_v43  ;;  %3816 = vmatpush.msrb.mxu3 %v3748_v1  ;;  %v4706_v59 = vld [vmem:[%s7544_s5 + $0x158] sm:$0xff]  ;;  %v4701_v43 = vld [vmem:[%s7544_s5 + $0x130] sm:$0xff]  ;;  %v4720_v46 = vld [vmem:[%s7544_s5 + $0x1c8] sm:$0xff] }
 0x51f   : > { %3684 = vst [vmem:[#allocation2 + $0x48] sm:$0xff] %v3668_v8  ;;  %v3228_v5 = vadd.f32 %v7755_v50, %v3012_v42  ;;  %v4726_v11 = vld [vmem:[%s7544_s5 + $0x1f8] sm:$0xff]  ;;  %v3553_v42 = vpop.f32.mrf.mxu0  ;;  %v4704_v50 = vld [vmem:[%s7544_s5 + $0x148] sm:$0xff] }
 0x520   : > { %v3333_v15 = vpop.f32.mrf.mxu2  ;;  %v3398_v41 = vpop.f32.mrf.mxu3  ;;  %3846 = vmatpush.msra.mxu2 %v4708_v32  ;;  %v7772_v1 = vld [vmem:[#allocation57_spill] sm:$0xff] }
 0x521   : > { %v3436_v61 = vadd.f32 %v3333_v15, %v3225_v38  ;;  %v3437_v22 = vadd.f32 %v3398_v41, %v3226_v63  ;;  %v3747_v38 = vld [vmem:[%s7544_s5 + $0x8] sm:$0xff]  ;;  %v4707_v15 = vld [vmem:[%s7544_s5 + $0x160] sm:$0xff] }
 0x522   : > { %3817 = vmatpush.msrb.mxu3 %v3747_v38  ;;  %3847 = vmatpush.msra.mxu2 %v4707_v15  ;;  %v3746_v41 = vld [vmem:[%s7544_s5] sm:$0xff]  ;;  %v4718_v15 = vld [vmem:[%s7544_s5 + $0x1b8] sm:$0xff] }
 0x523   : > { %v3647_v44 = vadd.f32 %v3544_v39, %v3436_v61  ;;  %v3648_v57 = vadd.f32 %v3609_v29, %v3437_v22  ;;  %v7764_v22 = vld [vmem:[#allocation15_spill] sm:$0xff] }
 0x524   : > { %v3018_v4 = vadd.f32 %v7765_v45, %v7764_v22  ;;  %3818 = vmatpush.msrb.mxu3 %v3746_v41  ;;  %3848 = vmatpush.msra.mxu2 %v4706_v59  ;;  %v7774_v41 = vld [vmem:[#allocation48_spill] sm:$0xff] }
 0x525   : > { %v3669_v30 = vmax.f32 %v3647_v44, %v3648_v57  ;;  %v3618_v44 = vpop.f32.mrf.mxu1 }
 0x526   : > { %v3695_v23 = vld [vmem:[#allocation2 + $0x40] ss:$2 sm:$0xff]  ;;  %v3703_v28 = vld [vmem:[#allocation2 + $0x41] ss:$2 sm:$0xff]  ;;  %3886 = vmatpush.msra.mxu3 %v4726_v11  ;;  %3849 = vmatpush.msra.mxu2 %v4705_v18 }
 0x527   : > { %v3711_v20 = vmax.f32 %v3695_v23, %v3703_v28  ;;  %3685 = vst [vmem:[#allocation2 + $0x50] sm:$0xff] %v3669_v30  ;;  %v4696_v11 = vld [vmem:[%s7544_s5 + $0x108] sm:$0xff]  ;;  %v7777_v18 = vld [vmem:[#allocation60_spill] sm:$0xff] }
 0x528   : > { %v3336_v51 = vpop.f32.mrf.mxu2  ;;  %v3401_v0 = vpop.f32.mrf.mxu3  ;;  %3887 = vmatpush.msra.mxu3 %v4725_v47  ;;  %3850 = vmatpush.msra.mxu2 %v4704_v50 }
 0x529   : > { %v3438_v39 = vadd.f32 %v3336_v51, %v3227_v54  ;;  %v3439_v29 = vadd.f32 %v3401_v0, %v3228_v5  ;;  %v3723_v33 = vadd.f32 %v7083_v60, %v3711_v20  ;;  %v3232_v54 = vadd.f32 %v7767_v2, %v3018_v4  ;;  %v4724_v5 = vld [vmem:[%s7544_s5 + $0x1e8] sm:$0xff]  ;;  %v4723_v51 = vld [vmem:[%s7544_s5 + $0x1e0] sm:$0xff] }
 0x52a   : > { %3888 = vmatpush.msra.mxu3 %v4724_v5  ;;  %3851 = vmatpush.msra.mxu2 %v4703_v19  ;;  %v4715_v2 = vld [vmem:[%s7544_s5 + $0x1a0] sm:$0xff] }
 0x52b   : > { %v3649_v3 = vadd.f32 %v3547_v36, %v3438_v39  ;;  %v3650_v10 = vadd.f32 %v3612_v26, %v3439_v29  ;;  %v3731_v34 = vmax.f32 %v3723_v33, 0.0  ;;  %v7762_v36 = vld [vmem:[#allocation45_spill] sm:$0xff]  ;;  %v7763_v26 = vld [vmem:[#allocation62_spill] sm:$0xff]  ;;  %v4702_v39 = vld [vmem:[%s7544_s5 + $0x138] sm:$0xff] }
 0x52c   : > { %v2953_v61 = vadd.f32 %v7763_v26, %v7762_v36  ;;  %v7769_v33 = vld [vmem:[#allocation63_spill] sm:$0xff]  ;;  %3889 = vmatpush.msra.mxu3 %v4723_v51  ;;  %3852 = vmatpush.msra.mxu2 %v4702_v39  ;;  %v7775_v36 = vld [vmem:[#allocation64_spill] sm:$0xff]  ;;  %v4713_v39 = vld [vmem:[%s7544_s5 + $0x190] sm:$0xff] }
 0x52d   : > { %v3670_v16 = vmax.f32 %v3649_v3, %v3650_v10  ;;  %3739 = vst [vmem:[#allocation4 + $0x20] sm:$0xff] %v3731_v34  ;;  %v2956_v17 = vadd.f32 %v7769_v33, %v7768_v24  ;;  %v4721_v10 = vld [vmem:[%s7544_s5 + $0x1d0] sm:$0xff]  ;;  %v4700_v34 = vld [vmem:[%s7544_s5 + $0x128] sm:$0xff]  ;;  %v3621_v49 = vpop.f32.mrf.mxu1  ;;  %v2959_v26 = vadd.f32 %v7775_v36, %v7774_v41  ;;  %v4711_v33 = vld [vmem:[%s7544_s5 + $0x180] sm:$0xff] }
 0x52e   : > { %v3231_v20 = vadd.f32 %v7766_v27, %v2953_v61  ;;  %3890 = vmatpush.msra.mxu3 %v4722_v53  ;;  %3853 = vmatpush.msra.mxu2 %v4701_v43  ;;  %v7776_v61 = vld [vmem:[#allocation18_spill] sm:$0xff]  ;;  %v4712_v24 = vld [vmem:[%s7544_s5 + $0x188] sm:$0xff]  ;;  %v4731_v41 = vld [vmem:[%s7544_s5 + $0x220] sm:$0xff] }
 0x52f   : > { %3686 = vst [vmem:[#allocation2 + $0x58] sm:$0xff] %v3670_v16  ;;  %v3556_v16 = vpop.f32.mrf.mxu0  ;;  %v3233_v25 = vadd.f32 %v7772_v1, %v2956_v17  ;;  %v3024_v22 = vadd.f32 %v7042_v62, %v7776_v61  ;;  %v3235_v47 = vadd.f32 %v7777_v18, %v2959_v26  ;;  %v4739_v1 = vld [vmem:[%s7544_s5 + $0x260] sm:$0xff]  ;;  %v4730_v36 = vld [vmem:[%s7544_s5 + $0x218] sm:$0xff]  ;;  %v4729_v26 = vld [vmem:[%s7544_s5 + $0x210] sm:$0xff] }
 0x530   : > { %v3339_v8 = vpop.f32.mrf.mxu2  ;;  %v3404_v14 = vpop.f32.mrf.mxu3  ;;  %3891 = vmatpush.msra.mxu3 %v4721_v10  ;;  %3854 = vmatpush.msra.mxu2 %v4700_v34  ;;  %v4742_v34 = vld [vmem:[%s7544_s5 + $0x278] sm:$0xff]  ;;  %v4728_v61 = vld [vmem:[%s7544_s5 + $0x208] sm:$0xff]  ;;  %v3963_v18 = vld [vmem:[%s7546_s7 + $0x40] sm:$0xff] }
 0x531   : > { %v3440_v58 = vadd.f32 %v3339_v8, %v3229_v56  ;;  %v3441_v63 = vadd.f32 %v3404_v14, %v3230_v6  ;;  %v7773_v56 = vld [vmem:[#allocation27_spill] sm:$0xff]  ;;  %v4699_v6 = vld [vmem:[%s7544_s5 + $0x120] sm:$0xff] }
 0x532   : > { %v4719_v14 = vld [vmem:[%s7544_s5 + $0x1c0] sm:$0xff]  ;;  %3892 = vmatpush.msra.mxu3 %v4720_v46  ;;  %3855 = vmatpush.msra.mxu2 %v4699_v6  ;;  %v4741_v46 = vld [vmem:[%s7544_s5 + $0x270] sm:$0xff] }
 0x533   : > { %v3651_v12 = vadd.f32 %v3550_v48, %v3440_v58  ;;  %v3652_v7 = vadd.f32 %v3615_v9, %v3441_v63  ;;  %v7771_v48 = vld [vmem:[#allocation33_spill] sm:$0xff]  ;;  %v4698_v63 = vld [vmem:[%s7544_s5 + $0x118] sm:$0xff] }
 0x534   : > { %v3021_v9 = vadd.f32 %v7771_v48, %v7770_v52  ;;  %3893 = vmatpush.msra.mxu3 %v4719_v14  ;;  %3856 = vmatpush.msra.mxu2 %v4698_v63  ;;  %v4736_v14 = vld [vmem:[%s7544_s5 + $0x248] sm:$0xff]  ;;  %v4733_v63 = vld [vmem:[%s7544_s5 + $0x230] sm:$0xff] }
 0x535   : > { %v3671_v57 = vmax.f32 %v3651_v12, %v3652_v7  ;;  %v4697_v12 = vld [vmem:[%s7544_s5 + $0x110] sm:$0xff] }
 0x536   : > { %v3696_v30 = vld [vmem:[#allocation2 + $0x50] ss:$2 sm:$0xff]  ;;  %v3704_v23 = vld [vmem:[#allocation2 + $0x51] ss:$2 sm:$0xff]  ;;  %v3234_v31 = vadd.f32 %v7773_v56, %v3021_v9  ;;  %3894 = vmatpush.msra.mxu3 %v4718_v15  ;;  %3857 = vmatpush.msra.mxu2 %v4697_v12  ;;  %v4732_v15 = vld [vmem:[%s7544_s5 + $0x228] sm:$0xff] }
 0x537   : > { %v3712_v28 = vmax.f32 %v3696_v30, %v3704_v23  ;;  %3687 = vst [vmem:[#allocation2 + $0x60] sm:$0xff] %v3671_v57  ;;  %v4717_v7 = vld [vmem:[%s7544_s5 + $0x1b0] sm:$0xff]  ;;  %v3559_v19 = vpop.f32.mrf.mxu0 }
 0x538   : > { %v3342_v37 = vpop.f32.mrf.mxu2  ;;  %v3407_v13 = vpop.f32.mrf.mxu3  ;;  %v7778_v30 = vld [vmem:[#allocation30_spill] sm:$0xff]  ;;  %3895 = vmatpush.msra.mxu3 %v4717_v7  ;;  %3858 = vmatpush.msra.mxu2 %v4696_v11  ;;  %v3970_v7 = vld [vmem:[%s7546_s7 + $0x78] sm:$0xff]  ;;  %v3968_v11 = vld [vmem:[%s7546_s7 + $0x68] sm:$0xff] }
 0x539   : > { %v3442_v0 = vadd.f32 %v3342_v37, %v3231_v20  ;;  %v3443_v55 = vadd.f32 %v3407_v13, %v3232_v54  ;;  %v3724_v29 = vadd.f32 %v7083_v60, %v3712_v28  ;;  %v3236_v23 = vadd.f32 %v7778_v30, %v3024_v22  ;;  %v4695_v28 = vld [vmem:[%s7544_s5 + $0x100] sm:$0xff]  ;;  %v3624_v37 = vpop.f32.mrf.mxu1  ;;  %v4714_v13 = vld [vmem:[%s7544_s5 + $0x198] sm:$0xff]  ;;  %v3961_v30 = vld [vmem:[%s7546_s7 + $0x30] sm:$0xff] }
 0x53a   : > { %3859 = vmatpush.msra.mxu2 %v4695_v28  ;;  %v3866_v56 = vld [vmem:[#allocation4 + $0x3] ss:$8 sm:$0xf] }
 0x53b   : > { %v3653_v21 = vadd.f32 %v3553_v42, %v3442_v0  ;;  %v3654_v35 = vadd.f32 %v3618_v44, %v3443_v55  ;;  %v3732_v3 = vmax.f32 %v3724_v29, 0.0  ;;  %v4716_v44 = vld [vmem:[%s7544_s5 + $0x1a8] sm:$0xff]  ;;  %v3959_v28 = vld [vmem:[%s7546_s7 + $0x20] sm:$0xff] }
 0x53c   : > { %3896 = vmatpush.msra.mxu3 %v4716_v44  ;;  %v3965_v44 = vld [vmem:[%s7546_s7 + $0x50] sm:$0xff] }
 0x53d   : > { %v3672_v40 = vmax.f32 %v3653_v21, %v3654_v35  ;;  %3740 = vst [vmem:[#allocation4 + $0x28] sm:$0xff] %v3732_v3  ;;  %v3763_v21 = vld [vmem:[#allocation4 + $0x1] ss:$8 sm:$0xf] }
 0x53e   : > { %3897 = vmatpush.msra.mxu3 %v4715_v2  ;;  %v3743_v35 = vld [vmem:[#allocation4] ss:$8 sm:$0xf] }
 0x53f   : > { %3688 = vst [vmem:[#allocation2 + $0x68] sm:$0xff] %v3672_v40  ;;  %v3956_v2 = vld [vmem:[%s7546_s7 + $0x8] sm:$0xff] }
 0x540   : > { %v3345_v32 = vpop.f32.mrf.mxu2  ;;  %v3410_v8 = vpop.f32.mrf.mxu3  ;;  %3898 = vmatpush.msra.mxu3 %v4714_v13  ;;  %v4007_v13 = vld [vmem:[%s7548_s9 + $0x58] sm:$0xff] }
 0x541   : > { %v3444_v38 = vadd.f32 %v3345_v32, %v3233_v25  ;;  %v3445_v58 = vadd.f32 %v3410_v8, %v3234_v31  ;;  %v3824_v25 = vld [vmem:[#allocation4 + $0x2] ss:$8 sm:$0xf] }
 0x542   : > { %3899 = vmatpush.msra.mxu3 %v4713_v39  ;;  %v4738_v32 = vld [vmem:[%s7544_s5 + $0x258] sm:$0xff]  ;;  %v4737_v8 = vld [vmem:[%s7544_s5 + $0x250] sm:$0xff]  ;;  %v4004_v39 = vld [vmem:[%s7548_s9 + $0x40] sm:$0xff] }
 0x543   : > { %v3655_v45 = vadd.f32 %v3556_v16, %v3444_v38  ;;  %v3656_v4 = vadd.f32 %v3621_v49, %v3445_v58  ;;  %v4735_v38 = vld [vmem:[%s7544_s5 + $0x240] sm:$0xff]  ;;  %v4734_v58 = vld [vmem:[%s7544_s5 + $0x238] sm:$0xff] }
 0x544   : > { %3900 = vmatpush.msra.mxu3 %v4712_v24  ;;  %v4003_v24 = vld [vmem:[%s7548_s9 + $0x38] sm:$0xff] }
 0x545   : > { %v3673_v59 = vmax.f32 %v3655_v45, %v3656_v4  ;;  %v4727_v45 = vld [vmem:[%s7544_s5 + $0x200] sm:$0xff] }
 0x546   : > { %v3697_v42 = vld [vmem:[#allocation2 + $0x60] ss:$2 sm:$0xff]  ;;  %v3705_v62 = vld [vmem:[#allocation2 + $0x61] ss:$2 sm:$0xff]  ;;  %3901 = vmatpush.msra.mxu3 %v4711_v33  ;;  %v4002_v33 = vld [vmem:[%s7548_s9 + $0x30] sm:$0xff] }
 0x547   : > { %v3713_v57 = vmax.f32 %v3697_v42, %v3705_v62  ;;  %3689 = vst [vmem:[#allocation2 + $0x70] sm:$0xff] %v3673_v59  ;;  %v3908_v4 = vld [vmem:[#allocation4 + $0x4] ss:$8 sm:$0xf] }
 0x548   : > { %v3348_v27 = vpop.f32.mrf.mxu2  ;;  %v3413_v20 = vpop.f32.mrf.mxu3  ;;  %v3969_v59 = vld [vmem:[%s7546_s7 + $0x70] sm:$0xff]  ;;  %v3967_v42 = vld [vmem:[%s7546_s7 + $0x60] sm:$0xff]  ;;  %v3966_v62 = vld [vmem:[%s7546_s7 + $0x58] sm:$0xff] }
 0x549   : > { %v3446_v54 = vadd.f32 %v3348_v27, %v3235_v47  ;;  %v3447_v50 = vadd.f32 %v3413_v20, %v3236_v23  ;;  %v3725_v5 = vadd.f32 %v7083_v60, %v3713_v57  ;;  %v3964_v57 = vld [vmem:[%s7546_s7 + $0x48] sm:$0xff]  ;;  %v3962_v47 = vld [vmem:[%s7546_s7 + $0x38] sm:$0xff]  ;;  %v3957_v20 = vld [vmem:[%s7546_s7 + $0x10] sm:$0xff] }
 0x54a   : > { %v3960_v23 = vld [vmem:[%s7546_s7 + $0x28] sm:$0xff]  ;;  %v3958_v27 = vld [vmem:[%s7546_s7 + $0x18] sm:$0xff] }
 0x54b   : > { %v3657_v51 = vadd.f32 %v3559_v19, %v3446_v54  ;;  %v3658_v0 = vadd.f32 %v3624_v37, %v3447_v50  ;;  %v3733_v55 = vmax.f32 %v3725_v5, 0.0  ;;  %v3955_v54 = vld [vmem:[%s7546_s7] sm:$0xff]  ;;  %v4011_v50 = vld [vmem:[%s7548_s9 + $0x78] sm:$0xff]  ;;  %v4010_v5 = vld [vmem:[%s7548_s9 + $0x70] sm:$0xff] }
 0x54c   : > { %v4009_v19 = vld [vmem:[%s7548_s9 + $0x68] sm:$0xff]  ;;  %v4008_v37 = vld [vmem:[%s7548_s9 + $0x60] sm:$0xff] }
 0x54d   : > { %v3674_v29 = vmax.f32 %v3657_v51, %v3658_v0  ;;  %3741 = vst [vmem:[#allocation4 + $0x30] sm:$0xff] %v3733_v55  ;;  %v4006_v0 = vld [vmem:[%s7548_s9 + $0x50] sm:$0xff]  ;;  %v4005_v55 = vld [vmem:[%s7548_s9 + $0x48] sm:$0xff] }
 0x54f   : > { %3690 = vst [vmem:[#allocation2 + $0x78] sm:$0x3] %v3674_v29 }
 0x556   : > { %v3698_v17 = vld [vmem:[#allocation2 + $0x70] ss:$2 sm:$0x1f]  ;;  %v3706_v53 = vld [vmem:[#allocation2 + $0x71] ss:$2 sm:$0x1f] }
 0x557   : > { %v3714_v52 = vmax.f32 %v3698_v17, %v3706_v53 }
 0x559   : > { %v3726_v48 = vadd.f32 %v7083_v60, %v3714_v52  ;;  %v4740_v60 = vld [vmem:[%s7544_s5 + $0x268] sm:$0xff] }
 0x55a   : > { %v4001_v52 = vld [vmem:[%s7548_s9 + $0x28] sm:$0xff] }
 0x55b   : > { %v3734_v9 = vmax.f32 %v3726_v48, 0.0 }
 0x55d   : > { %3742 = vst [vmem:[#allocation4 + $0x38] sm:$0x1f] %v3734_v9  ;;  %v4000_v9 = vld [vmem:[%s7548_s9 + $0x20] sm:$0xff] }
 0x564   : > { %v3764_v43 = vld [vmem:[#allocation4 + $0x1] ss:$8 sm:$0xf0]  ;;  %v3744_v3 = vld [vmem:[#allocation4] ss:$8 sm:$0xf0] }
 0x565   : > { %v3765_v10 = vor.u32 %v3764_v43, %v3763_v21  ;;  %v3745_v40 = vor.u32 %v3744_v3, %v3743_v35  ;;  %v3825_v16 = vld [vmem:[#allocation4 + $0x2] ss:$8 sm:$0xf0]  ;;  %v3867_v49 = vld [vmem:[#allocation4 + $0x3] ss:$8 sm:$0xf0] }
 0x566   : > { %v3826_v31 = vor.u32 %v3825_v16, %v3824_v25  ;;  %v3868_v6 = vor.u32 %v3867_v49, %v3866_v56  ;;  %v3909_v22 = vld [vmem:[#allocation4 + $0x4] ss:$8 sm:$0xf0]  ;;  %v4788_v3 = vld [vmem:[%s7545_s6] ss:$0 sm:$0xff] }
 0x567   : > { %3799 = vmatmul.f32.vlgmr.msrb.gmra.mxu2 %v3765_v10  ;;  %3819 = vmatmul.f32.vlgmr.msrb.gmra.mxu3 %v3745_v40  ;;  %v3910_v12 = vor.u32 %v3909_v22, %v3908_v4  ;;  %v3999_v21 = vld [vmem:[%s7548_s9 + $0x18] sm:$0xff]  ;;  %v3997_v16 = vld [vmem:[%s7548_s9 + $0x8] sm:$0xff]  ;;  %v3996_v49 = vld [vmem:[%s7548_s9] sm:$0xff] }
 0x568   : > { %3928 = vmatpush.msrb.mxu2 %v4742_v34  ;;  %3975 = vmatpush.msrb.mxu3 %v3970_v7 }
 0x56a   : > { %3929 = vmatpush.msrb.mxu2 %v4741_v46  ;;  %3976 = vmatpush.msrb.mxu3 %v3969_v59 }
 0x56c   : > { %3930 = vmatpush.msrb.mxu2 %v4740_v60  ;;  %3977 = vmatpush.msrb.mxu3 %v3968_v11  ;;  %v3998_v60 = vld [vmem:[%s7548_s9 + $0x10] sm:$0xff] }
 0x56e   : > { %3931 = vmatpush.msrb.mxu2 %v4739_v1  ;;  %3978 = vmatpush.msrb.mxu3 %v3967_v42  ;;  %v4789_v1 = vld [vmem:[%s7547_s8] ss:$0 sm:$0xff] }
 0x56f   : > { %3860 = vmatmul.f32.vlgmr.msra.gmra.mxu2 %v3826_v31  ;;  %3902 = vmatmul.f32.vlgmr.msra.gmra.mxu3 %v3868_v6  ;;  %v4036_v6 = vlaneseq }
 0x570   : > { %3932 = vmatpush.msrb.mxu2 %v4738_v32  ;;  %3979 = vmatpush.msrb.mxu3 %v3966_v62 }
 0x571   : > { %v4037_v32 = vand.u32 127, %v4036_v6 }
 0x572   : > { %3933 = vmatpush.msrb.mxu2 %v4737_v8  ;;  %3980 = vmatpush.msrb.mxu3 %v3965_v44  ;;  %v4790_v8 = vld [vmem:[%s7549_s10] ss:$0 sm:$0xff] }
 0x573   : > { %vm4038_vm1 = vcmp.lt.s32.totalorder %v4037_v32, 10 }
 0x574   : > { %3934 = vmatpush.msrb.mxu2 %v4736_v14  ;;  %3981 = vmatpush.msrb.mxu3 %v3964_v57 }
 0x576   : > { %3935 = vmatpush.msrb.mxu2 %v4735_v38  ;;  %3982 = vmatpush.msrb.mxu3 %v3963_v18 }
 0x578   : > { %3936 = vmatpush.msrb.mxu2 %v4734_v58  ;;  %3983 = vmatpush.msrb.mxu3 %v3962_v47 }
 0x57a   : > { %3937 = vmatpush.msrb.mxu2 %v4733_v63  ;;  %3984 = vmatpush.msrb.mxu3 %v3961_v30 }
 0x57c   : > { %3938 = vmatpush.msrb.mxu2 %v4732_v15  ;;  %3985 = vmatpush.msrb.mxu3 %v3960_v23 }
 0x57e   : > { %3939 = vmatpush.msrb.mxu2 %v4731_v41  ;;  %3986 = vmatpush.msrb.mxu3 %v3959_v28 }
 0x580   : > { %3940 = vmatpush.msrb.mxu2 %v4730_v36  ;;  %3987 = vmatpush.msrb.mxu3 %v3958_v27 }
 0x582   : > { %3941 = vmatpush.msrb.mxu2 %v4729_v26  ;;  %3988 = vmatpush.msrb.mxu3 %v3957_v20 }
 0x584   : > { %3942 = vmatpush.msrb.mxu2 %v4728_v61  ;;  %3989 = vmatpush.msrb.mxu3 %v3956_v2 }
 0x586   : > { %3943 = vmatpush.msrb.mxu2 %v4727_v45  ;;  %3990 = vmatpush.msrb.mxu3 %v3955_v54 }
 0x587   : > { %3944 = vmatmul.f32.vlgmr.msrb.gmra.mxu2 %v3910_v12 }
 0x588   : > { %4016 = vmatpush.msra.mxu2 %v4011_v50 }
 0x58a   : > { %4017 = vmatpush.msra.mxu2 %v4010_v5 }
 0x58c   : > { %4018 = vmatpush.msra.mxu2 %v4009_v19 }
 0x58e   : > { %4019 = vmatpush.msra.mxu2 %v4008_v37 }
 0x590   : > { %4020 = vmatpush.msra.mxu2 %v4007_v13 }
 0x592   : > { %4021 = vmatpush.msra.mxu2 %v4006_v0 }
 0x594   : > { %4022 = vmatpush.msra.mxu2 %v4005_v55 }
 0x596   : > { %4023 = vmatpush.msra.mxu2 %v4004_v39 }
 0x598   : > { %4024 = vmatpush.msra.mxu2 %v4003_v24 }
 0x59a   : > { %4025 = vmatpush.msra.mxu2 %v4002_v33 }
 0x59c   : > { %4026 = vmatpush.msra.mxu2 %v4001_v52 }
 0x59e   : > { %4027 = vmatpush.msra.mxu2 %v4000_v9 }
 0x5a0   : > { %4028 = vmatpush.msra.mxu2 %v3999_v21 }
 0x5a2   : > { %4029 = vmatpush.msra.mxu2 %v3998_v60 }
 0x5a4   : > { %4030 = vmatpush.msra.mxu2 %v3997_v16 }
 0x5a6   : > { %4031 = vmatpush.msra.mxu2 %v3996_v49 }
 0x5ea   : > { %v3800_v51 = vpop.f32.mrf.mxu2  ;;  %v3820_v29 = vpop.f32.mrf.mxu3 }
 0x5eb   : > { %v3821_v53 = vadd.f32 %v3820_v29, %v3800_v51 }
 0x5f2   : > { %v3861_v17 = vpop.f32.mrf.mxu2  ;;  %v3903_v35 = vpop.f32.mrf.mxu3 }
 0x5f3   : > { %v3864_v48 = vadd.f32 %v3861_v17, %v3821_v53 }
 0x5f5   : > { %v3906_v43 = vadd.f32 %v3903_v35, %v3864_v48 }
 0x60a   : > { %v3945_v10 = vpop.f32.mrf.mxu2 }
 0x60b   : > { %v3948_v40 = vadd.f32 %v3945_v10, %v3906_v43 }
 0x60d   : > { %v3953_v34 = vadd.f32 %v4788_v3, %v3948_v40 }
 0x60f   : > { %v3954_v46 = vmax.f32 %v3953_v34, 0.0 }
 0x611   : > { %3991 = vmatmul.f32.vlgmr.msrb.gmra.mxu3 %v3954_v46 }
 0x694   : > { %v3992_v25 = vpop.f32.mrf.mxu3 }
 0x695   : > { %v3993_v56 = vadd.f32 %v4789_v1, %v3992_v25 }
 0x697   : > { %v3995_v31 = vmax.f32 %v3993_v56, 0.0 }
 0x699   : > { %4032 = vmatmul.f32.vlgmr.msra.gmra.mxu2 %v3995_v31 }
 0x71c   : > { %v4033_v14 = vpop.f32.mrf.mxu2 }
 0x71d   : > { %v4034_v38 = vadd.f32 %v4790_v8, %v4033_v14 }
 0x71f   : > { %v4039_v58 = vsel %vm4038_vm1, %v4034_v38, -inf }
 0x720   : > { %4040 = vmax.xlane.f32.xlu0 %v4039_v58 }
 0x793   : > { %v4041_v63 = vpop.xlane.xlu0 %4040 }
 0x794   : > { %v4042_v15 = vsub.f32 %v4034_v38, %v4041_v63 }
 0x796   : > { %v4043_v41 = vmul.f32 1.442695, %v4042_v15 }
 0x798   : > { %4791 = vpow2.f32 %v4043_v41 }
 0x79e   : > { %v4792_v36 = vpop.eup %4791 }
 0x79f   : > { %v4045_v26 = vsel %vm4038_vm1, %v4792_v36, 0.0 }
 0x7a0   : > { %4046 = vadd.xlane.f32.xlu0 %v4045_v26 }
 0x813   : > { %v4047_v61 = vpop.xlane.xlu0 %4046 }
 0x814   : > { %4793 = vlog2.f32 %v4047_v61 }
 0x81a   : > { %v4794_v22 = vpop.eup %4793 }
 0x81b   : > { %v4049_v45 = vmul.f32 0.6931472, %v4794_v22 }
 0x81d   : > { %v4050_v4 = vadd.f32 %v4049_v45, %v4041_v63 }
 0x81f   : > { %v4051_v12 = vsub.f32 %v4034_v38, %v4050_v4 }
 0x821   : > { %4052 = vst [vmem:[%s380_s24] sm:$0xff] %v4051_v12 }
 0x822   : > { %4825 = shalt.err (!%p4822_p3)
}
 0x823   : > { %4747 = dma.vmem_to_hbm [thread:$0]  (%p4960_p5), %s4067_s12, 128, %s4069_s16, %s4054_s29  }
 0x824 PF: > { %p4753_p4 = scmp.ge.s32.totalorder %s4860_s20, 2  ;;  %s4080_s26 = sand.u32 1, %s4848_s17  }
 0x825   : > { %s4081_s25 = scalar_lea.sflag [#allocation6], %s4080_s26 }
 0x826   : > { %p4750_p7 = pnand %p4753_p4, %p4964_p6 }
 0x828   : > { %p4751_p8 = pneg %p4750_p7 }
 0x82a   : > { %4843 = dma.done.wait (%p4751_p8), %s4081_s25, 128  }
 0x82b   : > { %4845 = vsyncadd (%p4751_p8), %s4081_s25, 4294967168  ;;  %s7779_s24 = sld [smem:[#allocation8_spill]]  ;;  %p21_p9 = scmp.ge.s32.totalorder %s4947_s23, 4  }
 0x82c   : > { %s7780_s19 = sld [smem:[#allocation9_spill]]  ;;  %s7781_s17 = smov %s4852_s18 }
 0x82d   : > { %s7783_s20 = smov %s4947_s23  ;;  %23 = sbr.rel (!%p21_p9) target bundleno = 3 (0x3), region = 146 }
 0x831   : > { %s7782_s18 = smov %s7779_s24 }
 0x832   :  { %4087 = vsyncpa [#allocation6], 1 }
 0x833   :  { %4089 = vsyncpa [#allocation6 + $0x1], 1 }

</bundles_post_ra>
